<compile_context>
chip_gen: v7x
topology: tpu7x:2x2x1
jax: 0.10.0
libtpu: 0.0.40
codegen_flags: <defaults>
</compile_context>

<pallas_src>
import functools
import math

import jax
import jax.numpy as jnp
from jax.experimental import pallas as pl
from jax.experimental.pallas import tpu as pltpu


# ----------------------------- in-kernel helpers -----------------------------

def _layer_norm(z, g, b, eps):
    """LayerNorm over the last dim of a (rows, E) value."""
    mean = jnp.mean(z, axis=-1, keepdims=True)
    zc = z - mean
    var = jnp.mean(zc * zc, axis=-1, keepdims=True)
    return zc * jax.lax.rsqrt(var + eps) * g + b


def _mha(q_all, k_all, v_all, out_w, *, n_heads, head_dim):
    """Multi-head attention + output projection (no output bias).

    q_all:(Sq,H*Dh)  k_all/v_all:(Sk,H*Dh)  out_w:(H*Dh,E) -> (Sq,E).
    The attention scale is pre-folded into the Q projection weights.
    Per-head slices of out_w fold the head concat into the projection.
    """
    acc = None
    for h in range(n_heads):
        lo = h * head_dim
        hi = lo + head_dim
        # Contract the head dims directly -> no explicit k.T (no XLU transpose).
        s = jax.lax.dot_general(q_all[:, lo:hi], k_all[:, lo:hi],
                                (((1,), (1,)), ((), ())),
                                preferred_element_type=jnp.float32)
        s = s - jnp.max(s, axis=-1, keepdims=True)
        p = jnp.exp(s)
        attn = p / jnp.sum(p, axis=-1, keepdims=True)   # exact divide (PyTorch fidelity)
        o_h = jnp.dot(attn, v_all[:, lo:hi], preferred_element_type=jnp.float32)
        contrib = jnp.dot(o_h, out_w[lo:hi, :], preferred_element_type=jnp.float32)
        acc = contrib if acc is None else acc + contrib
    return acc


# ----------------------------- Pallas kernels -----------------------------

def _encoder_stack_kernel(src_ref, pe_ref, in_w_ref, in_b_ref,
                          qkv_w_ref, qkv_b_ref, out_w_ref, out_b_ref,
                          ln1_g_ref, ln1_b_ref, ff1_w_ref, ff1_b_ref,
                          ff2_w_ref, ff2_b_ref, ln2_g_ref, ln2_b_ref,
                          mem_ref, *, n_batch, n_heads, eps):
    """Whole TransformerEncoder stack; grid axis 0 iterates over layers.

    Step 0 additionally performs the encoder input projection + PE add.
    mem_ref (the output block, constant block index) holds the resident
    activation across all layer steps.
    """
    layer = pl.program_id(0)

    @pl.when(layer == 0)
    def _():
        w = in_w_ref[...]
        b = in_b_ref[...]
        for n in range(n_batch):
            # pe_ref[n] has shape (1, E): the module's batch-axis PE quirk.
            y = jnp.dot(src_ref[n].astype(jnp.float32), w,
                        preferred_element_type=jnp.float32) + b + pe_ref[n]
            mem_ref[n] = y.astype(mem_ref.dtype)

    qkv_w = qkv_w_ref[...]
    qkv_b = qkv_b_ref[...]
    out_w = out_w_ref[...]
    out_b = out_b_ref[...]
    ln1_g = ln1_g_ref[...]
    ln1_b = ln1_b_ref[...]
    ff1_w = ff1_w_ref[...]
    ff1_b = ff1_b_ref[...]
    ff2_w = ff2_w_ref[...]
    ff2_b = ff2_b_ref[...]
    ln2_g = ln2_g_ref[...]
    ln2_b = ln2_b_ref[...]

    e = qkv_w.shape[0]
    dh = e // n_heads
    for n in range(n_batch):
        x_n = mem_ref[n].astype(jnp.float32)                                # (S, E)
        # fused QKV projection: one (S,E)x(E,3E) matmul
        qkv = jnp.dot(x_n, qkv_w, preferred_element_type=jnp.float32) + qkv_b
        sa = _mha(qkv[:, :e], qkv[:, e:2 * e], qkv[:, 2 * e:], out_w,
                  n_heads=n_heads, head_dim=dh) + out_b
        z1 = _layer_norm(x_n + sa, ln1_g, ln1_b, eps)
        # FFN fused (intermediate stays in vregs/VMEM)
        h1 = jnp.maximum(
            jnp.dot(z1, ff1_w, preferred_element_type=jnp.float32) + ff1_b, 0.0)
        h2 = jnp.dot(h1, ff2_w, preferred_element_type=jnp.float32) + ff2_b
        z2 = _layer_norm(z1 + h2, ln2_g, ln2_b, eps)
        mem_ref[n] = z2.astype(mem_ref.dtype)


def _decoder_stack_kernel(tgt_ref, mem_ref, in_w_ref, in_b_ref,
                          map_w_ref, map_b_ref,
                          sa_qkv_w_ref, sa_qkv_b_ref, sa_out_w_ref, sa_out_b_ref,
                          ln1_g_ref, ln1_b_ref,
                          caq_w_ref, caq_b_ref, cakv_w_ref, cakv_b_ref,
                          ca_out_w_ref, ca_out_b_ref, ln2_g_ref, ln2_b_ref,
                          ff1_w_ref, ff1_b_ref, ff2_w_ref, ff2_b_ref,
                          ln3_g_ref, ln3_b_ref,
                          pred_ref, y_state,
                          *, n_batch, n_heads, eps):
    """Whole TransformerDecoder stack; grid axis 0 iterates over layers.

    Step 0 performs the decoder input projection into the persistent VMEM
    scratch y_state; the final linear_mapping is fused into the last step so
    only the (N,T,num_pred) prediction is written back to HBM.
    """
    layer = pl.program_id(0)
    last = pl.num_programs(0) - 1

    @pl.when(layer == 0)
    def _():
        w = in_w_ref[...]
        b = in_b_ref[...]
        for n in range(n_batch):
            y_state[n] = (jnp.dot(tgt_ref[n].astype(jnp.float32), w,
                                  preferred_element_type=jnp.float32) + b)

    sa_qkv_w = sa_qkv_w_ref[...]
    sa_qkv_b = sa_qkv_b_ref[...]
    sa_out_w = sa_out_w_ref[...]
    sa_out_b = sa_out_b_ref[...]
    ln1_g = ln1_g_ref[...]
    ln1_b = ln1_b_ref[...]
    caq_w = caq_w_ref[...]
    caq_b = caq_b_ref[...]
    cakv_w = cakv_w_ref[...]
    cakv_b = cakv_b_ref[...]
    ca_out_w = ca_out_w_ref[...]
    ca_out_b = ca_out_b_ref[...]
    ln2_g = ln2_g_ref[...]
    ln2_b = ln2_b_ref[...]
    ff1_w = ff1_w_ref[...]
    ff1_b = ff1_b_ref[...]
    ff2_w = ff2_w_ref[...]
    ff2_b = ff2_b_ref[...]
    ln3_g = ln3_g_ref[...]
    ln3_b = ln3_b_ref[...]

    e = sa_qkv_w.shape[0]
    dh = e // n_heads
    for n in range(n_batch):
        y_n = y_state[n]                                                     # (T, E) f32
        m_n = mem_ref[n].astype(jnp.float32)                                 # (S, E)
        # ---- self-attention (fused QKV) ----
        qkv = jnp.dot(y_n, sa_qkv_w, preferred_element_type=jnp.float32) + sa_qkv_b
        sa = _mha(qkv[:, :e], qkv[:, e:2 * e], qkv[:, 2 * e:], sa_out_w,
                  n_heads=n_heads, head_dim=dh) + sa_out_b
        z1 = _layer_norm(y_n + sa, ln1_g, ln1_b, eps)
        # ---- cross-attention (Q from decoder, fused KV from memory) ----
        q = jnp.dot(z1, caq_w, preferred_element_type=jnp.float32) + caq_b
        kv = jnp.dot(m_n, cakv_w, preferred_element_type=jnp.float32) + cakv_b
        ca = _mha(q, kv[:, :e], kv[:, e:], ca_out_w,
                  n_heads=n_heads, head_dim=dh) + ca_out_b
        z2 = _layer_norm(z1 + ca, ln2_g, ln2_b, eps)
        # ---- FFN ----
        h1 = jnp.maximum(
            jnp.dot(z2, ff1_w, preferred_element_type=jnp.float32) + ff1_b, 0.0)
        h2 = jnp.dot(h1, ff2_w, preferred_element_type=jnp.float32) + ff2_b
        z3 = _layer_norm(z2 + h2, ln3_g, ln3_b, eps)
        y_state[n] = z3

        @pl.when(layer == last)
        def _():
            pred_ref[n] = (jnp.dot(z3, map_w_ref[...],
                                   preferred_element_type=jnp.float32)
                           + map_b_ref[...]).astype(pred_ref.dtype)


# ----------------------------- pallas_call wrappers -----------------------------

_ENC_KEYS = ("qkv_w", "qkv_b", "out_w", "out_b", "ln1_g", "ln1_b",
             "ff1_w", "ff1_b", "ff2_w", "ff2_b", "ln2_g", "ln2_b")
_DEC_KEYS = ("sa_qkv_w", "sa_qkv_b", "sa_out_w", "sa_out_b", "ln1_g", "ln1_b",
             "caq_w", "caq_b", "cakv_w", "cakv_b", "ca_out_w", "ca_out_b",
             "ln2_g", "ln2_b", "ff1_w", "ff1_b", "ff2_w", "ff2_b",
             "ln3_g", "ln3_b")

_CPARAMS = pltpu.CompilerParams(dimension_semantics=("arbitrary",))


def _const_spec(a):
    """Full-array block, constant block index -> fetched once, VMEM-resident."""
    nd = a.ndim
    return pl.BlockSpec(a.shape, lambda k, _nd=nd: (0,) * _nd)


def _layer_spec(a):
    """Stacked per-layer array: stream layer k's slice (leading dim squeezed)."""
    nd = a.ndim
    return pl.BlockSpec((None,) + a.shape[1:],
                        lambda k, _nd=nd: (k,) + (0,) * (_nd - 1))


def encoder_forward(src, pe, prepped, *, n_heads):
    """src:(N,S,F), pe:(N,1,E) -> encoder memory (N,S,E). One pallas_call."""
    n, s, _ = src.shape
    enc_in = prepped["enc_in"]
    enc = prepped["enc"]
    e = enc_in["w"].shape[1]
    n_layers = enc["qkv_w"].shape[0]
    const_inputs = [src, pe, enc_in["w"], enc_in["b"]]
    layer_inputs = [enc[k] for k in _ENC_KEYS]
    kernel = functools.partial(_encoder_stack_kernel, n_batch=n,
                               n_heads=n_heads, eps=1e-5)
    return pl.pallas_call(
        kernel,
        out_shape=jax.ShapeDtypeStruct((n, s, e), src.dtype),
        grid=(n_layers,),
        in_specs=[_const_spec(a) for a in const_inputs]
                + [_layer_spec(a) for a in layer_inputs],
        out_specs=pl.BlockSpec((n, s, e), lambda k: (0, 0, 0)),
        compiler_params=_CPARAMS,
    )(*const_inputs, *layer_inputs)


def decoder_forward(tgt, mem, prepped, *, n_heads):
    """tgt:(N,T,num_pred), mem:(N,S,E) -> prediction (N,T,num_pred)."""
    n, t, _ = tgt.shape
    _, _, e = mem.shape
    dec_in = prepped["dec_in"]
    dec = prepped["dec"]
    map_p = prepped["map"]
    npred = map_p["w"].shape[1]
    n_layers = dec["sa_qkv_w"].shape[0]
    const_inputs = [tgt, mem, dec_in["w"], dec_in["b"], map_p["w"], map_p["b"]]
    layer_inputs = [dec[k] for k in _DEC_KEYS]
    kernel = functools.partial(_decoder_stack_kernel, n_batch=n,
                               n_heads=n_heads, eps=1e-5)
    return pl.pallas_call(
        kernel,
        out_shape=jax.ShapeDtypeStruct((n, t, npred), tgt.dtype),
        grid=(n_layers,),
        in_specs=[_const_spec(a) for a in const_inputs]
                + [_layer_spec(a) for a in layer_inputs],
        out_specs=pl.BlockSpec((n, t, npred), lambda k: (0, 0, 0)),
        scratch_shapes=[pltpu.VMEM((n, t, e), jnp.float32)],
        compiler_params=_CPARAMS,
    )(*const_inputs, *layer_inputs)


# ----------------------------- parameter prep (hoisted, one-time) -----------------------------

def prep_params(params, *, n_heads):
    """One-time conversion to kernel-ready layouts: transposed weights, fused
    QKV / KV matrices, (1,X) biases, attention scale folded into Q projection,
    and per-layer weights stacked along a leading layer axis for streaming."""
    dim_val = params["enc_in"]["w"].shape[0]
    scale = 1.0 / math.sqrt(dim_val // n_heads)

    def row(v):
        return v.reshape(1, -1)

    def lin(p):
        return {"w": p["w"].T, "b": row(p["b"])}

    def scale_q(in_proj_w, in_proj_b):
        # softmax((q*s) @ k^T) == softmax((q @ k^T) * s): fold scale into Q rows.
        return (in_proj_w.at[:dim_val].multiply(scale),
                in_proj_b.at[:dim_val].multiply(scale))

    def enc_layer(lp):
        sa = lp["self_attn"]
        w, b = scale_q(sa["in_proj_w"], sa["in_proj_b"])
        return {
            "qkv_w": w.T,                                    # (E, 3E) fused
            "qkv_b": row(b),
            "out_w": sa["out_proj_w"].T,
            "out_b": row(sa["out_proj_b"]),
            "ln1_g": row(lp["ln1"]["g"]), "ln1_b": row(lp["ln1"]["b"]),
            "ff1_w": lp["ff1"]["w"].T, "ff1_b": row(lp["ff1"]["b"]),
            "ff2_w": lp["ff2"]["w"].T, "ff2_b": row(lp["ff2"]["b"]),
            "ln2_g": row(lp["ln2"]["g"]), "ln2_b": row(lp["ln2"]["b"]),
        }

    def dec_layer(lp):
        sa = lp["self_attn"]
        ca = lp["cross_attn"]
        sa_w, sa_b = scale_q(sa["in_proj_w"], sa["in_proj_b"])
        ca_w, ca_b = scale_q(ca["in_proj_w"], ca["in_proj_b"])
        e = dim_val
        return {
            "sa_qkv_w": sa_w.T, "sa_qkv_b": row(sa_b),
            "sa_out_w": sa["out_proj_w"].T, "sa_out_b": row(sa["out_proj_b"]),
            "ln1_g": row(lp["ln1"]["g"]), "ln1_b": row(lp["ln1"]["b"]),
            "caq_w": ca_w[:e].T, "caq_b": row(ca_b[:e]),
            "cakv_w": ca_w[e:].T, "cakv_b": row(ca_b[e:]),   # (E, 2E) fused KV
            "ca_out_w": ca["out_proj_w"].T, "ca_out_b": row(ca["out_proj_b"]),
            "ln2_g": row(lp["ln2"]["g"]), "ln2_b": row(lp["ln2"]["b"]),
            "ff1_w": lp["ff1"]["w"].T, "ff1_b": row(lp["ff1"]["b"]),
            "ff2_w": lp["ff2"]["w"].T, "ff2_b": row(lp["ff2"]["b"]),
            "ln3_g": row(lp["ln3"]["g"]), "ln3_b": row(lp["ln3"]["b"]),
        }

    def stack(dicts, keys):
        return {k: jnp.stack([d[k] for d in dicts]) for k in keys}

    return {
        "enc_in": lin(params["enc_in"]),
        "dec_in": lin(params["dec_in"]),
        "map": lin(params["map"]),
        "pe": params["pe"],
        "enc": stack([enc_layer(lp) for lp in params["enc_layers"]], _ENC_KEYS),
        "dec": stack([dec_layer(lp) for lp in params["dec_layers"]], _DEC_KEYS),
    }


# ----------------------------- forward -----------------------------

def transformer_forward(src, tgt, prepped, *, n_heads):
    """src:(N,S,input_size), tgt:(N,T,num_pred) -> (N,T,num_pred)."""
    n = src.shape[0]
    # Reproduces the module's batch-axis PE addition quirk (pe[:N] over batch).
    pe = prepped["pe"][:n]                                   # (N, 1, E)
    mem = encoder_forward(src, pe, prepped, n_heads=n_heads)   # 1 pallas_call
    return decoder_forward(tgt, mem, prepped, n_heads=n_heads)  # 1 pallas_call


# ----------------------------- deterministic init -----------------------------

def _linear_init(key, out_f, in_f):
    kw, kb = jax.random.split(key)
    bound = 1.0 / math.sqrt(in_f)
    return {"w": jax.random.uniform(kw, (out_f, in_f), jnp.float32, -bound, bound),
            "b": jax.random.uniform(kb, (out_f,), jnp.float32, -bound, bound)}


def _mha_init(key, E):
    k1, k2 = jax.random.split(key)
    xavier = math.sqrt(6.0 / (E + E))
    bound = 1.0 / math.sqrt(E)
    return {"in_proj_w": jax.random.uniform(k1, (3 * E, E), jnp.float32, -xavier, xavier),
            "in_proj_b": jnp.zeros((3 * E,), jnp.float32),
            "out_proj_w": jax.random.uniform(k2, (E, E), jnp.float32, -bound, bound),
            "out_proj_b": jnp.zeros((E,), jnp.float32)}


def _ln_init(E):
    return {"g": jnp.ones((E,), jnp.float32), "b": jnp.zeros((E,), jnp.float32)}


def _positional_encoding(max_seq_len, d_model):
    pos = jnp.arange(max_seq_len, dtype=jnp.float32)[:, None]
    div = jnp.exp(jnp.arange(0, d_model, 2, dtype=jnp.float32)
                  * (-math.log(10000.0) / d_model))
    pe = jnp.zeros((max_seq_len, 1, d_model), jnp.float32)
    pe = pe.at[:, 0, 0::2].set(jnp.sin(pos * div))
    pe = pe.at[:, 0, 1::2].set(jnp.cos(pos * div))
    return pe


def init_params(key, input_size, num_pred, dim_val, n_enc, n_dec, dff_enc, dff_dec,
                max_seq_len=5000):
    keys = jax.random.split(key, 3 + 2 * n_enc + 3 * n_dec + 8)
    ki = iter(keys)
    params = {
        "enc_in": _linear_init(next(ki), dim_val, input_size),
        "dec_in": _linear_init(next(ki), dim_val, num_pred),
        "map": _linear_init(next(ki), num_pred, dim_val),
        "pe": _positional_encoding(max_seq_len, dim_val),
        "enc_layers": [],
        "dec_layers": [],
    }
    for _ in range(n_enc):
        params["enc_layers"].append({
            "self_attn": _mha_init(next(ki), dim_val),
            "ln1": _ln_init(dim_val),
            "ln2": _ln_init(dim_val),
            "ff1": _linear_init(next(ki), dff_enc, dim_val),
            "ff2": _linear_init(next(ki), dim_val, dff_enc),
        })
    for _ in range(n_dec):
        params["dec_layers"].append({
            "self_attn": _mha_init(next(ki), dim_val),
            "cross_attn": _mha_init(next(ki), dim_val),
            "ln1": _ln_init(dim_val),
            "ln2": _ln_init(dim_val),
            "ln3": _ln_init(dim_val),
            "ff1": _linear_init(next(ki), dff_dec, dim_val),
            "ff2": _linear_init(next(ki), dim_val, dff_dec),
        })
    return params


# ----------------------------- main -----------------------------

if __name__ == "__main__":
    # Small, module-consistent hyperparameters.
    N, S, T = 2, 8, 6               # batch, encoder seq len, decoder seq len
    input_size = 1
    num_predicted_features = 1
    dim_val = 32
    n_heads = 2
    n_encoder_layers = 2
    n_decoder_layers = 2
    dff_enc = 64
    dff_dec = 64

    root = jax.random.PRNGKey(0)
    k_params, k_src, k_tgt = jax.random.split(root, 3)

    params = init_params(k_params, input_size, num_predicted_features, dim_val,
                         n_encoder_layers, n_decoder_layers, dff_enc, dff_dec)
    # One-time: transposes, fused QKV/KV layouts, folded attention scale,
    # per-layer weight stacking for BlockSpec streaming.
    prepped = prep_params(params, n_heads=n_heads)

    src = jax.random.normal(k_src, (N, S, input_size), jnp.float32)
    tgt = jax.random.normal(k_tgt, (N, T, num_predicted_features), jnp.float32)

    fwd = jax.jit(functools.partial(transformer_forward, n_heads=n_heads))
    out = fwd(src, tgt, prepped)
    out = jax.block_until_ready(out)

    assert out.shape == (N, T, num_predicted_features), out.shape
    assert bool(jnp.all(jnp.isfinite(out)))
    print("KERNEL_OK")
</pallas_src>

<mosaic_0001>
module attributes {stable_mosaic.version = 11 : i64} {
  func.func @_encoder_stack_kernel(%arg0: i32, %arg1: memref<2x8x1xf32, #tpu.memory_space<vmem>>, %arg2: memref<2x1x32xf32, #tpu.memory_space<vmem>>, %arg3: memref<1x32xf32, #tpu.memory_space<vmem>>, %arg4: memref<1x32xf32, #tpu.memory_space<vmem>>, %arg5: memref<1x32x96xf32, #tpu.memory_space<vmem>>, %arg6: memref<1x1x96xf32, #tpu.memory_space<vmem>>, %arg7: memref<1x32x32xf32, #tpu.memory_space<vmem>>, %arg8: memref<1x1x32xf32, #tpu.memory_space<vmem>>, %arg9: memref<1x1x32xf32, #tpu.memory_space<vmem>>, %arg10: memref<1x1x32xf32, #tpu.memory_space<vmem>>, %arg11: memref<1x32x64xf32, #tpu.memory_space<vmem>>, %arg12: memref<1x1x64xf32, #tpu.memory_space<vmem>>, %arg13: memref<1x64x32xf32, #tpu.memory_space<vmem>>, %arg14: memref<1x1x32xf32, #tpu.memory_space<vmem>>, %arg15: memref<1x1x32xf32, #tpu.memory_space<vmem>>, %arg16: memref<1x1x32xf32, #tpu.memory_space<vmem>>, %arg17: memref<2x8x32xf32, #tpu.memory_space<vmem>>) attributes {dimension_semantics = [#tpu.dimension_semantics<arbitrary>], iteration_bounds = array<i64: 2>, scalar_prefetch = 0 : i64, scratch_operands = 0 : i64, tpu.core_type = #tpu.core_type<tc>, window_params = [{pipeline_mode = #tpu.pipeline_mode<synchronous>, transform_indices = @transform_0, window_bounds = array<i64: 2, 8, 1>}, {pipeline_mode = #tpu.pipeline_mode<synchronous>, transform_indices = @transform_1, window_bounds = array<i64: 2, 1, 32>}, {pipeline_mode = #tpu.pipeline_mode<synchronous>, transform_indices = @transform_2, window_bounds = array<i64: 1, 32>}, {pipeline_mode = #tpu.pipeline_mode<synchronous>, transform_indices = @transform_3, window_bounds = array<i64: 1, 32>}, {transform_indices = @transform_4, window_bounds = array<i64: 1, 32, 96>}, {transform_indices = @transform_5, window_bounds = array<i64: 1, 1, 96>}, {transform_indices = @transform_6, window_bounds = array<i64: 1, 32, 32>}, {transform_indices = @transform_7, window_bounds = array<i64: 1, 1, 32>}, {transform_indices = @transform_8, window_bounds = array<i64: 1, 1, 32>}, {transform_indices = @transform_9, window_bounds = array<i64: 1, 1, 32>}, {transform_indices = @transform_10, window_bounds = array<i64: 1, 32, 64>}, {transform_indices = @transform_11, window_bounds = array<i64: 1, 1, 64>}, {transform_indices = @transform_12, window_bounds = array<i64: 1, 64, 32>}, {transform_indices = @transform_13, window_bounds = array<i64: 1, 1, 32>}, {transform_indices = @transform_14, window_bounds = array<i64: 1, 1, 32>}, {transform_indices = @transform_15, window_bounds = array<i64: 1, 1, 32>}, {pipeline_mode = #tpu.pipeline_mode<synchronous>, transform_indices = @transform_16, window_bounds = array<i64: 2, 8, 32>}]} {
    %c0_i32 = arith.constant 0 : i32
    %0 = arith.cmpi eq, %arg0, %c0_i32 : i32
    %1 = arith.extui %0 : i1 to i32
    %c0_i32_0 = arith.constant 0 : i32
    %2 = arith.cmpi ne, %1, %c0_i32_0 : i32
    scf.if %2 {
      %c0_94 = arith.constant 0 : index
      %c0_95 = arith.constant 0 : index
      %219 = vector.load %arg3[%c0_94, %c0_95] : memref<1x32xf32, #tpu.memory_space<vmem>>, vector<1x32xf32>
      %c0_96 = arith.constant 0 : index
      %c0_97 = arith.constant 0 : index
      %220 = vector.load %arg4[%c0_96, %c0_97] : memref<1x32xf32, #tpu.memory_space<vmem>>, vector<1x32xf32>
      %c0_98 = arith.constant 0 : index
      %c0_99 = arith.constant 0 : index
      %c0_100 = arith.constant 0 : index
      %221 = vector.load %arg1[%c0_98, %c0_99, %c0_100] : memref<2x8x1xf32, #tpu.memory_space<vmem>>, vector<1x8x1xf32>
      %222 = vector.shape_cast %221 : vector<1x8x1xf32> to vector<8x1xf32>
      %cst_101 = arith.constant dense<0.000000e+00> : vector<8x32xf32>
      %223 = tpu.matmul %222, %219, %cst_101 {dimension_numbers = #tpu.dot_dimension_numbers<[1], [0], [0], [1], [0, 0, 1, 1], [], []>} : vector<8x1xf32>, vector<1x32xf32>, vector<8x32xf32> -> vector<8x32xf32>
      %224 = vector.broadcast %220 : vector<1x32xf32> to vector<8x32xf32>
      %225 = arith.addf %223, %224 : vector<8x32xf32>
      %c0_102 = arith.constant 0 : index
      %c0_103 = arith.constant 0 : index
      %c0_104 = arith.constant 0 : index
      %226 = vector.load %arg2[%c0_102, %c0_103, %c0_104] : memref<2x1x32xf32, #tpu.memory_space<vmem>>, vector<1x1x32xf32>
      %227 = vector.shape_cast %226 : vector<1x1x32xf32> to vector<1x32xf32>
      %228 = vector.broadcast %227 : vector<1x32xf32> to vector<8x32xf32>
      %229 = arith.addf %225, %228 : vector<8x32xf32>
      %c0_105 = arith.constant 0 : index
      %c0_106 = arith.constant 0 : index
      %c0_107 = arith.constant 0 : index
      %230 = vector.load %arg17[%c0_105, %c0_106, %c0_107] : memref<2x8x32xf32, #tpu.memory_space<vmem>>, vector<1x8x32xf32>
      %231 = vector.shape_cast %230 : vector<1x8x32xf32> to vector<8x32xf32>
      %232 = vector.shape_cast %229 : vector<8x32xf32> to vector<1x8x32xf32>
      tpu.vector_store %arg17[%c0_105, %c0_106, %c0_107], %232 {strides = array<i32>} : memref<2x8x32xf32, #tpu.memory_space<vmem>>, vector<1x8x32xf32>,
      %c1_108 = arith.constant 1 : index
      %c0_109 = arith.constant 0 : index
      %c0_110 = arith.constant 0 : index
      %233 = vector.load %arg1[%c1_108, %c0_109, %c0_110] : memref<2x8x1xf32, #tpu.memory_space<vmem>>, vector<1x8x1xf32>
      %234 = vector.shape_cast %233 : vector<1x8x1xf32> to vector<8x1xf32>
      %cst_111 = arith.constant dense<0.000000e+00> : vector<8x32xf32>
      %235 = tpu.matmul %234, %219, %cst_111 {dimension_numbers = #tpu.dot_dimension_numbers<[1], [0], [0], [1], [0, 0, 1, 1], [], []>} : vector<8x1xf32>, vector<1x32xf32>, vector<8x32xf32> -> vector<8x32xf32>
      %236 = vector.broadcast %220 : vector<1x32xf32> to vector<8x32xf32>
      %237 = arith.addf %235, %236 : vector<8x32xf32>
      %c1_112 = arith.constant 1 : index
      %c0_113 = arith.constant 0 : index
      %c0_114 = arith.constant 0 : index
      %238 = vector.load %arg2[%c1_112, %c0_113, %c0_114] : memref<2x1x32xf32, #tpu.memory_space<vmem>>, vector<1x1x32xf32>
      %239 = vector.shape_cast %238 : vector<1x1x32xf32> to vector<1x32xf32>
      %240 = vector.broadcast %239 : vector<1x32xf32> to vector<8x32xf32>
      %241 = arith.addf %237, %240 : vector<8x32xf32>
      %c1_115 = arith.constant 1 : index
      %c0_116 = arith.constant 0 : index
      %c0_117 = arith.constant 0 : index
      %242 = vector.load %arg17[%c1_115, %c0_116, %c0_117] : memref<2x8x32xf32, #tpu.memory_space<vmem>>, vector<1x8x32xf32>
      %243 = vector.shape_cast %242 : vector<1x8x32xf32> to vector<8x32xf32>
      %244 = vector.shape_cast %241 : vector<8x32xf32> to vector<1x8x32xf32>
      tpu.vector_store %arg17[%c1_115, %c0_116, %c0_117], %244 {strides = array<i32>} : memref<2x8x32xf32, #tpu.memory_space<vmem>>, vector<1x8x32xf32>,
    } else {
    }
    %c0 = arith.constant 0 : index
    %c0_1 = arith.constant 0 : index
    %c0_2 = arith.constant 0 : index
    %3 = vector.load %arg5[%c0, %c0_1, %c0_2] : memref<1x32x96xf32, #tpu.memory_space<vmem>>, vector<1x32x96xf32>
    %4 = vector.shape_cast %3 : vector<1x32x96xf32> to vector<32x96xf32>
    %c0_3 = arith.constant 0 : index
    %c0_4 = arith.constant 0 : index
    %c0_5 = arith.constant 0 : index
    %5 = vector.load %arg6[%c0_3, %c0_4, %c0_5] : memref<1x1x96xf32, #tpu.memory_space<vmem>>, vector<1x1x96xf32>
    %6 = vector.shape_cast %5 : vector<1x1x96xf32> to vector<1x96xf32>
    %c0_6 = arith.constant 0 : index
    %c0_7 = arith.constant 0 : index
    %c0_8 = arith.constant 0 : index
    %7 = vector.load %arg7[%c0_6, %c0_7, %c0_8] : memref<1x32x32xf32, #tpu.memory_space<vmem>>, vector<1x32x32xf32>
    %8 = vector.shape_cast %7 : vector<1x32x32xf32> to vector<32x32xf32>
    %c0_9 = arith.constant 0 : index
    %c0_10 = arith.constant 0 : index
    %c0_11 = arith.constant 0 : index
    %9 = vector.load %arg8[%c0_9, %c0_10, %c0_11] : memref<1x1x32xf32, #tpu.memory_space<vmem>>, vector<1x1x32xf32>
    %10 = vector.shape_cast %9 : vector<1x1x32xf32> to vector<1x32xf32>
    %c0_12 = arith.constant 0 : index
    %c0_13 = arith.constant 0 : index
    %c0_14 = arith.constant 0 : index
    %11 = vector.load %arg9[%c0_12, %c0_13, %c0_14] : memref<1x1x32xf32, #tpu.memory_space<vmem>>, vector<1x1x32xf32>
    %12 = vector.shape_cast %11 : vector<1x1x32xf32> to vector<1x32xf32>
    %c0_15 = arith.constant 0 : index
    %c0_16 = arith.constant 0 : index
    %c0_17 = arith.constant 0 : index
    %13 = vector.load %arg10[%c0_15, %c0_16, %c0_17] : memref<1x1x32xf32, #tpu.memory_space<vmem>>, vector<1x1x32xf32>
    %14 = vector.shape_cast %13 : vector<1x1x32xf32> to vector<1x32xf32>
    %c0_18 = arith.constant 0 : index
    %c0_19 = arith.constant 0 : index
    %c0_20 = arith.constant 0 : index
    %15 = vector.load %arg11[%c0_18, %c0_19, %c0_20] : memref<1x32x64xf32, #tpu.memory_space<vmem>>, vector<1x32x64xf32>
    %16 = vector.shape_cast %15 : vector<1x32x64xf32> to vector<32x64xf32>
    %c0_21 = arith.constant 0 : index
    %c0_22 = arith.constant 0 : index
    %c0_23 = arith.constant 0 : index
    %17 = vector.load %arg12[%c0_21, %c0_22, %c0_23] : memref<1x1x64xf32, #tpu.memory_space<vmem>>, vector<1x1x64xf32>
    %18 = vector.shape_cast %17 : vector<1x1x64xf32> to vector<1x64xf32>
    %c0_24 = arith.constant 0 : index
    %c0_25 = arith.constant 0 : index
    %c0_26 = arith.constant 0 : index
    %19 = vector.load %arg13[%c0_24, %c0_25, %c0_26] : memref<1x64x32xf32, #tpu.memory_space<vmem>>, vector<1x64x32xf32>
    %20 = vector.shape_cast %19 : vector<1x64x32xf32> to vector<64x32xf32>
    %c0_27 = arith.constant 0 : index
    %c0_28 = arith.constant 0 : index
    %c0_29 = arith.constant 0 : index
    %21 = vector.load %arg14[%c0_27, %c0_28, %c0_29] : memref<1x1x32xf32, #tpu.memory_space<vmem>>, vector<1x1x32xf32>
    %22 = vector.shape_cast %21 : vector<1x1x32xf32> to vector<1x32xf32>
    %c0_30 = arith.constant 0 : index
    %c0_31 = arith.constant 0 : index
    %c0_32 = arith.constant 0 : index
    %23 = vector.load %arg15[%c0_30, %c0_31, %c0_32] : memref<1x1x32xf32, #tpu.memory_space<vmem>>, vector<1x1x32xf32>
    %24 = vector.shape_cast %23 : vector<1x1x32xf32> to vector<1x32xf32>
    %c0_33 = arith.constant 0 : index
    %c0_34 = arith.constant 0 : index
    %c0_35 = arith.constant 0 : index
    %25 = vector.load %arg16[%c0_33, %c0_34, %c0_35] : memref<1x1x32xf32, #tpu.memory_space<vmem>>, vector<1x1x32xf32>
    %26 = vector.shape_cast %25 : vector<1x1x32xf32> to vector<1x32xf32>
    %c0_36 = arith.constant 0 : index
    %c0_37 = arith.constant 0 : index
    %c0_38 = arith.constant 0 : index
    %27 = vector.load %arg17[%c0_36, %c0_37, %c0_38] : memref<2x8x32xf32, #tpu.memory_space<vmem>>, vector<1x8x32xf32>
    %28 = vector.shape_cast %27 : vector<1x8x32xf32> to vector<8x32xf32>
    %cst = arith.constant dense<0.000000e+00> : vector<8x96xf32>
    %29 = tpu.matmul %28, %4, %cst {dimension_numbers = #tpu.dot_dimension_numbers<[1], [0], [0], [1], [0, 0, 1, 1], [], []>} : vector<8x32xf32>, vector<32x96xf32>, vector<8x96xf32> -> vector<8x96xf32>
    %30 = vector.broadcast %6 : vector<1x96xf32> to vector<8x96xf32>
    %31 = arith.addf %29, %30 : vector<8x96xf32>
    %32 = vector.extract_strided_slice %31 {offsets = [0, 0], sizes = [8, 32], strides = [1, 1]} : vector<8x96xf32> to vector<8x32xf32>
    %33 = vector.extract_strided_slice %31 {offsets = [0, 32], sizes = [8, 32], strides = [1, 1]} : vector<8x96xf32> to vector<8x32xf32>
    %34 = vector.extract_strided_slice %31 {offsets = [0, 64], sizes = [8, 32], strides = [1, 1]} : vector<8x96xf32> to vector<8x32xf32>
    %35 = vector.extract_strided_slice %32 {offsets = [0, 0], sizes = [8, 16], strides = [1, 1]} : vector<8x32xf32> to vector<8x16xf32>
    %36 = vector.extract_strided_slice %33 {offsets = [0, 0], sizes = [8, 16], strides = [1, 1]} : vector<8x32xf32> to vector<8x16xf32>
    %cst_39 = arith.constant dense<0.000000e+00> : vector<8x8xf32>
    %37 = tpu.matmul %35, %36, %cst_39 {dimension_numbers = #tpu.dot_dimension_numbers<[1], [1], [0], [0], [0, 0, 1, 0], [], []>} : vector<8x16xf32>, vector<8x16xf32>, vector<8x8xf32> -> vector<8x8xf32>
    %cst_40 = arith.constant dense<0xFF800000> : vector<8xf32>
    %38 = vector.multi_reduction <maximumf>, %37, %cst_40 [1] : vector<8x8xf32> to vector<8xf32>
    %39 = vector.shape_cast %38 : vector<8xf32> to vector<8x1xf32>
    %40 = vector.broadcast %39 : vector<8x1xf32> to vector<8x8xf32>
    %41 = arith.subf %37, %40 : vector<8x8xf32>
    %42 = math.exp %41 : vector<8x8xf32>
    %cst_41 = arith.constant dense<0.000000e+00> : vector<8xf32>
    %43 = vector.multi_reduction <add>, %42, %cst_41 [1] : vector<8x8xf32> to vector<8xf32>
    %44 = vector.shape_cast %43 : vector<8xf32> to vector<8x1xf32>
    %45 = vector.broadcast %44 : vector<8x1xf32> to vector<8x8xf32>
    %46 = arith.divf %42, %45 : vector<8x8xf32>
    %47 = vector.extract_strided_slice %34 {offsets = [0, 0], sizes = [8, 16], strides = [1, 1]} : vector<8x32xf32> to vector<8x16xf32>
    %cst_42 = arith.constant dense<0.000000e+00> : vector<8x16xf32>
    %48 = tpu.matmul %46, %47, %cst_42 {dimension_numbers = #tpu.dot_dimension_numbers<[1], [0], [0], [1], [0, 0, 1, 1], [], []>} : vector<8x8xf32>, vector<8x16xf32>, vector<8x16xf32> -> vector<8x16xf32>
    %49 = vector.extract_strided_slice %8 {offsets = [0, 0], sizes = [16, 32], strides = [1, 1]} : vector<32x32xf32> to vector<16x32xf32>
    %cst_43 = arith.constant dense<0.000000e+00> : vector<8x32xf32>
    %50 = tpu.matmul %48, %49, %cst_43 {dimension_numbers = #tpu.dot_dimension_numbers<[1], [0], [0], [1], [0, 0, 1, 1], [], []>} : vector<8x16xf32>, vector<16x32xf32>, vector<8x32xf32> -> vector<8x32xf32>
    %51 = vector.extract_strided_slice %32 {offsets = [0, 16], sizes = [8, 16], strides = [1, 1]} : vector<8x32xf32> to vector<8x16xf32>
    %52 = vector.extract_strided_slice %33 {offsets = [0, 16], sizes = [8, 16], strides = [1, 1]} : vector<8x32xf32> to vector<8x16xf32>
    %cst_44 = arith.constant dense<0.000000e+00> : vector<8x8xf32>
    %53 = tpu.matmul %51, %52, %cst_44 {dimension_numbers = #tpu.dot_dimension_numbers<[1], [1], [0], [0], [0, 0, 1, 0], [], []>} : vector<8x16xf32>, vector<8x16xf32>, vector<8x8xf32> -> vector<8x8xf32>
    %cst_45 = arith.constant dense<0xFF800000> : vector<8xf32>
    %54 = vector.multi_reduction <maximumf>, %53, %cst_45 [1] : vector<8x8xf32> to vector<8xf32>
    %55 = vector.shape_cast %54 : vector<8xf32> to vector<8x1xf32>
    %56 = vector.broadcast %55 : vector<8x1xf32> to vector<8x8xf32>
    %57 = arith.subf %53, %56 : vector<8x8xf32>
    %58 = math.exp %57 : vector<8x8xf32>
    %cst_46 = arith.constant dense<0.000000e+00> : vector<8xf32>
    %59 = vector.multi_reduction <add>, %58, %cst_46 [1] : vector<8x8xf32> to vector<8xf32>
    %60 = vector.shape_cast %59 : vector<8xf32> to vector<8x1xf32>
    %61 = vector.broadcast %60 : vector<8x1xf32> to vector<8x8xf32>
    %62 = arith.divf %58, %61 : vector<8x8xf32>
    %63 = vector.extract_strided_slice %34 {offsets = [0, 16], sizes = [8, 16], strides = [1, 1]} : vector<8x32xf32> to vector<8x16xf32>
    %cst_47 = arith.constant dense<0.000000e+00> : vector<8x16xf32>
    %64 = tpu.matmul %62, %63, %cst_47 {dimension_numbers = #tpu.dot_dimension_numbers<[1], [0], [0], [1], [0, 0, 1, 1], [], []>} : vector<8x8xf32>, vector<8x16xf32>, vector<8x16xf32> -> vector<8x16xf32>
    %65 = vector.extract_strided_slice %8 {offsets = [16, 0], sizes = [16, 32], strides = [1, 1]} : vector<32x32xf32> to vector<16x32xf32>
    %cst_48 = arith.constant dense<0.000000e+00> : vector<8x32xf32>
    %66 = tpu.matmul %64, %65, %cst_48 {dimension_numbers = #tpu.dot_dimension_numbers<[1], [0], [0], [1], [0, 0, 1, 1], [], []>} : vector<8x16xf32>, vector<16x32xf32>, vector<8x32xf32> -> vector<8x32xf32>
    %67 = arith.addf %50, %66 : vector<8x32xf32>
    %68 = vector.broadcast %10 : vector<1x32xf32> to vector<8x32xf32>
    %69 = arith.addf %67, %68 : vector<8x32xf32>
    %70 = arith.addf %28, %69 : vector<8x32xf32>
    %cst_49 = arith.constant dense<0.000000e+00> : vector<8xf32>
    %71 = vector.multi_reduction <add>, %70, %cst_49 [1] : vector<8x32xf32> to vector<8xf32>
    %72 = vector.shape_cast %71 : vector<8xf32> to vector<8x1xf32>
    %cst_50 = arith.constant 3.200000e+01 : f32
    %73 = vector.broadcast %cst_50 : f32 to vector<8x1xf32>
    %74 = arith.divf %72, %73 : vector<8x1xf32>
    %75 = vector.broadcast %74 : vector<8x1xf32> to vector<8x32xf32>
    %76 = arith.subf %70, %75 : vector<8x32xf32>
    %77 = arith.mulf %76, %76 : vector<8x32xf32>
    %cst_51 = arith.constant dense<0.000000e+00> : vector<8xf32>
    %78 = vector.multi_reduction <add>, %77, %cst_51 [1] : vector<8x32xf32> to vector<8xf32>
    %79 = vector.shape_cast %78 : vector<8xf32> to vector<8x1xf32>
    %cst_52 = arith.constant 3.200000e+01 : f32
    %80 = vector.broadcast %cst_52 : f32 to vector<8x1xf32>
    %81 = arith.divf %79, %80 : vector<8x1xf32>
    %cst_53 = arith.constant 9.99999974E-6 : f32
    %82 = vector.broadcast %cst_53 : f32 to vector<8x1xf32>
    %83 = arith.addf %81, %82 : vector<8x1xf32>
    %84 = math.rsqrt %83 : vector<8x1xf32>
    %85 = vector.broadcast %84 : vector<8x1xf32> to vector<8x32xf32>
    %86 = arith.mulf %76, %85 : vector<8x32xf32>
    %87 = vector.broadcast %12 : vector<1x32xf32> to vector<8x32xf32>
    %88 = arith.mulf %86, %87 : vector<8x32xf32>
    %89 = vector.broadcast %14 : vector<1x32xf32> to vector<8x32xf32>
    %90 = arith.addf %88, %89 : vector<8x32xf32>
    %cst_54 = arith.constant dense<0.000000e+00> : vector<8x64xf32>
    %91 = tpu.matmul %90, %16, %cst_54 {dimension_numbers = #tpu.dot_dimension_numbers<[1], [0], [0], [1], [0, 0, 1, 1], [], []>} : vector<8x32xf32>, vector<32x64xf32>, vector<8x64xf32> -> vector<8x64xf32>
    %92 = vector.broadcast %18 : vector<1x64xf32> to vector<8x64xf32>
    %93 = arith.addf %91, %92 : vector<8x64xf32>
    %cst_55 = arith.constant 0.000000e+00 : f32
    %94 = vector.broadcast %cst_55 : f32 to vector<8x64xf32>
    %95 = arith.maximumf %93, %94 : vector<8x64xf32>
    %cst_56 = arith.constant dense<0.000000e+00> : vector<8x32xf32>
    %96 = tpu.matmul %95, %20, %cst_56 {dimension_numbers = #tpu.dot_dimension_numbers<[1], [0], [0], [1], [0, 0, 1, 1], [], []>} : vector<8x64xf32>, vector<64x32xf32>, vector<8x32xf32> -> vector<8x32xf32>
    %97 = vector.broadcast %22 : vector<1x32xf32> to vector<8x32xf32>
    %98 = arith.addf %96, %97 : vector<8x32xf32>
    %99 = arith.addf %90, %98 : vector<8x32xf32>
    %cst_57 = arith.constant dense<0.000000e+00> : vector<8xf32>
    %100 = vector.multi_reduction <add>, %99, %cst_57 [1] : vector<8x32xf32> to vector<8xf32>
    %101 = vector.shape_cast %100 : vector<8xf32> to vector<8x1xf32>
    %cst_58 = arith.constant 3.200000e+01 : f32
    %102 = vector.broadcast %cst_58 : f32 to vector<8x1xf32>
    %103 = arith.divf %101, %102 : vector<8x1xf32>
    %104 = vector.broadcast %103 : vector<8x1xf32> to vector<8x32xf32>
    %105 = arith.subf %99, %104 : vector<8x32xf32>
    %106 = arith.mulf %105, %105 : vector<8x32xf32>
    %cst_59 = arith.constant dense<0.000000e+00> : vector<8xf32>
    %107 = vector.multi_reduction <add>, %106, %cst_59 [1] : vector<8x32xf32> to vector<8xf32>
    %108 = vector.shape_cast %107 : vector<8xf32> to vector<8x1xf32>
    %cst_60 = arith.constant 3.200000e+01 : f32
    %109 = vector.broadcast %cst_60 : f32 to vector<8x1xf32>
    %110 = arith.divf %108, %109 : vector<8x1xf32>
    %cst_61 = arith.constant 9.99999974E-6 : f32
    %111 = vector.broadcast %cst_61 : f32 to vector<8x1xf32>
    %112 = arith.addf %110, %111 : vector<8x1xf32>
    %113 = math.rsqrt %112 : vector<8x1xf32>
    %114 = vector.broadcast %113 : vector<8x1xf32> to vector<8x32xf32>
    %115 = arith.mulf %105, %114 : vector<8x32xf32>
    %116 = vector.broadcast %24 : vector<1x32xf32> to vector<8x32xf32>
    %117 = arith.mulf %115, %116 : vector<8x32xf32>
    %118 = vector.broadcast %26 : vector<1x32xf32> to vector<8x32xf32>
    %119 = arith.addf %117, %118 : vector<8x32xf32>
    %c0_62 = arith.constant 0 : index
    %c0_63 = arith.constant 0 : index
    %c0_64 = arith.constant 0 : index
    %120 = vector.load %arg17[%c0_62, %c0_63, %c0_64] : memref<2x8x32xf32, #tpu.memory_space<vmem>>, vector<1x8x32xf32>
    %121 = vector.shape_cast %120 : vector<1x8x32xf32> to vector<8x32xf32>
    %122 = vector.shape_cast %119 : vector<8x32xf32> to vector<1x8x32xf32>
    tpu.vector_store %arg17[%c0_62, %c0_63, %c0_64], %122 {strides = array<i32>} : memref<2x8x32xf32, #tpu.memory_space<vmem>>, vector<1x8x32xf32>,
    %c1 = arith.constant 1 : index
    %c0_65 = arith.constant 0 : index
    %c0_66 = arith.constant 0 : index
    %123 = vector.load %arg17[%c1, %c0_65, %c0_66] : memref<2x8x32xf32, #tpu.memory_space<vmem>>, vector<1x8x32xf32>
    %124 = vector.shape_cast %123 : vector<1x8x32xf32> to vector<8x32xf32>
    %cst_67 = arith.constant dense<0.000000e+00> : vector<8x96xf32>
    %125 = tpu.matmul %124, %4, %cst_67 {dimension_numbers = #tpu.dot_dimension_numbers<[1], [0], [0], [1], [0, 0, 1, 1], [], []>} : vector<8x32xf32>, vector<32x96xf32>, vector<8x96xf32> -> vector<8x96xf32>
    %126 = vector.broadcast %6 : vector<1x96xf32> to vector<8x96xf32>
    %127 = arith.addf %125, %126 : vector<8x96xf32>
    %128 = vector.extract_strided_slice %127 {offsets = [0, 0], sizes = [8, 32], strides = [1, 1]} : vector<8x96xf32> to vector<8x32xf32>
    %129 = vector.extract_strided_slice %127 {offsets = [0, 32], sizes = [8, 32], strides = [1, 1]} : vector<8x96xf32> to vector<8x32xf32>
    %130 = vector.extract_strided_slice %127 {offsets = [0, 64], sizes = [8, 32], strides = [1, 1]} : vector<8x96xf32> to vector<8x32xf32>
    %131 = vector.extract_strided_slice %128 {offsets = [0, 0], sizes = [8, 16], strides = [1, 1]} : vector<8x32xf32> to vector<8x16xf32>
    %132 = vector.extract_strided_slice %129 {offsets = [0, 0], sizes = [8, 16], strides = [1, 1]} : vector<8x32xf32> to vector<8x16xf32>
    %cst_68 = arith.constant dense<0.000000e+00> : vector<8x8xf32>
    %133 = tpu.matmul %131, %132, %cst_68 {dimension_numbers = #tpu.dot_dimension_numbers<[1], [1], [0], [0], [0, 0, 1, 0], [], []>} : vector<8x16xf32>, vector<8x16xf32>, vector<8x8xf32> -> vector<8x8xf32>
    %cst_69 = arith.constant dense<0xFF800000> : vector<8xf32>
    %134 = vector.multi_reduction <maximumf>, %133, %cst_69 [1] : vector<8x8xf32> to vector<8xf32>
    %135 = vector.shape_cast %134 : vector<8xf32> to vector<8x1xf32>
    %136 = vector.broadcast %135 : vector<8x1xf32> to vector<8x8xf32>
    %137 = arith.subf %133, %136 : vector<8x8xf32>
    %138 = math.exp %137 : vector<8x8xf32>
    %cst_70 = arith.constant dense<0.000000e+00> : vector<8xf32>
    %139 = vector.multi_reduction <add>, %138, %cst_70 [1] : vector<8x8xf32> to vector<8xf32>
    %140 = vector.shape_cast %139 : vector<8xf32> to vector<8x1xf32>
    %141 = vector.broadcast %140 : vector<8x1xf32> to vector<8x8xf32>
    %142 = arith.divf %138, %141 : vector<8x8xf32>
    %143 = vector.extract_strided_slice %130 {offsets = [0, 0], sizes = [8, 16], strides = [1, 1]} : vector<8x32xf32> to vector<8x16xf32>
    %cst_71 = arith.constant dense<0.000000e+00> : vector<8x16xf32>
    %144 = tpu.matmul %142, %143, %cst_71 {dimension_numbers = #tpu.dot_dimension_numbers<[1], [0], [0], [1], [0, 0, 1, 1], [], []>} : vector<8x8xf32>, vector<8x16xf32>, vector<8x16xf32> -> vector<8x16xf32>
    %145 = vector.extract_strided_slice %8 {offsets = [0, 0], sizes = [16, 32], strides = [1, 1]} : vector<32x32xf32> to vector<16x32xf32>
    %cst_72 = arith.constant dense<0.000000e+00> : vector<8x32xf32>
    %146 = tpu.matmul %144, %145, %cst_72 {dimension_numbers = #tpu.dot_dimension_numbers<[1], [0], [0], [1], [0, 0, 1, 1], [], []>} : vector<8x16xf32>, vector<16x32xf32>, vector<8x32xf32> -> vector<8x32xf32>
    %147 = vector.extract_strided_slice %128 {offsets = [0, 16], sizes = [8, 16], strides = [1, 1]} : vector<8x32xf32> to vector<8x16xf32>
    %148 = vector.extract_strided_slice %129 {offsets = [0, 16], sizes = [8, 16], strides = [1, 1]} : vector<8x32xf32> to vector<8x16xf32>
    %cst_73 = arith.constant dense<0.000000e+00> : vector<8x8xf32>
    %149 = tpu.matmul %147, %148, %cst_73 {dimension_numbers = #tpu.dot_dimension_numbers<[1], [1], [0], [0], [0, 0, 1, 0], [], []>} : vector<8x16xf32>, vector<8x16xf32>, vector<8x8xf32> -> vector<8x8xf32>
    %cst_74 = arith.constant dense<0xFF800000> : vector<8xf32>
    %150 = vector.multi_reduction <maximumf>, %149, %cst_74 [1] : vector<8x8xf32> to vector<8xf32>
    %151 = vector.shape_cast %150 : vector<8xf32> to vector<8x1xf32>
    %152 = vector.broadcast %151 : vector<8x1xf32> to vector<8x8xf32>
    %153 = arith.subf %149, %152 : vector<8x8xf32>
    %154 = math.exp %153 : vector<8x8xf32>
    %cst_75 = arith.constant dense<0.000000e+00> : vector<8xf32>
    %155 = vector.multi_reduction <add>, %154, %cst_75 [1] : vector<8x8xf32> to vector<8xf32>
    %156 = vector.shape_cast %155 : vector<8xf32> to vector<8x1xf32>
    %157 = vector.broadcast %156 : vector<8x1xf32> to vector<8x8xf32>
    %158 = arith.divf %154, %157 : vector<8x8xf32>
    %159 = vector.extract_strided_slice %130 {offsets = [0, 16], sizes = [8, 16], strides = [1, 1]} : vector<8x32xf32> to vector<8x16xf32>
    %cst_76 = arith.constant dense<0.000000e+00> : vector<8x16xf32>
    %160 = tpu.matmul %158, %159, %cst_76 {dimension_numbers = #tpu.dot_dimension_numbers<[1], [0], [0], [1], [0, 0, 1, 1], [], []>} : vector<8x8xf32>, vector<8x16xf32>, vector<8x16xf32> -> vector<8x16xf32>
    %161 = vector.extract_strided_slice %8 {offsets = [16, 0], sizes = [16, 32], strides = [1, 1]} : vector<32x32xf32> to vector<16x32xf32>
    %cst_77 = arith.constant dense<0.000000e+00> : vector<8x32xf32>
    %162 = tpu.matmul %160, %161, %cst_77 {dimension_numbers = #tpu.dot_dimension_numbers<[1], [0], [0], [1], [0, 0, 1, 1], [], []>} : vector<8x16xf32>, vector<16x32xf32>, vector<8x32xf32> -> vector<8x32xf32>
    %163 = arith.addf %146, %162 : vector<8x32xf32>
    %164 = vector.broadcast %10 : vector<1x32xf32> to vector<8x32xf32>
    %165 = arith.addf %163, %164 : vector<8x32xf32>
    %166 = arith.addf %124, %165 : vector<8x32xf32>
    %cst_78 = arith.constant dense<0.000000e+00> : vector<8xf32>
    %167 = vector.multi_reduction <add>, %166, %cst_78 [1] : vector<8x32xf32> to vector<8xf32>
    %168 = vector.shape_cast %167 : vector<8xf32> to vector<8x1xf32>
    %cst_79 = arith.constant 3.200000e+01 : f32
    %169 = vector.broadcast %cst_79 : f32 to vector<8x1xf32>
    %170 = arith.divf %168, %169 : vector<8x1xf32>
    %171 = vector.broadcast %170 : vector<8x1xf32> to vector<8x32xf32>
    %172 = arith.subf %166, %171 : vector<8x32xf32>
    %173 = arith.mulf %172, %172 : vector<8x32xf32>
    %cst_80 = arith.constant dense<0.000000e+00> : vector<8xf32>
    %174 = vector.multi_reduction <add>, %173, %cst_80 [1] : vector<8x32xf32> to vector<8xf32>
    %175 = vector.shape_cast %174 : vector<8xf32> to vector<8x1xf32>
    %cst_81 = arith.constant 3.200000e+01 : f32
    %176 = vector.broadcast %cst_81 : f32 to vector<8x1xf32>
    %177 = arith.divf %175, %176 : vector<8x1xf32>
    %cst_82 = arith.constant 9.99999974E-6 : f32
    %178 = vector.broadcast %cst_82 : f32 to vector<8x1xf32>
    %179 = arith.addf %177, %178 : vector<8x1xf32>
    %180 = math.rsqrt %179 : vector<8x1xf32>
    %181 = vector.broadcast %180 : vector<8x1xf32> to vector<8x32xf32>
    %182 = arith.mulf %172, %181 : vector<8x32xf32>
    %183 = vector.broadcast %12 : vector<1x32xf32> to vector<8x32xf32>
    %184 = arith.mulf %182, %183 : vector<8x32xf32>
    %185 = vector.broadcast %14 : vector<1x32xf32> to vector<8x32xf32>
    %186 = arith.addf %184, %185 : vector<8x32xf32>
    %cst_83 = arith.constant dense<0.000000e+00> : vector<8x64xf32>
    %187 = tpu.matmul %186, %16, %cst_83 {dimension_numbers = #tpu.dot_dimension_numbers<[1], [0], [0], [1], [0, 0, 1, 1], [], []>} : vector<8x32xf32>, vector<32x64xf32>, vector<8x64xf32> -> vector<8x64xf32>
    %188 = vector.broadcast %18 : vector<1x64xf32> to vector<8x64xf32>
    %189 = arith.addf %187, %188 : vector<8x64xf32>
    %cst_84 = arith.constant 0.000000e+00 : f32
    %190 = vector.broadcast %cst_84 : f32 to vector<8x64xf32>
    %191 = arith.maximumf %189, %190 : vector<8x64xf32>
    %cst_85 = arith.constant dense<0.000000e+00> : vector<8x32xf32>
    %192 = tpu.matmul %191, %20, %cst_85 {dimension_numbers = #tpu.dot_dimension_numbers<[1], [0], [0], [1], [0, 0, 1, 1], [], []>} : vector<8x64xf32>, vector<64x32xf32>, vector<8x32xf32> -> vector<8x32xf32>
    %193 = vector.broadcast %22 : vector<1x32xf32> to vector<8x32xf32>
    %194 = arith.addf %192, %193 : vector<8x32xf32>
    %195 = arith.addf %186, %194 : vector<8x32xf32>
    %cst_86 = arith.constant dense<0.000000e+00> : vector<8xf32>
    %196 = vector.multi_reduction <add>, %195, %cst_86 [1] : vector<8x32xf32> to vector<8xf32>
    %197 = vector.shape_cast %196 : vector<8xf32> to vector<8x1xf32>
    %cst_87 = arith.constant 3.200000e+01 : f32
    %198 = vector.broadcast %cst_87 : f32 to vector<8x1xf32>
    %199 = arith.divf %197, %198 : vector<8x1xf32>
    %200 = vector.broadcast %199 : vector<8x1xf32> to vector<8x32xf32>
    %201 = arith.subf %195, %200 : vector<8x32xf32>
    %202 = arith.mulf %201, %201 : vector<8x32xf32>
    %cst_88 = arith.constant dense<0.000000e+00> : vector<8xf32>
    %203 = vector.multi_reduction <add>, %202, %cst_88 [1] : vector<8x32xf32> to vector<8xf32>
    %204 = vector.shape_cast %203 : vector<8xf32> to vector<8x1xf32>
    %cst_89 = arith.constant 3.200000e+01 : f32
    %205 = vector.broadcast %cst_89 : f32 to vector<8x1xf32>
    %206 = arith.divf %204, %205 : vector<8x1xf32>
    %cst_90 = arith.constant 9.99999974E-6 : f32
    %207 = vector.broadcast %cst_90 : f32 to vector<8x1xf32>
    %208 = arith.addf %206, %207 : vector<8x1xf32>
    %209 = math.rsqrt %208 : vector<8x1xf32>
    %210 = vector.broadcast %209 : vector<8x1xf32> to vector<8x32xf32>
    %211 = arith.mulf %201, %210 : vector<8x32xf32>
    %212 = vector.broadcast %24 : vector<1x32xf32> to vector<8x32xf32>
    %213 = arith.mulf %211, %212 : vector<8x32xf32>
    %214 = vector.broadcast %26 : vector<1x32xf32> to vector<8x32xf32>
    %215 = arith.addf %213, %214 : vector<8x32xf32>
    %c1_91 = arith.constant 1 : index
    %c0_92 = arith.constant 0 : index
    %c0_93 = arith.constant 0 : index
    %216 = vector.load %arg17[%c1_91, %c0_92, %c0_93] : memref<2x8x32xf32, #tpu.memory_space<vmem>>, vector<1x8x32xf32>
    %217 = vector.shape_cast %216 : vector<1x8x32xf32> to vector<8x32xf32>
    %218 = vector.shape_cast %215 : vector<8x32xf32> to vector<1x8x32xf32>
    tpu.vector_store %arg17[%c1_91, %c0_92, %c0_93], %218 {strides = array<i32>} : memref<2x8x32xf32, #tpu.memory_space<vmem>>, vector<1x8x32xf32>,
    return
  }
  func.func @transform_0(%arg0: i32) -> (i32, i32, i32) {
    %c0_i32 = arith.constant 0 : i32
    %c0_i32_0 = arith.constant 0 : i32
    %c0_i32_1 = arith.constant 0 : i32
    %c0_i32_2 = arith.constant 0 : i32
    return %c0_i32, %c0_i32_0, %c0_i32_1 : i32, i32, i32
  }
  func.func @transform_1(%arg0: i32) -> (i32, i32, i32) {
    %c0_i32 = arith.constant 0 : i32
    %c0_i32_0 = arith.constant 0 : i32
    %c0_i32_1 = arith.constant 0 : i32
    %c0_i32_2 = arith.constant 0 : i32
    return %c0_i32, %c0_i32_0, %c0_i32_1 : i32, i32, i32
  }
  func.func @transform_2(%arg0: i32) -> (i32, i32) {
    %c0_i32 = arith.constant 0 : i32
    %c0_i32_0 = arith.constant 0 : i32
    %c0_i32_1 = arith.constant 0 : i32
    return %c0_i32, %c0_i32_0 : i32, i32
  }
  func.func @transform_3(%arg0: i32) -> (i32, i32) {
    %c0_i32 = arith.constant 0 : i32
    %c0_i32_0 = arith.constant 0 : i32
    %c0_i32_1 = arith.constant 0 : i32
    return %c0_i32, %c0_i32_0 : i32, i32
  }
  func.func @transform_4(%arg0: i32) -> (i32, i32, i32) {
    %c0_i32 = arith.constant 0 : i32
    %c0_i32_0 = arith.constant 0 : i32
    %c0_i32_1 = arith.constant 0 : i32
    return %arg0, %c0_i32, %c0_i32_0 : i32, i32, i32
  }
  func.func @transform_5(%arg0: i32) -> (i32, i32, i32) {
    %c0_i32 = arith.constant 0 : i32
    %c0_i32_0 = arith.constant 0 : i32
    %c0_i32_1 = arith.constant 0 : i32
    return %arg0, %c0_i32, %c0_i32_0 : i32, i32, i32
  }
  func.func @transform_6(%arg0: i32) -> (i32, i32, i32) {
    %c0_i32 = arith.constant 0 : i32
    %c0_i32_0 = arith.constant 0 : i32
    %c0_i32_1 = arith.constant 0 : i32
    return %arg0, %c0_i32, %c0_i32_0 : i32, i32, i32
  }
  func.func @transform_7(%arg0: i32) -> (i32, i32, i32) {
    %c0_i32 = arith.constant 0 : i32
    %c0_i32_0 = arith.constant 0 : i32
    %c0_i32_1 = arith.constant 0 : i32
    return %arg0, %c0_i32, %c0_i32_0 : i32, i32, i32
  }
  func.func @transform_8(%arg0: i32) -> (i32, i32, i32) {
    %c0_i32 = arith.constant 0 : i32
    %c0_i32_0 = arith.constant 0 : i32
    %c0_i32_1 = arith.constant 0 : i32
    return %arg0, %c0_i32, %c0_i32_0 : i32, i32, i32
  }
  func.func @transform_9(%arg0: i32) -> (i32, i32, i32) {
    %c0_i32 = arith.constant 0 : i32
    %c0_i32_0 = arith.constant 0 : i32
    %c0_i32_1 = arith.constant 0 : i32
    return %arg0, %c0_i32, %c0_i32_0 : i32, i32, i32
  }
  func.func @transform_10(%arg0: i32) -> (i32, i32, i32) {
    %c0_i32 = arith.constant 0 : i32
    %c0_i32_0 = arith.constant 0 : i32
    %c0_i32_1 = arith.constant 0 : i32
    return %arg0, %c0_i32, %c0_i32_0 : i32, i32, i32
  }
  func.func @transform_11(%arg0: i32) -> (i32, i32, i32) {
    %c0_i32 = arith.constant 0 : i32
    %c0_i32_0 = arith.constant 0 : i32
    %c0_i32_1 = arith.constant 0 : i32
    return %arg0, %c0_i32, %c0_i32_0 : i32, i32, i32
  }
  func.func @transform_12(%arg0: i32) -> (i32, i32, i32) {
    %c0_i32 = arith.constant 0 : i32
    %c0_i32_0 = arith.constant 0 : i32
    %c0_i32_1 = arith.constant 0 : i32
    return %arg0, %c0_i32, %c0_i32_0 : i32, i32, i32
  }
  func.func @transform_13(%arg0: i32) -> (i32, i32, i32) {
    %c0_i32 = arith.constant 0 : i32
    %c0_i32_0 = arith.constant 0 : i32
    %c0_i32_1 = arith.constant 0 : i32
    return %arg0, %c0_i32, %c0_i32_0 : i32, i32, i32
  }
  func.func @transform_14(%arg0: i32) -> (i32, i32, i32) {
    %c0_i32 = arith.constant 0 : i32
    %c0_i32_0 = arith.constant 0 : i32
    %c0_i32_1 = arith.constant 0 : i32
    return %arg0, %c0_i32, %c0_i32_0 : i32, i32, i32
  }
  func.func @transform_15(%arg0: i32) -> (i32, i32, i32) {
    %c0_i32 = arith.constant 0 : i32
    %c0_i32_0 = arith.constant 0 : i32
    %c0_i32_1 = arith.constant 0 : i32
    return %arg0, %c0_i32, %c0_i32_0 : i32, i32, i32
  }
  func.func @transform_16(%arg0: i32) -> (i32, i32, i32) {
    %c0_i32 = arith.constant 0 : i32
    %c0_i32_0 = arith.constant 0 : i32
    %c0_i32_1 = arith.constant 0 : i32
    %c0_i32_2 = arith.constant 0 : i32
    return %c0_i32, %c0_i32_0, %c0_i32_1 : i32, i32, i32
  }
}

module attributes {stable_mosaic.version = 11 : i64} {
  func.func @_decoder_stack_kernel(%arg0: i32, %arg1: memref<2x6x1xf32, #tpu.memory_space<vmem>>, %arg2: memref<2x8x32xf32, #tpu.memory_space<vmem>>, %arg3: memref<1x32xf32, #tpu.memory_space<vmem>>, %arg4: memref<1x32xf32, #tpu.memory_space<vmem>>, %arg5: memref<32x1xf32, #tpu.memory_space<vmem>>, %arg6: memref<1x1xf32, #tpu.memory_space<vmem>>, %arg7: memref<1x32x96xf32, #tpu.memory_space<vmem>>, %arg8: memref<1x1x96xf32, #tpu.memory_space<vmem>>, %arg9: memref<1x32x32xf32, #tpu.memory_space<vmem>>, %arg10: memref<1x1x32xf32, #tpu.memory_space<vmem>>, %arg11: memref<1x1x32xf32, #tpu.memory_space<vmem>>, %arg12: memref<1x1x32xf32, #tpu.memory_space<vmem>>, %arg13: memref<1x32x32xf32, #tpu.memory_space<vmem>>, %arg14: memref<1x1x32xf32, #tpu.memory_space<vmem>>, %arg15: memref<1x32x64xf32, #tpu.memory_space<vmem>>, %arg16: memref<1x1x64xf32, #tpu.memory_space<vmem>>, %arg17: memref<1x32x32xf32, #tpu.memory_space<vmem>>, %arg18: memref<1x1x32xf32, #tpu.memory_space<vmem>>, %arg19: memref<1x1x32xf32, #tpu.memory_space<vmem>>, %arg20: memref<1x1x32xf32, #tpu.memory_space<vmem>>, %arg21: memref<1x32x64xf32, #tpu.memory_space<vmem>>, %arg22: memref<1x1x64xf32, #tpu.memory_space<vmem>>, %arg23: memref<1x64x32xf32, #tpu.memory_space<vmem>>, %arg24: memref<1x1x32xf32, #tpu.memory_space<vmem>>, %arg25: memref<1x1x32xf32, #tpu.memory_space<vmem>>, %arg26: memref<1x1x32xf32, #tpu.memory_space<vmem>>, %arg27: memref<2x6x1xf32, #tpu.memory_space<vmem>>, %arg28: memref<2x6x32xf32, #tpu.memory_space<vmem>>) attributes {dimension_semantics = [#tpu.dimension_semantics<arbitrary>], iteration_bounds = array<i64: 2>, scalar_prefetch = 0 : i64, scratch_operands = 1 : i64, tpu.core_type = #tpu.core_type<tc>, window_params = [{pipeline_mode = #tpu.pipeline_mode<synchronous>, transform_indices = @transform_0, window_bounds = array<i64: 2, 6, 1>}, {pipeline_mode = #tpu.pipeline_mode<synchronous>, transform_indices = @transform_1, window_bounds = array<i64: 2, 8, 32>}, {pipeline_mode = #tpu.pipeline_mode<synchronous>, transform_indices = @transform_2, window_bounds = array<i64: 1, 32>}, {pipeline_mode = #tpu.pipeline_mode<synchronous>, transform_indices = @transform_3, window_bounds = array<i64: 1, 32>}, {pipeline_mode = #tpu.pipeline_mode<synchronous>, transform_indices = @transform_4, window_bounds = array<i64: 32, 1>}, {pipeline_mode = #tpu.pipeline_mode<synchronous>, transform_indices = @transform_5, window_bounds = array<i64: 1, 1>}, {transform_indices = @transform_6, window_bounds = array<i64: 1, 32, 96>}, {transform_indices = @transform_7, window_bounds = array<i64: 1, 1, 96>}, {transform_indices = @transform_8, window_bounds = array<i64: 1, 32, 32>}, {transform_indices = @transform_9, window_bounds = array<i64: 1, 1, 32>}, {transform_indices = @transform_10, window_bounds = array<i64: 1, 1, 32>}, {transform_indices = @transform_11, window_bounds = array<i64: 1, 1, 32>}, {transform_indices = @transform_12, window_bounds = array<i64: 1, 32, 32>}, {transform_indices = @transform_13, window_bounds = array<i64: 1, 1, 32>}, {transform_indices = @transform_14, window_bounds = array<i64: 1, 32, 64>}, {transform_indices = @transform_15, window_bounds = array<i64: 1, 1, 64>}, {transform_indices = @transform_16, window_bounds = array<i64: 1, 32, 32>}, {transform_indices = @transform_17, window_bounds = array<i64: 1, 1, 32>}, {transform_indices = @transform_18, window_bounds = array<i64: 1, 1, 32>}, {transform_indices = @transform_19, window_bounds = array<i64: 1, 1, 32>}, {transform_indices = @transform_20, window_bounds = array<i64: 1, 32, 64>}, {transform_indices = @transform_21, window_bounds = array<i64: 1, 1, 64>}, {transform_indices = @transform_22, window_bounds = array<i64: 1, 64, 32>}, {transform_indices = @transform_23, window_bounds = array<i64: 1, 1, 32>}, {transform_indices = @transform_24, window_bounds = array<i64: 1, 1, 32>}, {transform_indices = @transform_25, window_bounds = array<i64: 1, 1, 32>}, {pipeline_mode = #tpu.pipeline_mode<synchronous>, transform_indices = @transform_26, window_bounds = array<i64: 2, 6, 1>}]} {
    %c0_i32 = arith.constant 0 : i32
    %0 = arith.cmpi eq, %arg0, %c0_i32 : i32
    %1 = arith.extui %0 : i1 to i32
    %c0_i32_0 = arith.constant 0 : i32
    %2 = arith.cmpi ne, %1, %c0_i32_0 : i32
    scf.if %2 {
      %c0_161 = arith.constant 0 : index
      %c0_162 = arith.constant 0 : index
      %373 = vector.load %arg3[%c0_161, %c0_162] : memref<1x32xf32, #tpu.memory_space<vmem>>, vector<1x32xf32>
      %c0_163 = arith.constant 0 : index
      %c0_164 = arith.constant 0 : index
      %374 = vector.load %arg4[%c0_163, %c0_164] : memref<1x32xf32, #tpu.memory_space<vmem>>, vector<1x32xf32>
      %c0_165 = arith.constant 0 : index
      %c0_166 = arith.constant 0 : index
      %c0_167 = arith.constant 0 : index
      %375 = vector.load %arg1[%c0_165, %c0_166, %c0_167] : memref<2x6x1xf32, #tpu.memory_space<vmem>>, vector<1x6x1xf32>
      %376 = vector.shape_cast %375 : vector<1x6x1xf32> to vector<6x1xf32>
      %cst_168 = arith.constant dense<0.000000e+00> : vector<6x32xf32>
      %377 = tpu.matmul %376, %373, %cst_168 {dimension_numbers = #tpu.dot_dimension_numbers<[1], [0], [0], [1], [0, 0, 1, 1], [], []>} : vector<6x1xf32>, vector<1x32xf32>, vector<6x32xf32> -> vector<6x32xf32>
      %378 = vector.broadcast %374 : vector<1x32xf32> to vector<6x32xf32>
      %379 = arith.addf %377, %378 : vector<6x32xf32>
      %c0_169 = arith.constant 0 : index
      %c0_170 = arith.constant 0 : index
      %c0_171 = arith.constant 0 : index
      %380 = vector.load %arg28[%c0_169, %c0_170, %c0_171] : memref<2x6x32xf32, #tpu.memory_space<vmem>>, vector<1x6x32xf32>
      %381 = vector.shape_cast %380 : vector<1x6x32xf32> to vector<6x32xf32>
      %382 = vector.shape_cast %379 : vector<6x32xf32> to vector<1x6x32xf32>
      tpu.vector_store %arg28[%c0_169, %c0_170, %c0_171], %382 {strides = array<i32>} : memref<2x6x32xf32, #tpu.memory_space<vmem>>, vector<1x6x32xf32>,
      %c1_172 = arith.constant 1 : index
      %c0_173 = arith.constant 0 : index
      %c0_174 = arith.constant 0 : index
      %383 = vector.load %arg1[%c1_172, %c0_173, %c0_174] : memref<2x6x1xf32, #tpu.memory_space<vmem>>, vector<1x6x1xf32>
      %384 = vector.shape_cast %383 : vector<1x6x1xf32> to vector<6x1xf32>
      %cst_175 = arith.constant dense<0.000000e+00> : vector<6x32xf32>
      %385 = tpu.matmul %384, %373, %cst_175 {dimension_numbers = #tpu.dot_dimension_numbers<[1], [0], [0], [1], [0, 0, 1, 1], [], []>} : vector<6x1xf32>, vector<1x32xf32>, vector<6x32xf32> -> vector<6x32xf32>
      %386 = vector.broadcast %374 : vector<1x32xf32> to vector<6x32xf32>
      %387 = arith.addf %385, %386 : vector<6x32xf32>
      %c1_176 = arith.constant 1 : index
      %c0_177 = arith.constant 0 : index
      %c0_178 = arith.constant 0 : index
      %388 = vector.load %arg28[%c1_176, %c0_177, %c0_178] : memref<2x6x32xf32, #tpu.memory_space<vmem>>, vector<1x6x32xf32>
      %389 = vector.shape_cast %388 : vector<1x6x32xf32> to vector<6x32xf32>
      %390 = vector.shape_cast %387 : vector<6x32xf32> to vector<1x6x32xf32>
      tpu.vector_store %arg28[%c1_176, %c0_177, %c0_178], %390 {strides = array<i32>} : memref<2x6x32xf32, #tpu.memory_space<vmem>>, vector<1x6x32xf32>,
    } else {
    }
    %c0 = arith.constant 0 : index
    %c0_1 = arith.constant 0 : index
    %c0_2 = arith.constant 0 : index
    %3 = vector.load %arg7[%c0, %c0_1, %c0_2] : memref<1x32x96xf32, #tpu.memory_space<vmem>>, vector<1x32x96xf32>
    %4 = vector.shape_cast %3 : vector<1x32x96xf32> to vector<32x96xf32>
    %c0_3 = arith.constant 0 : index
    %c0_4 = arith.constant 0 : index
    %c0_5 = arith.constant 0 : index
    %5 = vector.load %arg8[%c0_3, %c0_4, %c0_5] : memref<1x1x96xf32, #tpu.memory_space<vmem>>, vector<1x1x96xf32>
    %6 = vector.shape_cast %5 : vector<1x1x96xf32> to vector<1x96xf32>
    %c0_6 = arith.constant 0 : index
    %c0_7 = arith.constant 0 : index
    %c0_8 = arith.constant 0 : index
    %7 = vector.load %arg9[%c0_6, %c0_7, %c0_8] : memref<1x32x32xf32, #tpu.memory_space<vmem>>, vector<1x32x32xf32>
    %8 = vector.shape_cast %7 : vector<1x32x32xf32> to vector<32x32xf32>
    %c0_9 = arith.constant 0 : index
    %c0_10 = arith.constant 0 : index
    %c0_11 = arith.constant 0 : index
    %9 = vector.load %arg10[%c0_9, %c0_10, %c0_11] : memref<1x1x32xf32, #tpu.memory_space<vmem>>, vector<1x1x32xf32>
    %10 = vector.shape_cast %9 : vector<1x1x32xf32> to vector<1x32xf32>
    %c0_12 = arith.constant 0 : index
    %c0_13 = arith.constant 0 : index
    %c0_14 = arith.constant 0 : index
    %11 = vector.load %arg11[%c0_12, %c0_13, %c0_14] : memref<1x1x32xf32, #tpu.memory_space<vmem>>, vector<1x1x32xf32>
    %12 = vector.shape_cast %11 : vector<1x1x32xf32> to vector<1x32xf32>
    %c0_15 = arith.constant 0 : index
    %c0_16 = arith.constant 0 : index
    %c0_17 = arith.constant 0 : index
    %13 = vector.load %arg12[%c0_15, %c0_16, %c0_17] : memref<1x1x32xf32, #tpu.memory_space<vmem>>, vector<1x1x32xf32>
    %14 = vector.shape_cast %13 : vector<1x1x32xf32> to vector<1x32xf32>
    %c0_18 = arith.constant 0 : index
    %c0_19 = arith.constant 0 : index
    %c0_20 = arith.constant 0 : index
    %15 = vector.load %arg13[%c0_18, %c0_19, %c0_20] : memref<1x32x32xf32, #tpu.memory_space<vmem>>, vector<1x32x32xf32>
    %16 = vector.shape_cast %15 : vector<1x32x32xf32> to vector<32x32xf32>
    %c0_21 = arith.constant 0 : index
    %c0_22 = arith.constant 0 : index
    %c0_23 = arith.constant 0 : index
    %17 = vector.load %arg14[%c0_21, %c0_22, %c0_23] : memref<1x1x32xf32, #tpu.memory_space<vmem>>, vector<1x1x32xf32>
    %18 = vector.shape_cast %17 : vector<1x1x32xf32> to vector<1x32xf32>
    %c0_24 = arith.constant 0 : index
    %c0_25 = arith.constant 0 : index
    %c0_26 = arith.constant 0 : index
    %19 = vector.load %arg15[%c0_24, %c0_25, %c0_26] : memref<1x32x64xf32, #tpu.memory_space<vmem>>, vector<1x32x64xf32>
    %20 = vector.shape_cast %19 : vector<1x32x64xf32> to vector<32x64xf32>
    %c0_27 = arith.constant 0 : index
    %c0_28 = arith.constant 0 : index
    %c0_29 = arith.constant 0 : index
    %21 = vector.load %arg16[%c0_27, %c0_28, %c0_29] : memref<1x1x64xf32, #tpu.memory_space<vmem>>, vector<1x1x64xf32>
    %22 = vector.shape_cast %21 : vector<1x1x64xf32> to vector<1x64xf32>
    %c0_30 = arith.constant 0 : index
    %c0_31 = arith.constant 0 : index
    %c0_32 = arith.constant 0 : index
    %23 = vector.load %arg17[%c0_30, %c0_31, %c0_32] : memref<1x32x32xf32, #tpu.memory_space<vmem>>, vector<1x32x32xf32>
    %24 = vector.shape_cast %23 : vector<1x32x32xf32> to vector<32x32xf32>
    %c0_33 = arith.constant 0 : index
    %c0_34 = arith.constant 0 : index
    %c0_35 = arith.constant 0 : index
    %25 = vector.load %arg18[%c0_33, %c0_34, %c0_35] : memref<1x1x32xf32, #tpu.memory_space<vmem>>, vector<1x1x32xf32>
    %26 = vector.shape_cast %25 : vector<1x1x32xf32> to vector<1x32xf32>
    %c0_36 = arith.constant 0 : index
    %c0_37 = arith.constant 0 : index
    %c0_38 = arith.constant 0 : index
    %27 = vector.load %arg19[%c0_36, %c0_37, %c0_38] : memref<1x1x32xf32, #tpu.memory_space<vmem>>, vector<1x1x32xf32>
    %28 = vector.shape_cast %27 : vector<1x1x32xf32> to vector<1x32xf32>
    %c0_39 = arith.constant 0 : index
    %c0_40 = arith.constant 0 : index
    %c0_41 = arith.constant 0 : index
    %29 = vector.load %arg20[%c0_39, %c0_40, %c0_41] : memref<1x1x32xf32, #tpu.memory_space<vmem>>, vector<1x1x32xf32>
    %30 = vector.shape_cast %29 : vector<1x1x32xf32> to vector<1x32xf32>
    %c0_42 = arith.constant 0 : index
    %c0_43 = arith.constant 0 : index
    %c0_44 = arith.constant 0 : index
    %31 = vector.load %arg21[%c0_42, %c0_43, %c0_44] : memref<1x32x64xf32, #tpu.memory_space<vmem>>, vector<1x32x64xf32>
    %32 = vector.shape_cast %31 : vector<1x32x64xf32> to vector<32x64xf32>
    %c0_45 = arith.constant 0 : index
    %c0_46 = arith.constant 0 : index
    %c0_47 = arith.constant 0 : index
    %33 = vector.load %arg22[%c0_45, %c0_46, %c0_47] : memref<1x1x64xf32, #tpu.memory_space<vmem>>, vector<1x1x64xf32>
    %34 = vector.shape_cast %33 : vector<1x1x64xf32> to vector<1x64xf32>
    %c0_48 = arith.constant 0 : index
    %c0_49 = arith.constant 0 : index
    %c0_50 = arith.constant 0 : index
    %35 = vector.load %arg23[%c0_48, %c0_49, %c0_50] : memref<1x64x32xf32, #tpu.memory_space<vmem>>, vector<1x64x32xf32>
    %36 = vector.shape_cast %35 : vector<1x64x32xf32> to vector<64x32xf32>
    %c0_51 = arith.constant 0 : index
    %c0_52 = arith.constant 0 : index
    %c0_53 = arith.constant 0 : index
    %37 = vector.load %arg24[%c0_51, %c0_52, %c0_53] : memref<1x1x32xf32, #tpu.memory_space<vmem>>, vector<1x1x32xf32>
    %38 = vector.shape_cast %37 : vector<1x1x32xf32> to vector<1x32xf32>
    %c0_54 = arith.constant 0 : index
    %c0_55 = arith.constant 0 : index
    %c0_56 = arith.constant 0 : index
    %39 = vector.load %arg25[%c0_54, %c0_55, %c0_56] : memref<1x1x32xf32, #tpu.memory_space<vmem>>, vector<1x1x32xf32>
    %40 = vector.shape_cast %39 : vector<1x1x32xf32> to vector<1x32xf32>
    %c0_57 = arith.constant 0 : index
    %c0_58 = arith.constant 0 : index
    %c0_59 = arith.constant 0 : index
    %41 = vector.load %arg26[%c0_57, %c0_58, %c0_59] : memref<1x1x32xf32, #tpu.memory_space<vmem>>, vector<1x1x32xf32>
    %42 = vector.shape_cast %41 : vector<1x1x32xf32> to vector<1x32xf32>
    %c0_60 = arith.constant 0 : index
    %c0_61 = arith.constant 0 : index
    %c0_62 = arith.constant 0 : index
    %43 = vector.load %arg28[%c0_60, %c0_61, %c0_62] : memref<2x6x32xf32, #tpu.memory_space<vmem>>, vector<1x6x32xf32>
    %44 = vector.shape_cast %43 : vector<1x6x32xf32> to vector<6x32xf32>
    %c0_63 = arith.constant 0 : index
    %c0_64 = arith.constant 0 : index
    %c0_65 = arith.constant 0 : index
    %45 = vector.load %arg2[%c0_63, %c0_64, %c0_65] : memref<2x8x32xf32, #tpu.memory_space<vmem>>, vector<1x8x32xf32>
    %46 = vector.shape_cast %45 : vector<1x8x32xf32> to vector<8x32xf32>
    %cst = arith.constant dense<0.000000e+00> : vector<6x96xf32>
    %47 = tpu.matmul %44, %4, %cst {dimension_numbers = #tpu.dot_dimension_numbers<[1], [0], [0], [1], [0, 0, 1, 1], [], []>} : vector<6x32xf32>, vector<32x96xf32>, vector<6x96xf32> -> vector<6x96xf32>
    %48 = vector.broadcast %6 : vector<1x96xf32> to vector<6x96xf32>
    %49 = arith.addf %47, %48 : vector<6x96xf32>
    %50 = vector.extract_strided_slice %49 {offsets = [0, 0], sizes = [6, 32], strides = [1, 1]} : vector<6x96xf32> to vector<6x32xf32>
    %51 = vector.extract_strided_slice %49 {offsets = [0, 32], sizes = [6, 32], strides = [1, 1]} : vector<6x96xf32> to vector<6x32xf32>
    %52 = vector.extract_strided_slice %49 {offsets = [0, 64], sizes = [6, 32], strides = [1, 1]} : vector<6x96xf32> to vector<6x32xf32>
    %53 = vector.extract_strided_slice %50 {offsets = [0, 0], sizes = [6, 16], strides = [1, 1]} : vector<6x32xf32> to vector<6x16xf32>
    %54 = vector.extract_strided_slice %51 {offsets = [0, 0], sizes = [6, 16], strides = [1, 1]} : vector<6x32xf32> to vector<6x16xf32>
    %cst_66 = arith.constant dense<0.000000e+00> : vector<6x6xf32>
    %55 = tpu.matmul %53, %54, %cst_66 {dimension_numbers = #tpu.dot_dimension_numbers<[1], [1], [0], [0], [0, 0, 1, 0], [], []>} : vector<6x16xf32>, vector<6x16xf32>, vector<6x6xf32> -> vector<6x6xf32>
    %cst_67 = arith.constant dense<0xFF800000> : vector<6xf32>
    %56 = vector.multi_reduction <maximumf>, %55, %cst_67 [1] : vector<6x6xf32> to vector<6xf32>
    %57 = vector.shape_cast %56 : vector<6xf32> to vector<6x1xf32>
    %58 = vector.broadcast %57 : vector<6x1xf32> to vector<6x6xf32>
    %59 = arith.subf %55, %58 : vector<6x6xf32>
    %60 = math.exp %59 : vector<6x6xf32>
    %cst_68 = arith.constant dense<0.000000e+00> : vector<6xf32>
    %61 = vector.multi_reduction <add>, %60, %cst_68 [1] : vector<6x6xf32> to vector<6xf32>
    %62 = vector.shape_cast %61 : vector<6xf32> to vector<6x1xf32>
    %63 = vector.broadcast %62 : vector<6x1xf32> to vector<6x6xf32>
    %64 = arith.divf %60, %63 : vector<6x6xf32>
    %65 = vector.extract_strided_slice %52 {offsets = [0, 0], sizes = [6, 16], strides = [1, 1]} : vector<6x32xf32> to vector<6x16xf32>
    %cst_69 = arith.constant dense<0.000000e+00> : vector<6x16xf32>
    %66 = tpu.matmul %64, %65, %cst_69 {dimension_numbers = #tpu.dot_dimension_numbers<[1], [0], [0], [1], [0, 0, 1, 1], [], []>} : vector<6x6xf32>, vector<6x16xf32>, vector<6x16xf32> -> vector<6x16xf32>
    %67 = vector.extract_strided_slice %8 {offsets = [0, 0], sizes = [16, 32], strides = [1, 1]} : vector<32x32xf32> to vector<16x32xf32>
    %cst_70 = arith.constant dense<0.000000e+00> : vector<6x32xf32>
    %68 = tpu.matmul %66, %67, %cst_70 {dimension_numbers = #tpu.dot_dimension_numbers<[1], [0], [0], [1], [0, 0, 1, 1], [], []>} : vector<6x16xf32>, vector<16x32xf32>, vector<6x32xf32> -> vector<6x32xf32>
    %69 = vector.extract_strided_slice %50 {offsets = [0, 16], sizes = [6, 16], strides = [1, 1]} : vector<6x32xf32> to vector<6x16xf32>
    %70 = vector.extract_strided_slice %51 {offsets = [0, 16], sizes = [6, 16], strides = [1, 1]} : vector<6x32xf32> to vector<6x16xf32>
    %cst_71 = arith.constant dense<0.000000e+00> : vector<6x6xf32>
    %71 = tpu.matmul %69, %70, %cst_71 {dimension_numbers = #tpu.dot_dimension_numbers<[1], [1], [0], [0], [0, 0, 1, 0], [], []>} : vector<6x16xf32>, vector<6x16xf32>, vector<6x6xf32> -> vector<6x6xf32>
    %cst_72 = arith.constant dense<0xFF800000> : vector<6xf32>
    %72 = vector.multi_reduction <maximumf>, %71, %cst_72 [1] : vector<6x6xf32> to vector<6xf32>
    %73 = vector.shape_cast %72 : vector<6xf32> to vector<6x1xf32>
    %74 = vector.broadcast %73 : vector<6x1xf32> to vector<6x6xf32>
    %75 = arith.subf %71, %74 : vector<6x6xf32>
    %76 = math.exp %75 : vector<6x6xf32>
    %cst_73 = arith.constant dense<0.000000e+00> : vector<6xf32>
    %77 = vector.multi_reduction <add>, %76, %cst_73 [1] : vector<6x6xf32> to vector<6xf32>
    %78 = vector.shape_cast %77 : vector<6xf32> to vector<6x1xf32>
    %79 = vector.broadcast %78 : vector<6x1xf32> to vector<6x6xf32>
    %80 = arith.divf %76, %79 : vector<6x6xf32>
    %81 = vector.extract_strided_slice %52 {offsets = [0, 16], sizes = [6, 16], strides = [1, 1]} : vector<6x32xf32> to vector<6x16xf32>
    %cst_74 = arith.constant dense<0.000000e+00> : vector<6x16xf32>
    %82 = tpu.matmul %80, %81, %cst_74 {dimension_numbers = #tpu.dot_dimension_numbers<[1], [0], [0], [1], [0, 0, 1, 1], [], []>} : vector<6x6xf32>, vector<6x16xf32>, vector<6x16xf32> -> vector<6x16xf32>
    %83 = vector.extract_strided_slice %8 {offsets = [16, 0], sizes = [16, 32], strides = [1, 1]} : vector<32x32xf32> to vector<16x32xf32>
    %cst_75 = arith.constant dense<0.000000e+00> : vector<6x32xf32>
    %84 = tpu.matmul %82, %83, %cst_75 {dimension_numbers = #tpu.dot_dimension_numbers<[1], [0], [0], [1], [0, 0, 1, 1], [], []>} : vector<6x16xf32>, vector<16x32xf32>, vector<6x32xf32> -> vector<6x32xf32>
    %85 = arith.addf %68, %84 : vector<6x32xf32>
    %86 = vector.broadcast %10 : vector<1x32xf32> to vector<6x32xf32>
    %87 = arith.addf %85, %86 : vector<6x32xf32>
    %88 = arith.addf %44, %87 : vector<6x32xf32>
    %cst_76 = arith.constant dense<0.000000e+00> : vector<6xf32>
    %89 = vector.multi_reduction <add>, %88, %cst_76 [1] : vector<6x32xf32> to vector<6xf32>
    %90 = vector.shape_cast %89 : vector<6xf32> to vector<6x1xf32>
    %cst_77 = arith.constant 3.200000e+01 : f32
    %91 = vector.broadcast %cst_77 : f32 to vector<6x1xf32>
    %92 = arith.divf %90, %91 : vector<6x1xf32>
    %93 = vector.broadcast %92 : vector<6x1xf32> to vector<6x32xf32>
    %94 = arith.subf %88, %93 : vector<6x32xf32>
    %95 = arith.mulf %94, %94 : vector<6x32xf32>
    %cst_78 = arith.constant dense<0.000000e+00> : vector<6xf32>
    %96 = vector.multi_reduction <add>, %95, %cst_78 [1] : vector<6x32xf32> to vector<6xf32>
    %97 = vector.shape_cast %96 : vector<6xf32> to vector<6x1xf32>
    %cst_79 = arith.constant 3.200000e+01 : f32
    %98 = vector.broadcast %cst_79 : f32 to vector<6x1xf32>
    %99 = arith.divf %97, %98 : vector<6x1xf32>
    %cst_80 = arith.constant 9.99999974E-6 : f32
    %100 = vector.broadcast %cst_80 : f32 to vector<6x1xf32>
    %101 = arith.addf %99, %100 : vector<6x1xf32>
    %102 = math.rsqrt %101 : vector<6x1xf32>
    %103 = vector.broadcast %102 : vector<6x1xf32> to vector<6x32xf32>
    %104 = arith.mulf %94, %103 : vector<6x32xf32>
    %105 = vector.broadcast %12 : vector<1x32xf32> to vector<6x32xf32>
    %106 = arith.mulf %104, %105 : vector<6x32xf32>
    %107 = vector.broadcast %14 : vector<1x32xf32> to vector<6x32xf32>
    %108 = arith.addf %106, %107 : vector<6x32xf32>
    %cst_81 = arith.constant dense<0.000000e+00> : vector<6x32xf32>
    %109 = tpu.matmul %108, %16, %cst_81 {dimension_numbers = #tpu.dot_dimension_numbers<[1], [0], [0], [1], [0, 0, 1, 1], [], []>} : vector<6x32xf32>, vector<32x32xf32>, vector<6x32xf32> -> vector<6x32xf32>
    %110 = vector.broadcast %18 : vector<1x32xf32> to vector<6x32xf32>
    %111 = arith.addf %109, %110 : vector<6x32xf32>
    %cst_82 = arith.constant dense<0.000000e+00> : vector<8x64xf32>
    %112 = tpu.matmul %46, %20, %cst_82 {dimension_numbers = #tpu.dot_dimension_numbers<[1], [0], [0], [1], [0, 0, 1, 1], [], []>} : vector<8x32xf32>, vector<32x64xf32>, vector<8x64xf32> -> vector<8x64xf32>
    %113 = vector.broadcast %22 : vector<1x64xf32> to vector<8x64xf32>
    %114 = arith.addf %112, %113 : vector<8x64xf32>
    %115 = vector.extract_strided_slice %114 {offsets = [0, 0], sizes = [8, 32], strides = [1, 1]} : vector<8x64xf32> to vector<8x32xf32>
    %116 = vector.extract_strided_slice %114 {offsets = [0, 32], sizes = [8, 32], strides = [1, 1]} : vector<8x64xf32> to vector<8x32xf32>
    %117 = vector.extract_strided_slice %111 {offsets = [0, 0], sizes = [6, 16], strides = [1, 1]} : vector<6x32xf32> to vector<6x16xf32>
    %118 = vector.extract_strided_slice %115 {offsets = [0, 0], sizes = [8, 16], strides = [1, 1]} : vector<8x32xf32> to vector<8x16xf32>
    %cst_83 = arith.constant dense<0.000000e+00> : vector<6x8xf32>
    %119 = tpu.matmul %117, %118, %cst_83 {dimension_numbers = #tpu.dot_dimension_numbers<[1], [1], [0], [0], [0, 0, 1, 0], [], []>} : vector<6x16xf32>, vector<8x16xf32>, vector<6x8xf32> -> vector<6x8xf32>
    %cst_84 = arith.constant dense<0xFF800000> : vector<6xf32>
    %120 = vector.multi_reduction <maximumf>, %119, %cst_84 [1] : vector<6x8xf32> to vector<6xf32>
    %121 = vector.shape_cast %120 : vector<6xf32> to vector<6x1xf32>
    %122 = vector.broadcast %121 : vector<6x1xf32> to vector<6x8xf32>
    %123 = arith.subf %119, %122 : vector<6x8xf32>
    %124 = math.exp %123 : vector<6x8xf32>
    %cst_85 = arith.constant dense<0.000000e+00> : vector<6xf32>
    %125 = vector.multi_reduction <add>, %124, %cst_85 [1] : vector<6x8xf32> to vector<6xf32>
    %126 = vector.shape_cast %125 : vector<6xf32> to vector<6x1xf32>
    %127 = vector.broadcast %126 : vector<6x1xf32> to vector<6x8xf32>
    %128 = arith.divf %124, %127 : vector<6x8xf32>
    %129 = vector.extract_strided_slice %116 {offsets = [0, 0], sizes = [8, 16], strides = [1, 1]} : vector<8x32xf32> to vector<8x16xf32>
    %cst_86 = arith.constant dense<0.000000e+00> : vector<6x16xf32>
    %130 = tpu.matmul %128, %129, %cst_86 {dimension_numbers = #tpu.dot_dimension_numbers<[1], [0], [0], [1], [0, 0, 1, 1], [], []>} : vector<6x8xf32>, vector<8x16xf32>, vector<6x16xf32> -> vector<6x16xf32>
    %131 = vector.extract_strided_slice %24 {offsets = [0, 0], sizes = [16, 32], strides = [1, 1]} : vector<32x32xf32> to vector<16x32xf32>
    %cst_87 = arith.constant dense<0.000000e+00> : vector<6x32xf32>
    %132 = tpu.matmul %130, %131, %cst_87 {dimension_numbers = #tpu.dot_dimension_numbers<[1], [0], [0], [1], [0, 0, 1, 1], [], []>} : vector<6x16xf32>, vector<16x32xf32>, vector<6x32xf32> -> vector<6x32xf32>
    %133 = vector.extract_strided_slice %111 {offsets = [0, 16], sizes = [6, 16], strides = [1, 1]} : vector<6x32xf32> to vector<6x16xf32>
    %134 = vector.extract_strided_slice %115 {offsets = [0, 16], sizes = [8, 16], strides = [1, 1]} : vector<8x32xf32> to vector<8x16xf32>
    %cst_88 = arith.constant dense<0.000000e+00> : vector<6x8xf32>
    %135 = tpu.matmul %133, %134, %cst_88 {dimension_numbers = #tpu.dot_dimension_numbers<[1], [1], [0], [0], [0, 0, 1, 0], [], []>} : vector<6x16xf32>, vector<8x16xf32>, vector<6x8xf32> -> vector<6x8xf32>
    %cst_89 = arith.constant dense<0xFF800000> : vector<6xf32>
    %136 = vector.multi_reduction <maximumf>, %135, %cst_89 [1] : vector<6x8xf32> to vector<6xf32>
    %137 = vector.shape_cast %136 : vector<6xf32> to vector<6x1xf32>
    %138 = vector.broadcast %137 : vector<6x1xf32> to vector<6x8xf32>
    %139 = arith.subf %135, %138 : vector<6x8xf32>
    %140 = math.exp %139 : vector<6x8xf32>
    %cst_90 = arith.constant dense<0.000000e+00> : vector<6xf32>
    %141 = vector.multi_reduction <add>, %140, %cst_90 [1] : vector<6x8xf32> to vector<6xf32>
    %142 = vector.shape_cast %141 : vector<6xf32> to vector<6x1xf32>
    %143 = vector.broadcast %142 : vector<6x1xf32> to vector<6x8xf32>
    %144 = arith.divf %140, %143 : vector<6x8xf32>
    %145 = vector.extract_strided_slice %116 {offsets = [0, 16], sizes = [8, 16], strides = [1, 1]} : vector<8x32xf32> to vector<8x16xf32>
    %cst_91 = arith.constant dense<0.000000e+00> : vector<6x16xf32>
    %146 = tpu.matmul %144, %145, %cst_91 {dimension_numbers = #tpu.dot_dimension_numbers<[1], [0], [0], [1], [0, 0, 1, 1], [], []>} : vector<6x8xf32>, vector<8x16xf32>, vector<6x16xf32> -> vector<6x16xf32>
    %147 = vector.extract_strided_slice %24 {offsets = [16, 0], sizes = [16, 32], strides = [1, 1]} : vector<32x32xf32> to vector<16x32xf32>
    %cst_92 = arith.constant dense<0.000000e+00> : vector<6x32xf32>
    %148 = tpu.matmul %146, %147, %cst_92 {dimension_numbers = #tpu.dot_dimension_numbers<[1], [0], [0], [1], [0, 0, 1, 1], [], []>} : vector<6x16xf32>, vector<16x32xf32>, vector<6x32xf32> -> vector<6x32xf32>
    %149 = arith.addf %132, %148 : vector<6x32xf32>
    %150 = vector.broadcast %26 : vector<1x32xf32> to vector<6x32xf32>
    %151 = arith.addf %149, %150 : vector<6x32xf32>
    %152 = arith.addf %108, %151 : vector<6x32xf32>
    %cst_93 = arith.constant dense<0.000000e+00> : vector<6xf32>
    %153 = vector.multi_reduction <add>, %152, %cst_93 [1] : vector<6x32xf32> to vector<6xf32>
    %154 = vector.shape_cast %153 : vector<6xf32> to vector<6x1xf32>
    %cst_94 = arith.constant 3.200000e+01 : f32
    %155 = vector.broadcast %cst_94 : f32 to vector<6x1xf32>
    %156 = arith.divf %154, %155 : vector<6x1xf32>
    %157 = vector.broadcast %156 : vector<6x1xf32> to vector<6x32xf32>
    %158 = arith.subf %152, %157 : vector<6x32xf32>
    %159 = arith.mulf %158, %158 : vector<6x32xf32>
    %cst_95 = arith.constant dense<0.000000e+00> : vector<6xf32>
    %160 = vector.multi_reduction <add>, %159, %cst_95 [1] : vector<6x32xf32> to vector<6xf32>
    %161 = vector.shape_cast %160 : vector<6xf32> to vector<6x1xf32>
    %cst_96 = arith.constant 3.200000e+01 : f32
    %162 = vector.broadcast %cst_96 : f32 to vector<6x1xf32>
    %163 = arith.divf %161, %162 : vector<6x1xf32>
    %cst_97 = arith.constant 9.99999974E-6 : f32
    %164 = vector.broadcast %cst_97 : f32 to vector<6x1xf32>
    %165 = arith.addf %163, %164 : vector<6x1xf32>
    %166 = math.rsqrt %165 : vector<6x1xf32>
    %167 = vector.broadcast %166 : vector<6x1xf32> to vector<6x32xf32>
    %168 = arith.mulf %158, %167 : vector<6x32xf32>
    %169 = vector.broadcast %28 : vector<1x32xf32> to vector<6x32xf32>
    %170 = arith.mulf %168, %169 : vector<6x32xf32>
    %171 = vector.broadcast %30 : vector<1x32xf32> to vector<6x32xf32>
    %172 = arith.addf %170, %171 : vector<6x32xf32>
    %cst_98 = arith.constant dense<0.000000e+00> : vector<6x64xf32>
    %173 = tpu.matmul %172, %32, %cst_98 {dimension_numbers = #tpu.dot_dimension_numbers<[1], [0], [0], [1], [0, 0, 1, 1], [], []>} : vector<6x32xf32>, vector<32x64xf32>, vector<6x64xf32> -> vector<6x64xf32>
    %174 = vector.broadcast %34 : vector<1x64xf32> to vector<6x64xf32>
    %175 = arith.addf %173, %174 : vector<6x64xf32>
    %cst_99 = arith.constant 0.000000e+00 : f32
    %176 = vector.broadcast %cst_99 : f32 to vector<6x64xf32>
    %177 = arith.maximumf %175, %176 : vector<6x64xf32>
    %cst_100 = arith.constant dense<0.000000e+00> : vector<6x32xf32>
    %178 = tpu.matmul %177, %36, %cst_100 {dimension_numbers = #tpu.dot_dimension_numbers<[1], [0], [0], [1], [0, 0, 1, 1], [], []>} : vector<6x64xf32>, vector<64x32xf32>, vector<6x32xf32> -> vector<6x32xf32>
    %179 = vector.broadcast %38 : vector<1x32xf32> to vector<6x32xf32>
    %180 = arith.addf %178, %179 : vector<6x32xf32>
    %181 = arith.addf %172, %180 : vector<6x32xf32>
    %cst_101 = arith.constant dense<0.000000e+00> : vector<6xf32>
    %182 = vector.multi_reduction <add>, %181, %cst_101 [1] : vector<6x32xf32> to vector<6xf32>
    %183 = vector.shape_cast %182 : vector<6xf32> to vector<6x1xf32>
    %cst_102 = arith.constant 3.200000e+01 : f32
    %184 = vector.broadcast %cst_102 : f32 to vector<6x1xf32>
    %185 = arith.divf %183, %184 : vector<6x1xf32>
    %186 = vector.broadcast %185 : vector<6x1xf32> to vector<6x32xf32>
    %187 = arith.subf %181, %186 : vector<6x32xf32>
    %188 = arith.mulf %187, %187 : vector<6x32xf32>
    %cst_103 = arith.constant dense<0.000000e+00> : vector<6xf32>
    %189 = vector.multi_reduction <add>, %188, %cst_103 [1] : vector<6x32xf32> to vector<6xf32>
    %190 = vector.shape_cast %189 : vector<6xf32> to vector<6x1xf32>
    %cst_104 = arith.constant 3.200000e+01 : f32
    %191 = vector.broadcast %cst_104 : f32 to vector<6x1xf32>
    %192 = arith.divf %190, %191 : vector<6x1xf32>
    %cst_105 = arith.constant 9.99999974E-6 : f32
    %193 = vector.broadcast %cst_105 : f32 to vector<6x1xf32>
    %194 = arith.addf %192, %193 : vector<6x1xf32>
    %195 = math.rsqrt %194 : vector<6x1xf32>
    %196 = vector.broadcast %195 : vector<6x1xf32> to vector<6x32xf32>
    %197 = arith.mulf %187, %196 : vector<6x32xf32>
    %198 = vector.broadcast %40 : vector<1x32xf32> to vector<6x32xf32>
    %199 = arith.mulf %197, %198 : vector<6x32xf32>
    %200 = vector.broadcast %42 : vector<1x32xf32> to vector<6x32xf32>
    %201 = arith.addf %199, %200 : vector<6x32xf32>
    %c0_106 = arith.constant 0 : index
    %c0_107 = arith.constant 0 : index
    %c0_108 = arith.constant 0 : index
    %202 = vector.load %arg28[%c0_106, %c0_107, %c0_108] : memref<2x6x32xf32, #tpu.memory_space<vmem>>, vector<1x6x32xf32>
    %203 = vector.shape_cast %202 : vector<1x6x32xf32> to vector<6x32xf32>
    %204 = vector.shape_cast %201 : vector<6x32xf32> to vector<1x6x32xf32>
    tpu.vector_store %arg28[%c0_106, %c0_107, %c0_108], %204 {strides = array<i32>} : memref<2x6x32xf32, #tpu.memory_space<vmem>>, vector<1x6x32xf32>,
    %c1_i32 = arith.constant 1 : i32
    %205 = arith.cmpi eq, %arg0, %c1_i32 : i32
    %206 = arith.extui %205 : i1 to i32
    %c0_i32_109 = arith.constant 0 : i32
    %207 = arith.cmpi ne, %206, %c0_i32_109 : i32
    scf.if %207 {
      %c0_161 = arith.constant 0 : index
      %c0_162 = arith.constant 0 : index
      %373 = vector.load %arg5[%c0_161, %c0_162] : memref<32x1xf32, #tpu.memory_space<vmem>>, vector<32x1xf32>
      %cst_163 = arith.constant dense<0.000000e+00> : vector<6x1xf32>
      %374 = tpu.matmul %201, %373, %cst_163 {dimension_numbers = #tpu.dot_dimension_numbers<[1], [0], [0], [1], [0, 0, 1, 1], [], []>} : vector<6x32xf32>, vector<32x1xf32>, vector<6x1xf32> -> vector<6x1xf32>
      %c0_164 = arith.constant 0 : index
      %c0_165 = arith.constant 0 : index
      %375 = vector.load %arg6[%c0_164, %c0_165] : memref<1x1xf32, #tpu.memory_space<vmem>>, vector<1x1xf32>
      %376 = vector.broadcast %375 : vector<1x1xf32> to vector<6x1xf32>
      %377 = arith.addf %374, %376 : vector<6x1xf32>
      %c0_166 = arith.constant 0 : index
      %c0_167 = arith.constant 0 : index
      %c0_168 = arith.constant 0 : index
      %378 = vector.load %arg27[%c0_166, %c0_167, %c0_168] : memref<2x6x1xf32, #tpu.memory_space<vmem>>, vector<1x6x1xf32>
      %379 = vector.shape_cast %378 : vector<1x6x1xf32> to vector<6x1xf32>
      %380 = vector.shape_cast %377 : vector<6x1xf32> to vector<1x6x1xf32>
      tpu.vector_store %arg27[%c0_166, %c0_167, %c0_168], %380 {strides = array<i32>} : memref<2x6x1xf32, #tpu.memory_space<vmem>>, vector<1x6x1xf32>,
    } else {
    }
    %c1 = arith.constant 1 : index
    %c0_110 = arith.constant 0 : index
    %c0_111 = arith.constant 0 : index
    %208 = vector.load %arg28[%c1, %c0_110, %c0_111] : memref<2x6x32xf32, #tpu.memory_space<vmem>>, vector<1x6x32xf32>
    %209 = vector.shape_cast %208 : vector<1x6x32xf32> to vector<6x32xf32>
    %c1_112 = arith.constant 1 : index
    %c0_113 = arith.constant 0 : index
    %c0_114 = arith.constant 0 : index
    %210 = vector.load %arg2[%c1_112, %c0_113, %c0_114] : memref<2x8x32xf32, #tpu.memory_space<vmem>>, vector<1x8x32xf32>
    %211 = vector.shape_cast %210 : vector<1x8x32xf32> to vector<8x32xf32>
    %cst_115 = arith.constant dense<0.000000e+00> : vector<6x96xf32>
    %212 = tpu.matmul %209, %4, %cst_115 {dimension_numbers = #tpu.dot_dimension_numbers<[1], [0], [0], [1], [0, 0, 1, 1], [], []>} : vector<6x32xf32>, vector<32x96xf32>, vector<6x96xf32> -> vector<6x96xf32>
    %213 = vector.broadcast %6 : vector<1x96xf32> to vector<6x96xf32>
    %214 = arith.addf %212, %213 : vector<6x96xf32>
    %215 = vector.extract_strided_slice %214 {offsets = [0, 0], sizes = [6, 32], strides = [1, 1]} : vector<6x96xf32> to vector<6x32xf32>
    %216 = vector.extract_strided_slice %214 {offsets = [0, 32], sizes = [6, 32], strides = [1, 1]} : vector<6x96xf32> to vector<6x32xf32>
    %217 = vector.extract_strided_slice %214 {offsets = [0, 64], sizes = [6, 32], strides = [1, 1]} : vector<6x96xf32> to vector<6x32xf32>
    %218 = vector.extract_strided_slice %215 {offsets = [0, 0], sizes = [6, 16], strides = [1, 1]} : vector<6x32xf32> to vector<6x16xf32>
    %219 = vector.extract_strided_slice %216 {offsets = [0, 0], sizes = [6, 16], strides = [1, 1]} : vector<6x32xf32> to vector<6x16xf32>
    %cst_116 = arith.constant dense<0.000000e+00> : vector<6x6xf32>
    %220 = tpu.matmul %218, %219, %cst_116 {dimension_numbers = #tpu.dot_dimension_numbers<[1], [1], [0], [0], [0, 0, 1, 0], [], []>} : vector<6x16xf32>, vector<6x16xf32>, vector<6x6xf32> -> vector<6x6xf32>
    %cst_117 = arith.constant dense<0xFF800000> : vector<6xf32>
    %221 = vector.multi_reduction <maximumf>, %220, %cst_117 [1] : vector<6x6xf32> to vector<6xf32>
    %222 = vector.shape_cast %221 : vector<6xf32> to vector<6x1xf32>
    %223 = vector.broadcast %222 : vector<6x1xf32> to vector<6x6xf32>
    %224 = arith.subf %220, %223 : vector<6x6xf32>
    %225 = math.exp %224 : vector<6x6xf32>
    %cst_118 = arith.constant dense<0.000000e+00> : vector<6xf32>
    %226 = vector.multi_reduction <add>, %225, %cst_118 [1] : vector<6x6xf32> to vector<6xf32>
    %227 = vector.shape_cast %226 : vector<6xf32> to vector<6x1xf32>
    %228 = vector.broadcast %227 : vector<6x1xf32> to vector<6x6xf32>
    %229 = arith.divf %225, %228 : vector<6x6xf32>
    %230 = vector.extract_strided_slice %217 {offsets = [0, 0], sizes = [6, 16], strides = [1, 1]} : vector<6x32xf32> to vector<6x16xf32>
    %cst_119 = arith.constant dense<0.000000e+00> : vector<6x16xf32>
    %231 = tpu.matmul %229, %230, %cst_119 {dimension_numbers = #tpu.dot_dimension_numbers<[1], [0], [0], [1], [0, 0, 1, 1], [], []>} : vector<6x6xf32>, vector<6x16xf32>, vector<6x16xf32> -> vector<6x16xf32>
    %232 = vector.extract_strided_slice %8 {offsets = [0, 0], sizes = [16, 32], strides = [1, 1]} : vector<32x32xf32> to vector<16x32xf32>
    %cst_120 = arith.constant dense<0.000000e+00> : vector<6x32xf32>
    %233 = tpu.matmul %231, %232, %cst_120 {dimension_numbers = #tpu.dot_dimension_numbers<[1], [0], [0], [1], [0, 0, 1, 1], [], []>} : vector<6x16xf32>, vector<16x32xf32>, vector<6x32xf32> -> vector<6x32xf32>
    %234 = vector.extract_strided_slice %215 {offsets = [0, 16], sizes = [6, 16], strides = [1, 1]} : vector<6x32xf32> to vector<6x16xf32>
    %235 = vector.extract_strided_slice %216 {offsets = [0, 16], sizes = [6, 16], strides = [1, 1]} : vector<6x32xf32> to vector<6x16xf32>
    %cst_121 = arith.constant dense<0.000000e+00> : vector<6x6xf32>
    %236 = tpu.matmul %234, %235, %cst_121 {dimension_numbers = #tpu.dot_dimension_numbers<[1], [1], [0], [0], [0, 0, 1, 0], [], []>} : vector<6x16xf32>, vector<6x16xf32>, vector<6x6xf32> -> vector<6x6xf32>
    %cst_122 = arith.constant dense<0xFF800000> : vector<6xf32>
    %237 = vector.multi_reduction <maximumf>, %236, %cst_122 [1] : vector<6x6xf32> to vector<6xf32>
    %238 = vector.shape_cast %237 : vector<6xf32> to vector<6x1xf32>
    %239 = vector.broadcast %238 : vector<6x1xf32> to vector<6x6xf32>
    %240 = arith.subf %236, %239 : vector<6x6xf32>
    %241 = math.exp %240 : vector<6x6xf32>
    %cst_123 = arith.constant dense<0.000000e+00> : vector<6xf32>
    %242 = vector.multi_reduction <add>, %241, %cst_123 [1] : vector<6x6xf32> to vector<6xf32>
    %243 = vector.shape_cast %242 : vector<6xf32> to vector<6x1xf32>
    %244 = vector.broadcast %243 : vector<6x1xf32> to vector<6x6xf32>
    %245 = arith.divf %241, %244 : vector<6x6xf32>
    %246 = vector.extract_strided_slice %217 {offsets = [0, 16], sizes = [6, 16], strides = [1, 1]} : vector<6x32xf32> to vector<6x16xf32>
    %cst_124 = arith.constant dense<0.000000e+00> : vector<6x16xf32>
    %247 = tpu.matmul %245, %246, %cst_124 {dimension_numbers = #tpu.dot_dimension_numbers<[1], [0], [0], [1], [0, 0, 1, 1], [], []>} : vector<6x6xf32>, vector<6x16xf32>, vector<6x16xf32> -> vector<6x16xf32>
    %248 = vector.extract_strided_slice %8 {offsets = [16, 0], sizes = [16, 32], strides = [1, 1]} : vector<32x32xf32> to vector<16x32xf32>
    %cst_125 = arith.constant dense<0.000000e+00> : vector<6x32xf32>
    %249 = tpu.matmul %247, %248, %cst_125 {dimension_numbers = #tpu.dot_dimension_numbers<[1], [0], [0], [1], [0, 0, 1, 1], [], []>} : vector<6x16xf32>, vector<16x32xf32>, vector<6x32xf32> -> vector<6x32xf32>
    %250 = arith.addf %233, %249 : vector<6x32xf32>
    %251 = vector.broadcast %10 : vector<1x32xf32> to vector<6x32xf32>
    %252 = arith.addf %250, %251 : vector<6x32xf32>
    %253 = arith.addf %209, %252 : vector<6x32xf32>
    %cst_126 = arith.constant dense<0.000000e+00> : vector<6xf32>
    %254 = vector.multi_reduction <add>, %253, %cst_126 [1] : vector<6x32xf32> to vector<6xf32>
    %255 = vector.shape_cast %254 : vector<6xf32> to vector<6x1xf32>
    %cst_127 = arith.constant 3.200000e+01 : f32
    %256 = vector.broadcast %cst_127 : f32 to vector<6x1xf32>
    %257 = arith.divf %255, %256 : vector<6x1xf32>
    %258 = vector.broadcast %257 : vector<6x1xf32> to vector<6x32xf32>
    %259 = arith.subf %253, %258 : vector<6x32xf32>
    %260 = arith.mulf %259, %259 : vector<6x32xf32>
    %cst_128 = arith.constant dense<0.000000e+00> : vector<6xf32>
    %261 = vector.multi_reduction <add>, %260, %cst_128 [1] : vector<6x32xf32> to vector<6xf32>
    %262 = vector.shape_cast %261 : vector<6xf32> to vector<6x1xf32>
    %cst_129 = arith.constant 3.200000e+01 : f32
    %263 = vector.broadcast %cst_129 : f32 to vector<6x1xf32>
    %264 = arith.divf %262, %263 : vector<6x1xf32>
    %cst_130 = arith.constant 9.99999974E-6 : f32
    %265 = vector.broadcast %cst_130 : f32 to vector<6x1xf32>
    %266 = arith.addf %264, %265 : vector<6x1xf32>
    %267 = math.rsqrt %266 : vector<6x1xf32>
    %268 = vector.broadcast %267 : vector<6x1xf32> to vector<6x32xf32>
    %269 = arith.mulf %259, %268 : vector<6x32xf32>
    %270 = vector.broadcast %12 : vector<1x32xf32> to vector<6x32xf32>
    %271 = arith.mulf %269, %270 : vector<6x32xf32>
    %272 = vector.broadcast %14 : vector<1x32xf32> to vector<6x32xf32>
    %273 = arith.addf %271, %272 : vector<6x32xf32>
    %cst_131 = arith.constant dense<0.000000e+00> : vector<6x32xf32>
    %274 = tpu.matmul %273, %16, %cst_131 {dimension_numbers = #tpu.dot_dimension_numbers<[1], [0], [0], [1], [0, 0, 1, 1], [], []>} : vector<6x32xf32>, vector<32x32xf32>, vector<6x32xf32> -> vector<6x32xf32>
    %275 = vector.broadcast %18 : vector<1x32xf32> to vector<6x32xf32>
    %276 = arith.addf %274, %275 : vector<6x32xf32>
    %cst_132 = arith.constant dense<0.000000e+00> : vector<8x64xf32>
    %277 = tpu.matmul %211, %20, %cst_132 {dimension_numbers = #tpu.dot_dimension_numbers<[1], [0], [0], [1], [0, 0, 1, 1], [], []>} : vector<8x32xf32>, vector<32x64xf32>, vector<8x64xf32> -> vector<8x64xf32>
    %278 = vector.broadcast %22 : vector<1x64xf32> to vector<8x64xf32>
    %279 = arith.addf %277, %278 : vector<8x64xf32>
    %280 = vector.extract_strided_slice %279 {offsets = [0, 0], sizes = [8, 32], strides = [1, 1]} : vector<8x64xf32> to vector<8x32xf32>
    %281 = vector.extract_strided_slice %279 {offsets = [0, 32], sizes = [8, 32], strides = [1, 1]} : vector<8x64xf32> to vector<8x32xf32>
    %282 = vector.extract_strided_slice %276 {offsets = [0, 0], sizes = [6, 16], strides = [1, 1]} : vector<6x32xf32> to vector<6x16xf32>
    %283 = vector.extract_strided_slice %280 {offsets = [0, 0], sizes = [8, 16], strides = [1, 1]} : vector<8x32xf32> to vector<8x16xf32>
    %cst_133 = arith.constant dense<0.000000e+00> : vector<6x8xf32>
    %284 = tpu.matmul %282, %283, %cst_133 {dimension_numbers = #tpu.dot_dimension_numbers<[1], [1], [0], [0], [0, 0, 1, 0], [], []>} : vector<6x16xf32>, vector<8x16xf32>, vector<6x8xf32> -> vector<6x8xf32>
    %cst_134 = arith.constant dense<0xFF800000> : vector<6xf32>
    %285 = vector.multi_reduction <maximumf>, %284, %cst_134 [1] : vector<6x8xf32> to vector<6xf32>
    %286 = vector.shape_cast %285 : vector<6xf32> to vector<6x1xf32>
    %287 = vector.broadcast %286 : vector<6x1xf32> to vector<6x8xf32>
    %288 = arith.subf %284, %287 : vector<6x8xf32>
    %289 = math.exp %288 : vector<6x8xf32>
    %cst_135 = arith.constant dense<0.000000e+00> : vector<6xf32>
    %290 = vector.multi_reduction <add>, %289, %cst_135 [1] : vector<6x8xf32> to vector<6xf32>
    %291 = vector.shape_cast %290 : vector<6xf32> to vector<6x1xf32>
    %292 = vector.broadcast %291 : vector<6x1xf32> to vector<6x8xf32>
    %293 = arith.divf %289, %292 : vector<6x8xf32>
    %294 = vector.extract_strided_slice %281 {offsets = [0, 0], sizes = [8, 16], strides = [1, 1]} : vector<8x32xf32> to vector<8x16xf32>
    %cst_136 = arith.constant dense<0.000000e+00> : vector<6x16xf32>
    %295 = tpu.matmul %293, %294, %cst_136 {dimension_numbers = #tpu.dot_dimension_numbers<[1], [0], [0], [1], [0, 0, 1, 1], [], []>} : vector<6x8xf32>, vector<8x16xf32>, vector<6x16xf32> -> vector<6x16xf32>
    %296 = vector.extract_strided_slice %24 {offsets = [0, 0], sizes = [16, 32], strides = [1, 1]} : vector<32x32xf32> to vector<16x32xf32>
    %cst_137 = arith.constant dense<0.000000e+00> : vector<6x32xf32>
    %297 = tpu.matmul %295, %296, %cst_137 {dimension_numbers = #tpu.dot_dimension_numbers<[1], [0], [0], [1], [0, 0, 1, 1], [], []>} : vector<6x16xf32>, vector<16x32xf32>, vector<6x32xf32> -> vector<6x32xf32>
    %298 = vector.extract_strided_slice %276 {offsets = [0, 16], sizes = [6, 16], strides = [1, 1]} : vector<6x32xf32> to vector<6x16xf32>
    %299 = vector.extract_strided_slice %280 {offsets = [0, 16], sizes = [8, 16], strides = [1, 1]} : vector<8x32xf32> to vector<8x16xf32>
    %cst_138 = arith.constant dense<0.000000e+00> : vector<6x8xf32>
    %300 = tpu.matmul %298, %299, %cst_138 {dimension_numbers = #tpu.dot_dimension_numbers<[1], [1], [0], [0], [0, 0, 1, 0], [], []>} : vector<6x16xf32>, vector<8x16xf32>, vector<6x8xf32> -> vector<6x8xf32>
    %cst_139 = arith.constant dense<0xFF800000> : vector<6xf32>
    %301 = vector.multi_reduction <maximumf>, %300, %cst_139 [1] : vector<6x8xf32> to vector<6xf32>
    %302 = vector.shape_cast %301 : vector<6xf32> to vector<6x1xf32>
    %303 = vector.broadcast %302 : vector<6x1xf32> to vector<6x8xf32>
    %304 = arith.subf %300, %303 : vector<6x8xf32>
    %305 = math.exp %304 : vector<6x8xf32>
    %cst_140 = arith.constant dense<0.000000e+00> : vector<6xf32>
    %306 = vector.multi_reduction <add>, %305, %cst_140 [1] : vector<6x8xf32> to vector<6xf32>
    %307 = vector.shape_cast %306 : vector<6xf32> to vector<6x1xf32>
    %308 = vector.broadcast %307 : vector<6x1xf32> to vector<6x8xf32>
    %309 = arith.divf %305, %308 : vector<6x8xf32>
    %310 = vector.extract_strided_slice %281 {offsets = [0, 16], sizes = [8, 16], strides = [1, 1]} : vector<8x32xf32> to vector<8x16xf32>
    %cst_141 = arith.constant dense<0.000000e+00> : vector<6x16xf32>
    %311 = tpu.matmul %309, %310, %cst_141 {dimension_numbers = #tpu.dot_dimension_numbers<[1], [0], [0], [1], [0, 0, 1, 1], [], []>} : vector<6x8xf32>, vector<8x16xf32>, vector<6x16xf32> -> vector<6x16xf32>
    %312 = vector.extract_strided_slice %24 {offsets = [16, 0], sizes = [16, 32], strides = [1, 1]} : vector<32x32xf32> to vector<16x32xf32>
    %cst_142 = arith.constant dense<0.000000e+00> : vector<6x32xf32>
    %313 = tpu.matmul %311, %312, %cst_142 {dimension_numbers = #tpu.dot_dimension_numbers<[1], [0], [0], [1], [0, 0, 1, 1], [], []>} : vector<6x16xf32>, vector<16x32xf32>, vector<6x32xf32> -> vector<6x32xf32>
    %314 = arith.addf %297, %313 : vector<6x32xf32>
    %315 = vector.broadcast %26 : vector<1x32xf32> to vector<6x32xf32>
    %316 = arith.addf %314, %315 : vector<6x32xf32>
    %317 = arith.addf %273, %316 : vector<6x32xf32>
    %cst_143 = arith.constant dense<0.000000e+00> : vector<6xf32>
    %318 = vector.multi_reduction <add>, %317, %cst_143 [1] : vector<6x32xf32> to vector<6xf32>
    %319 = vector.shape_cast %318 : vector<6xf32> to vector<6x1xf32>
    %cst_144 = arith.constant 3.200000e+01 : f32
    %320 = vector.broadcast %cst_144 : f32 to vector<6x1xf32>
    %321 = arith.divf %319, %320 : vector<6x1xf32>
    %322 = vector.broadcast %321 : vector<6x1xf32> to vector<6x32xf32>
    %323 = arith.subf %317, %322 : vector<6x32xf32>
    %324 = arith.mulf %323, %323 : vector<6x32xf32>
    %cst_145 = arith.constant dense<0.000000e+00> : vector<6xf32>
    %325 = vector.multi_reduction <add>, %324, %cst_145 [1] : vector<6x32xf32> to vector<6xf32>
    %326 = vector.shape_cast %325 : vector<6xf32> to vector<6x1xf32>
    %cst_146 = arith.constant 3.200000e+01 : f32
    %327 = vector.broadcast %cst_146 : f32 to vector<6x1xf32>
    %328 = arith.divf %326, %327 : vector<6x1xf32>
    %cst_147 = arith.constant 9.99999974E-6 : f32
    %329 = vector.broadcast %cst_147 : f32 to vector<6x1xf32>
    %330 = arith.addf %328, %329 : vector<6x1xf32>
    %331 = math.rsqrt %330 : vector<6x1xf32>
    %332 = vector.broadcast %331 : vector<6x1xf32> to vector<6x32xf32>
    %333 = arith.mulf %323, %332 : vector<6x32xf32>
    %334 = vector.broadcast %28 : vector<1x32xf32> to vector<6x32xf32>
    %335 = arith.mulf %333, %334 : vector<6x32xf32>
    %336 = vector.broadcast %30 : vector<1x32xf32> to vector<6x32xf32>
    %337 = arith.addf %335, %336 : vector<6x32xf32>
    %cst_148 = arith.constant dense<0.000000e+00> : vector<6x64xf32>
    %338 = tpu.matmul %337, %32, %cst_148 {dimension_numbers = #tpu.dot_dimension_numbers<[1], [0], [0], [1], [0, 0, 1, 1], [], []>} : vector<6x32xf32>, vector<32x64xf32>, vector<6x64xf32> -> vector<6x64xf32>
    %339 = vector.broadcast %34 : vector<1x64xf32> to vector<6x64xf32>
    %340 = arith.addf %338, %339 : vector<6x64xf32>
    %cst_149 = arith.constant 0.000000e+00 : f32
    %341 = vector.broadcast %cst_149 : f32 to vector<6x64xf32>
    %342 = arith.maximumf %340, %341 : vector<6x64xf32>
    %cst_150 = arith.constant dense<0.000000e+00> : vector<6x32xf32>
    %343 = tpu.matmul %342, %36, %cst_150 {dimension_numbers = #tpu.dot_dimension_numbers<[1], [0], [0], [1], [0, 0, 1, 1], [], []>} : vector<6x64xf32>, vector<64x32xf32>, vector<6x32xf32> -> vector<6x32xf32>
    %344 = vector.broadcast %38 : vector<1x32xf32> to vector<6x32xf32>
    %345 = arith.addf %343, %344 : vector<6x32xf32>
    %346 = arith.addf %337, %345 : vector<6x32xf32>
    %cst_151 = arith.constant dense<0.000000e+00> : vector<6xf32>
    %347 = vector.multi_reduction <add>, %346, %cst_151 [1] : vector<6x32xf32> to vector<6xf32>
    %348 = vector.shape_cast %347 : vector<6xf32> to vector<6x1xf32>
    %cst_152 = arith.constant 3.200000e+01 : f32
    %349 = vector.broadcast %cst_152 : f32 to vector<6x1xf32>
    %350 = arith.divf %348, %349 : vector<6x1xf32>
    %351 = vector.broadcast %350 : vector<6x1xf32> to vector<6x32xf32>
    %352 = arith.subf %346, %351 : vector<6x32xf32>
    %353 = arith.mulf %352, %352 : vector<6x32xf32>
    %cst_153 = arith.constant dense<0.000000e+00> : vector<6xf32>
    %354 = vector.multi_reduction <add>, %353, %cst_153 [1] : vector<6x32xf32> to vector<6xf32>
    %355 = vector.shape_cast %354 : vector<6xf32> to vector<6x1xf32>
    %cst_154 = arith.constant 3.200000e+01 : f32
    %356 = vector.broadcast %cst_154 : f32 to vector<6x1xf32>
    %357 = arith.divf %355, %356 : vector<6x1xf32>
    %cst_155 = arith.constant 9.99999974E-6 : f32
    %358 = vector.broadcast %cst_155 : f32 to vector<6x1xf32>
    %359 = arith.addf %357, %358 : vector<6x1xf32>
    %360 = math.rsqrt %359 : vector<6x1xf32>
    %361 = vector.broadcast %360 : vector<6x1xf32> to vector<6x32xf32>
    %362 = arith.mulf %352, %361 : vector<6x32xf32>
    %363 = vector.broadcast %40 : vector<1x32xf32> to vector<6x32xf32>
    %364 = arith.mulf %362, %363 : vector<6x32xf32>
    %365 = vector.broadcast %42 : vector<1x32xf32> to vector<6x32xf32>
    %366 = arith.addf %364, %365 : vector<6x32xf32>
    %c1_156 = arith.constant 1 : index
    %c0_157 = arith.constant 0 : index
    %c0_158 = arith.constant 0 : index
    %367 = vector.load %arg28[%c1_156, %c0_157, %c0_158] : memref<2x6x32xf32, #tpu.memory_space<vmem>>, vector<1x6x32xf32>
    %368 = vector.shape_cast %367 : vector<1x6x32xf32> to vector<6x32xf32>
    %369 = vector.shape_cast %366 : vector<6x32xf32> to vector<1x6x32xf32>
    tpu.vector_store %arg28[%c1_156, %c0_157, %c0_158], %369 {strides = array<i32>} : memref<2x6x32xf32, #tpu.memory_space<vmem>>, vector<1x6x32xf32>,
    %c1_i32_159 = arith.constant 1 : i32
    %370 = arith.cmpi eq, %arg0, %c1_i32_159 : i32
    %371 = arith.extui %370 : i1 to i32
    %c0_i32_160 = arith.constant 0 : i32
    %372 = arith.cmpi ne, %371, %c0_i32_160 : i32
    scf.if %372 {
      %c0_161 = arith.constant 0 : index
      %c0_162 = arith.constant 0 : index
      %373 = vector.load %arg5[%c0_161, %c0_162] : memref<32x1xf32, #tpu.memory_space<vmem>>, vector<32x1xf32>
      %cst_163 = arith.constant dense<0.000000e+00> : vector<6x1xf32>
      %374 = tpu.matmul %366, %373, %cst_163 {dimension_numbers = #tpu.dot_dimension_numbers<[1], [0], [0], [1], [0, 0, 1, 1], [], []>} : vector<6x32xf32>, vector<32x1xf32>, vector<6x1xf32> -> vector<6x1xf32>
      %c0_164 = arith.constant 0 : index
      %c0_165 = arith.constant 0 : index
      %375 = vector.load %arg6[%c0_164, %c0_165] : memref<1x1xf32, #tpu.memory_space<vmem>>, vector<1x1xf32>
      %376 = vector.broadcast %375 : vector<1x1xf32> to vector<6x1xf32>
      %377 = arith.addf %374, %376 : vector<6x1xf32>
      %c1_166 = arith.constant 1 : index
      %c0_167 = arith.constant 0 : index
      %c0_168 = arith.constant 0 : index
      %378 = vector.load %arg27[%c1_166, %c0_167, %c0_168] : memref<2x6x1xf32, #tpu.memory_space<vmem>>, vector<1x6x1xf32>
      %379 = vector.shape_cast %378 : vector<1x6x1xf32> to vector<6x1xf32>
      %380 = vector.shape_cast %377 : vector<6x1xf32> to vector<1x6x1xf32>
      tpu.vector_store %arg27[%c1_166, %c0_167, %c0_168], %380 {strides = array<i32>} : memref<2x6x1xf32, #tpu.memory_space<vmem>>, vector<1x6x1xf32>,
    } else {
    }
    return
  }
  func.func @transform_0(%arg0: i32) -> (i32, i32, i32) {
    %c0_i32 = arith.constant 0 : i32
    %c0_i32_0 = arith.constant 0 : i32
    %c0_i32_1 = arith.constant 0 : i32
    %c0_i32_2 = arith.constant 0 : i32
    return %c0_i32, %c0_i32_0, %c0_i32_1 : i32, i32, i32
  }
  func.func @transform_1(%arg0: i32) -> (i32, i32, i32) {
    %c0_i32 = arith.constant 0 : i32
    %c0_i32_0 = arith.constant 0 : i32
    %c0_i32_1 = arith.constant 0 : i32
    %c0_i32_2 = arith.constant 0 : i32
    return %c0_i32, %c0_i32_0, %c0_i32_1 : i32, i32, i32
  }
  func.func @transform_2(%arg0: i32) -> (i32, i32) {
    %c0_i32 = arith.constant 0 : i32
    %c0_i32_0 = arith.constant 0 : i32
    %c0_i32_1 = arith.constant 0 : i32
    return %c0_i32, %c0_i32_0 : i32, i32
  }
  func.func @transform_3(%arg0: i32) -> (i32, i32) {
    %c0_i32 = arith.constant 0 : i32
    %c0_i32_0 = arith.constant 0 : i32
    %c0_i32_1 = arith.constant 0 : i32
    return %c0_i32, %c0_i32_0 : i32, i32
  }
  func.func @transform_4(%arg0: i32) -> (i32, i32) {
    %c0_i32 = arith.constant 0 : i32
    %c0_i32_0 = arith.constant 0 : i32
    %c0_i32_1 = arith.constant 0 : i32
    return %c0_i32, %c0_i32_0 : i32, i32
  }
  func.func @transform_5(%arg0: i32) -> (i32, i32) {
    %c0_i32 = arith.constant 0 : i32
    %c0_i32_0 = arith.constant 0 : i32
    %c0_i32_1 = arith.constant 0 : i32
    return %c0_i32, %c0_i32_0 : i32, i32
  }
  func.func @transform_6(%arg0: i32) -> (i32, i32, i32) {
    %c0_i32 = arith.constant 0 : i32
    %c0_i32_0 = arith.constant 0 : i32
    %c0_i32_1 = arith.constant 0 : i32
    return %arg0, %c0_i32, %c0_i32_0 : i32, i32, i32
  }
  func.func @transform_7(%arg0: i32) -> (i32, i32, i32) {
    %c0_i32 = arith.constant 0 : i32
    %c0_i32_0 = arith.constant 0 : i32
    %c0_i32_1 = arith.constant 0 : i32
    return %arg0, %c0_i32, %c0_i32_0 : i32, i32, i32
  }
  func.func @transform_8(%arg0: i32) -> (i32, i32, i32) {
    %c0_i32 = arith.constant 0 : i32
    %c0_i32_0 = arith.constant 0 : i32
    %c0_i32_1 = arith.constant 0 : i32
    return %arg0, %c0_i32, %c0_i32_0 : i32, i32, i32
  }
  func.func @transform_9(%arg0: i32) -> (i32, i32, i32) {
    %c0_i32 = arith.constant 0 : i32
    %c0_i32_0 = arith.constant 0 : i32
    %c0_i32_1 = arith.constant 0 : i32
    return %arg0, %c0_i32, %c0_i32_0 : i32, i32, i32
  }
  func.func @transform_10(%arg0: i32) -> (i32, i32, i32) {
    %c0_i32 = arith.constant 0 : i32
    %c0_i32_0 = arith.constant 0 : i32
    %c0_i32_1 = arith.constant 0 : i32
    return %arg0, %c0_i32, %c0_i32_0 : i32, i32, i32
  }
  func.func @transform_11(%arg0: i32) -> (i32, i32, i32) {
    %c0_i32 = arith.constant 0 : i32
    %c0_i32_0 = arith.constant 0 : i32
    %c0_i32_1 = arith.constant 0 : i32
    return %arg0, %c0_i32, %c0_i32_0 : i32, i32, i32
  }
  func.func @transform_12(%arg0: i32) -> (i32, i32, i32) {
    %c0_i32 = arith.constant 0 : i32
    %c0_i32_0 = arith.constant 0 : i32
    %c0_i32_1 = arith.constant 0 : i32
    return %arg0, %c0_i32, %c0_i32_0 : i32, i32, i32
  }
  func.func @transform_13(%arg0: i32) -> (i32, i32, i32) {
    %c0_i32 = arith.constant 0 : i32
    %c0_i32_0 = arith.constant 0 : i32
    %c0_i32_1 = arith.constant 0 : i32
    return %arg0, %c0_i32, %c0_i32_0 : i32, i32, i32
  }
  func.func @transform_14(%arg0: i32) -> (i32, i32, i32) {
    %c0_i32 = arith.constant 0 : i32
    %c0_i32_0 = arith.constant 0 : i32
    %c0_i32_1 = arith.constant 0 : i32
    return %arg0, %c0_i32, %c0_i32_0 : i32, i32, i32
  }
  func.func @transform_15(%arg0: i32) -> (i32, i32, i32) {
    %c0_i32 = arith.constant 0 : i32
    %c0_i32_0 = arith.constant 0 : i32
    %c0_i32_1 = arith.constant 0 : i32
    return %arg0, %c0_i32, %c0_i32_0 : i32, i32, i32
  }
  func.func @transform_16(%arg0: i32) -> (i32, i32, i32) {
    %c0_i32 = arith.constant 0 : i32
    %c0_i32_0 = arith.constant 0 : i32
    %c0_i32_1 = arith.constant 0 : i32
    return %arg0, %c0_i32, %c0_i32_0 : i32, i32, i32
  }
  func.func @transform_17(%arg0: i32) -> (i32, i32, i32) {
    %c0_i32 = arith.constant 0 : i32
    %c0_i32_0 = arith.constant 0 : i32
    %c0_i32_1 = arith.constant 0 : i32
    return %arg0, %c0_i32, %c0_i32_0 : i32, i32, i32
  }
  func.func @transform_18(%arg0: i32) -> (i32, i32, i32) {
    %c0_i32 = arith.constant 0 : i32
    %c0_i32_0 = arith.constant 0 : i32
    %c0_i32_1 = arith.constant 0 : i32
    return %arg0, %c0_i32, %c0_i32_0 : i32, i32, i32
  }
  func.func @transform_19(%arg0: i32) -> (i32, i32, i32) {
    %c0_i32 = arith.constant 0 : i32
    %c0_i32_0 = arith.constant 0 : i32
    %c0_i32_1 = arith.constant 0 : i32
    return %arg0, %c0_i32, %c0_i32_0 : i32, i32, i32
  }
  func.func @transform_20(%arg0: i32) -> (i32, i32, i32) {
    %c0_i32 = arith.constant 0 : i32
    %c0_i32_0 = arith.constant 0 : i32
    %c0_i32_1 = arith.constant 0 : i32
    return %arg0, %c0_i32, %c0_i32_0 : i32, i32, i32
  }
  func.func @transform_21(%arg0: i32) -> (i32, i32, i32) {
    %c0_i32 = arith.constant 0 : i32
    %c0_i32_0 = arith.constant 0 : i32
    %c0_i32_1 = arith.constant 0 : i32
    return %arg0, %c0_i32, %c0_i32_0 : i32, i32, i32
  }
  func.func @transform_22(%arg0: i32) -> (i32, i32, i32) {
    %c0_i32 = arith.constant 0 : i32
    %c0_i32_0 = arith.constant 0 : i32
    %c0_i32_1 = arith.constant 0 : i32
    return %arg0, %c0_i32, %c0_i32_0 : i32, i32, i32
  }
  func.func @transform_23(%arg0: i32) -> (i32, i32, i32) {
    %c0_i32 = arith.constant 0 : i32
    %c0_i32_0 = arith.constant 0 : i32
    %c0_i32_1 = arith.constant 0 : i32
    return %arg0, %c0_i32, %c0_i32_0 : i32, i32, i32
  }
  func.func @transform_24(%arg0: i32) -> (i32, i32, i32) {
    %c0_i32 = arith.constant 0 : i32
    %c0_i32_0 = arith.constant 0 : i32
    %c0_i32_1 = arith.constant 0 : i32
    return %arg0, %c0_i32, %c0_i32_0 : i32, i32, i32
  }
  func.func @transform_25(%arg0: i32) -> (i32, i32, i32) {
    %c0_i32 = arith.constant 0 : i32
    %c0_i32_0 = arith.constant 0 : i32
    %c0_i32_1 = arith.constant 0 : i32
    return %arg0, %c0_i32, %c0_i32_0 : i32, i32, i32
  }
  func.func @transform_26(%arg0: i32) -> (i32, i32, i32) {
    %c0_i32 = arith.constant 0 : i32
    %c0_i32_0 = arith.constant 0 : i32
    %c0_i32_1 = arith.constant 0 : i32
    %c0_i32_2 = arith.constant 0 : i32
    return %c0_i32, %c0_i32_0, %c0_i32_1 : i32, i32, i32
  }
}

</mosaic_0001>

<bundles_post_ra>
// kernel: transformer_forward.2
= control target key start
LH: loop header
LB: loop body
LE: loop exit
PB: predicated region body
PF: predicated region fallthrough
CT: control target
= control target key end

     0   :  { %s3040_s21 = smov 0   ;;  %s3392_s0 = inlined_call_operand.vmem [shape: f32[2,8,1], index: 0, kind: input, shape index: {}]   ;;  %s3393_s1 = inlined_call_operand.vmem [shape: f32[2,1,32], index: 1, kind: input, shape index: {}]   ;;  %s3394_s2 = inlined_call_operand.vmem [shape: f32[1,32], index: 2, kind: input, shape index: {}]   ;;  %s3395_s3 = inlined_call_operand.vmem [shape: f32[1,32], index: 3, kind: input, shape index: {}]   ;;  %s3396_s4 = inlined_call_operand.vmem [shape: f32[2,32,96], index: 4, kind: input, shape index: {}]   ;;  %s3397_s5 = inlined_call_operand.vmem [shape: f32[2,1,96], index: 5, kind: input, shape index: {}]   ;;  %s3398_s6 = inlined_call_operand.vmem [shape: f32[2,32,32], index: 6, kind: input, shape index: {}]   ;;  %s3399_s7 = inlined_call_operand.vmem [shape: f32[2,1,32], index: 7, kind: input, shape index: {}]   ;;  %s3400_s8 = inlined_call_operand.vmem [shape: f32[2,1,32], index: 8, kind: input, shape index: {}]   ;;  %s3401_s9 = inlined_call_operand.vmem [shape: f32[2,1,32], index: 9, kind: input, shape index: {}]   ;;  %s3402_s10 = inlined_call_operand.vmem [shape: f32[2,32,64], index: 10, kind: input, shape index: {}]   ;;  %s3403_s11 = inlined_call_operand.vmem [shape: f32[2,1,64], index: 11, kind: input, shape index: {}]   ;;  %s3404_s12 = inlined_call_operand.vmem [shape: f32[2,64,32], index: 12, kind: input, shape index: {}]   ;;  %s3405_s13 = inlined_call_operand.vmem [shape: f32[2,1,32], index: 13, kind: input, shape index: {}]   ;;  %s3406_s14 = inlined_call_operand.vmem [shape: f32[2,1,32], index: 14, kind: input, shape index: {}]   ;;  %s3407_s15 = inlined_call_operand.vmem [shape: f32[2,1,32], index: 15, kind: input, shape index: {}]   ;;  %s3408_s16 = inlined_call_operand.vmem [shape: f32[2,8,32], index: 16, kind: output, shape index: {}]  }
   0x1   :  { %3415 = sst [smem:[#allocation4_spill]] %s3392_s0 }
   0x2   :  { %3416 = sst [smem:[#allocation5_spill]] %s3393_s1 }
   0x3   :  { %3417 = sst [smem:[#allocation6_spill]] %s3395_s3 }
   0x4   :  { %3418 = sst [smem:[#allocation7_spill]] %s3396_s4 }
   0x5   :  { %3419 = sst [smem:[#allocation8_spill]] %s3398_s6 }
   0x6   :  { %3420 = sst [smem:[#allocation9_spill]] %s3408_s16 }
   0x7 LB: > { %3421 = sst [smem:[#allocation2_spill]] %s2943_s21  ;;  %s2544_s22 = sadd.s32 4294967295, %s2943_s21   ;;  %s2943_s21 = sphi %s3040_s21, %s26_s21  }
   0x8   : > { %p2547_p0 = scmp.ge.s32.totalorder %s2943_s21, 1  ;;  %p551_p1 = scmp.lt.s32.totalorder %s2943_s21, 3 }
   0xa   : > { %p552_p2 = pnand %p2547_p0, %p551_p1 }
   0xc   : > { %555 = sbr.rel (%p552_p2) target bundleno = 4220 (0x107c), region = 84 }
  0x13   : > { %p635_p3 = scmp.lt.s32.totalorder %s2544_s22, 1  ;;  %s3422_s4 = sld [smem:[#allocation7_spill]] }
  0x14   : > { %s3423_s6 = sld [smem:[#allocation8_spill]]  ;;  %p2556_p4 = scmp.ne.s32.totalorder %s2544_s22, 0 }
  0x15   : > { %s3048_s23 = scalar_select %p635_p3, %s2544_s22, 1 }
  0x16   : > { %682 = sbr.rel (%p2556_p4) target bundleno = 246 (0xf6), region = 88  ;;  %v683_v0 = vld [vmem:[%s3394_s2] sm:$0x1] (!%p2556_p4)  ;;  %vm696_vm0 = vcmask (!%p2556_p4), 1040384   ;;  %v2945_v1 = vmov (!%p2556_p4), 0.0   ;;  %s3425_s20 = sld [smem:[#allocation4_spill]] (!%p2556_p4) }
  0x17   : > { %s2601_s24 = sshll.u32 %s3048_s23, 5  ;;  %s672_s25 = scalar_lea.vmem %s3405_s13, %s3048_s23  ;;  %2675 = vmatprep.subr.mxu0 (!%p2556_p4), %v2945_v1  ;;  %2680 = vmatprep.subr.mxu1 (!%p2556_p4), %v2945_v1  ;;  %vm692_vm1 = vcmask (!%p2556_p4), 7168   ;;  %vm2946_vm2 = vmmov (!%p2556_p4), 0   ;;  %vm778_vm3 = vcmask (!%p2556_p4), 261120  }
  0x18   : > { %s675_s28 = scalar_lea.vmem %s3406_s14, %s3048_s23  ;;  %s678_s3 = scalar_lea.vmem %s3407_s15, %s3048_s23  ;;  %2676 = vmatpush3.msk.msra.mxu0 (!%p2556_p4), %vm696_vm0, %v683_v0  ;;  %2677 = vmatprep.mubr.msk.f32.mxu0 (!%p2556_p4), %vm2946_vm2, %v2945_v1 }
  0x19   : > { %s3058_s30 = scalar_lea.vmem %s3422_s4, %s2601_s24  ;;  %s3080_s4 = scalar_lea.vmem %s3402_s10, %s2601_s24  ;;  %2681 = vmatpush3.msk.msra.mxu1 (!%p2556_p4), %vm696_vm0, %v683_v0  ;;  %2682 = vmatprep.mubr.msk.f32.mxu1 (!%p2556_p4), %vm2946_vm2, %v2945_v1 }
  0x1a   : > { %s3063_s18 = scalar_lea.vmem %s3423_s6, %s2601_s24  ;;  %s664_s6 = scalar_lea.vmem %s3403_s11, %s3048_s23 }
  0x1b   : > { %3424 = sst [smem:[#allocation3_spill]] %s3063_s18  ;;  %s2604_s18 = sshll.u32 %s3048_s23, 6 }
  0x1c   : > { %s3090_s21 = scalar_lea.vmem %s3404_s12, %s2604_s18  ;;  %v685_v2 = vld [vmem:[%s3425_s20] sm:$0xff] (!%p2556_p4)  ;;  %v2561_v3 = vld [vmem:[%s3425_s20 + $0x8] sm:$0xff] (!%p2556_p4)  ;;  %s3426_s26 = sld [smem:[#allocation6_spill]] (!%p2556_p4) }
  0x1d   : > { %2678 = vmatmul.mubr.msk.f32.vlgmr.msra.gmra.mrb[0].mxu0 %vm692_vm1, %v685_v2  ;;  %2683 = vmatmul.mubr.msk.f32.vlgmr.msra.gmra.mrb[0].mxu1 %vm692_vm1, %v2561_v3  ;;  %s3427_s0 = sld [smem:[#allocation5_spill]]  ;;  %s3428_s1 = sld [smem:[#allocation9_spill]] }
  0x22   : > { %v2557_v4 = vld [vmem:[%s3426_s26] ss:$0 sm:$0xff] }
  0x23   : > { %v2560_v6 = vld [vmem:[%s3427_s0] ss:$0 sm:$0xff]  ;;  %v2565_v8 = vld [vmem:[%s3427_s0 + $0x1] ss:$0 sm:$0xff] }
  0xf0   : > { %v766_v5 = vpop.f32.mrb[0].mxu0  ;;  %v851_v7 = vpop.f32.mrb[0].mxu1 }
  0xf1   : > { %v767_v9 = vadd.f32 %v2557_v4, %v766_v5  ;;  %v852_v10 = vadd.f32 %v2557_v4, %v851_v7  ;;  %v2679_v11 = vpop.f32.mrb[1].mxu0  ;;  %v2684_v12 = vpop.f32.mrb[1].mxu1 }
  0xf3   : > { %v777_v13 = vadd.f32 %v2560_v6, %v767_v9  ;;  %v863_v14 = vadd.f32 %v2565_v8, %v852_v10 }
  0xf5   : > { %779 = vst.msk [vmem:[%s3428_s1] sm:$0xff] %vm778_vm3, %v777_v13  ;;  %2566 = vst.msk [vmem:[%s3428_s1 + $0x8] sm:$0xff] %vm778_vm3, %v863_v14 }
  0xf6 PF: > { %v866_v15 = vld [vmem:[%s3058_s30] sm:$0xff]  ;;  %v867_v16 = vld [vmem:[%s3058_s30 + $0x8] sm:$0xff]  ;;  %v868_v17 = vld [vmem:[%s3058_s30 + $0x10] sm:$0xff]  ;;  %v2947_v18 = vmov 0.0|0.0   ;;  %vm2948_vm4 = vmmov 0   ;;  %v2949_v21 = vmov 0.0   ;;  %s3430_s18 = scalar_lea.vmem %s3397_s5, %s3048_s23  ;;  %s3432_s17 = scalar_lea.vmem %s3399_s7, %s3048_s23 }
  0xf7   : > { %2835 = vmatprep.subr.bf16.mxu0 %v2947_v18  ;;  %v3132_v19 = vpack.c.bf16 %v867_v16, %v866_v15  ;;  %v869_v20 = vld [vmem:[%s3058_s30 + $0x18] sm:$0xff]  ;;  %2693 = vmatprep.mubr.msk.f32.mxu0 %vm2948_vm4, %v2949_v21  ;;  %s3429_s24 = sld [smem:[#allocation9_spill]]  ;;  %vm901_vm5 = vcmask 261120   ;;  %v3160_v24 = vld [vmem:[%s3430_s18] ss:$0 sm:$0xff]  ;;  %s2950_s19 = smov 112  }
  0xf8   : > { %2701 = vmatprep.subr.mxu1 %v2949_v21  ;;  %2703 = vmatprep.mubr.msk.f32.mxu1 %vm2948_vm4, %v2949_v21  ;;  %v3141_v22 = vpack.c.bf16 %v869_v20, %v868_v17  ;;  %s2951_s27 = smov 96   ;;  %s2952_s1 = smov 80   ;;  %vm978_vm6 = vcmask 130048   ;;  %vm1053_vm7 = vcmask 64512   ;;  %v3213_v3 = vld [vmem:[%s3432_s17] ss:$0 sm:$0xff] }
  0xf9   : > { %2837 = vmatpush3.bf16.msra.mxu0 %v3132_v19  ;;  %s3431_s22 = sld [smem:[#allocation3_spill]]  ;;  %s2953_s16 = smov 48   ;;  %v878_v15 = vld [vmem:[%s3080_s4] sm:$0xff]  ;;  %v879_v16 = vld [vmem:[%s3080_s4 + $0x8] sm:$0xff]  ;;  %v880_v20 = vld [vmem:[%s3080_s4 + $0x10] sm:$0xff]  ;;  %vm1574_vm8 = vcmask 523264  }
  0xfa   : > { %2838 = vmatprep.subr.bf16.mxu0 %v2947_v18  ;;  %s2954_s26 = smov 64   ;;  %v3221_v17 = vpack.c.bf16 %v879_v16, %v878_v15  ;;  %s3434_s17 = scalar_lea.vmem %s3401_s9, %s3048_s23 }
  0xfd   : > { %2840 = vmatpush3.bf16.msra.mxu0 %v3141_v22  ;;  %v3148_v23 = vld [vmem:[%s3429_s24] sm:$0xff] }
  0xfe   : > { %2696 = vmatprep.subr.mxu0 %v2949_v21 }
  0xff   : > { %v871_v52 = vld [vmem:[%s3431_s22] sm:$0xff]  ;;  %v872_v53 = vld [vmem:[%s3431_s22 + $0x8] sm:$0xff]  ;;  %v873_v58 = vld [vmem:[%s3431_s22 + $0x10] sm:$0xff] }
 0x100   : > { %2694 = vmatmul.mubr.msk.f32.vlgmr.msra.gmra.mrb[0].mxu0 %vm901_vm5, %v3148_v23  ;;  %v3188_v56 = vpack.c.bf16 %v872_v53, %v871_v52  ;;  %v874_v59 = vld [vmem:[%s3431_s22 + $0x18] sm:$0xff]  ;;  %s3433_s22 = scalar_lea.vmem %s3400_s8, %s3048_s23 }
 0x101   : > { %2698 = vmatprep.mubr.msk.f32.mxu0 %vm2948_vm4, %v2949_v21  ;;  %v3198_v60 = vpack.c.bf16 %v874_v59, %v873_v58 }
 0x1d3   : > { %v971_v25 = vpop.f32.mrb[0].mxu0 }
 0x1d4   : > { %v972_v26 = vadd.f32 %v3160_v24, %v971_v25  ;;  %v2695_v27 = vpop.f32.mrb[1].mxu0 }
 0x1d5   : > { %v884_v27 = vld [vmem:[%s3090_s21 + $0x8] sm:$0xff] }
 0x1d6   : > { %1141 = vrot.lane.b32.xlu1 %v972_v26, %s2950_s19  ;;  %976 = vrot.lane.b32.xlu0 %v972_v26, %s2951_s27 }
 0x1da   : > { %1143 = vrot.lane.b32.xlu0 %v972_v26, %s2952_s1 }
 0x248   : > { %v977_v28 = vpop.permute.xlu0 %976  ;;  %v1142_v30 = vpop.permute.xlu1 %1141 }
 0x249   : > { %2697 = vmatpush3.xpose.msk.msra.mxu0 %vm978_vm6, %v977_v28  ;;  %v885_v28 = vld [vmem:[%s3090_s21 + $0x10] sm:$0xff] }
 0x24a   : > { %2706 = vmatprep.subr.mxu0 %v2949_v21 }
 0x24c   : > { %2699 = vmatmul.mubr.msk.f32.vlgmr.msra.gmra.mrb[2].mxu0 %vm978_vm6, %v972_v26  ;;  %v1144_v29 = vpop.permute.xlu0 %1143 }
 0x24d   : > { %2707 = vmatpush3.xpose.msk.msra.mxu0 %vm978_vm6, %v1144_v29  ;;  %2708 = vmatprep.mubr.msk.f32.mxu0 %vm2948_vm4, %v2949_v21 }
 0x24e   : > { %2841 = vmatprep.subr.bf16.mxu0 %v2947_v18 }
 0x250   : > { %2709 = vmatmul.mubr.msk.f32.vlgmr.msra.gmra.mrb[4].mxu0 %vm978_vm6, %v1142_v30  ;;  %v886_v30 = vld [vmem:[%s3090_s21 + $0x18] sm:$0xff] }
 0x251   : > { %2720 = vmatprep.mubr.msk.f32.mxu0 %vm2948_vm4, %v2949_v21  ;;  %2843 = vmatpush3.bf16.msra.mxu0 %v3198_v60 }
 0x252   : > { %2847 = vmatprep.subr.bf16.mxu0 %v2947_v18 }
 0x31f   : > { %v1049_v31 = vpop.f32.mrb[2].mxu0 }
 0x320   : > { %v2700_v32 = vpop.f32.mrb[3].mxu0  ;;  %v1054_v33 = vsel %vm1053_vm7, %v1049_v31, -inf }
 0x321   : > { %1055 = vmax.xlane.f32.xlu1 %v1054_v33  ;;  %v887_v32 = vld [vmem:[%s3090_s21 + $0x20] sm:$0xff]  ;;  %v888_v33 = vld [vmem:[%s3090_s21 + $0x28] sm:$0xff] }
 0x323   : > { %v1215_v34 = vpop.f32.mrb[4].mxu0 }
 0x324   : > { %v2710_v35 = vpop.f32.mrb[5].mxu0  ;;  %v1219_v36 = vsel %vm1053_vm7, %v1215_v34, -inf }
 0x325   : > { %1220 = vmax.xlane.f32.xlu0 %v1219_v36 }
 0x3ae   : > { %v1056_v37 = vpop.xlane.xlu1 %1055 }
 0x3af   : > { %v1057_v38 = vsub.f32 %v1049_v31, %v1056_v37  ;;  %v3238_v31 = vpack.c.bf16 %v886_v30, %v885_v28 }
 0x3b1   : > { %v1058_v39 = vmul.f32 1.442695, %v1057_v38 }
 0x3b2   : > { %v1221_v40 = vpop.xlane.xlu0 %1220 }
 0x3b3   : > { %2913 = vpow2.f32 %v1058_v39  ;;  %v1222_v41 = vsub.f32 %v1215_v34, %v1221_v40  ;;  %v3244_v34 = vpack.c.bf16 %v888_v33, %v887_v32  ;;  %v3254_v39 = vld [vmem:[%s3433_s22] ss:$0 sm:$0xff] }
 0x3b5   : > { %v1223_v42 = vmul.f32 1.442695, %v1222_v41  ;;  %v3261_v41 = vld [vmem:[%s3434_s17] ss:$0 sm:$0xff] }
 0x3b7   : > { %2915 = vpow2.f32 %v1223_v42 }
 0x3bd   : > { %v2914_v43 = vpop.eup %2913 }
 0x3be   : > { %v1060_v44 = vsel %vm1053_vm7, %v2914_v43, 0.0 }
 0x3bf   : > { %1061 = vadd.xlane.f32.xlu0 %v1060_v44  ;;  %v3277_v44 = vld [vmem:[%s3429_s24 + $0x8] sm:$0xff] }
 0x3c1   : > { %v2916_v45 = vpop.eup %2915 }
 0x3c2   : > { %v1225_v46 = vsel %vm1053_vm7, %v2916_v45, 0.0 }
 0x3c3   : > { %1226 = vadd.xlane.f32.xlu1 %v1225_v46 }
 0x3d4   : > { %1230 = vrot.lane.b32.xlu1 %v972_v26, %s2953_s16 }
 0x3d5   : > { %1065 = vrot.lane.b32.xlu0 %v972_v26, %s2954_s26  ;;  %v883_v26 = vld [vmem:[%s3090_s21] sm:$0xff] }
 0x3d6   : > { %v3234_v29 = vpack.c.bf16 %v884_v27, %v883_v26 }
 0x44c   : > { %v1062_v47 = vpop.xlane.xlu0 %1061 }
 0x44d   : > { %2917 = vrcp.f32 %v1062_v47 }
 0x450   : > { %v1227_v48 = vpop.xlane.xlu1 %1226  ;;  %v1066_v49 = vpop.permute.xlu0 %1065 }
 0x451   : > { %2919 = vrcp.f32 %v1227_v48  ;;  %2702 = vmatpush3.msra.mxu1 %v1066_v49 }
 0x452   : > { %2711 = vmatprep.subr.mxu1 %v2949_v21 }
 0x454   : > { %v1231_v54 = vpop.permute.xlu1 %1230 }
 0x457   : > { %v2918_v50 = vpop.eup %2917 }
 0x458   : > { %v1064_v51 = vmul.f32 %v2918_v50, %v2914_v43 }
 0x45a   : > { %2704 = vmatmul.mubr.msk.f32.vlgmr.msra.gmra.mrb[0].mxu1 %vm1053_vm7, %v1064_v51 }
 0x45b   : > { %v2920_v55 = vpop.eup %2919  ;;  %2712 = vmatpush3.msra.mxu1 %v1231_v54  ;;  %2713 = vmatprep.mubr.msk.f32.mxu1 %vm2948_vm4, %v2949_v21 }
 0x45c   : > { %v1229_v57 = vmul.f32 %v2920_v55, %v2916_v45  ;;  %2844 = vmatprep.subr.bf16.mxu1 %v2947_v18  ;;  %v890_v45 = vld [vmem:[%s3090_s21 + $0x38] sm:$0xff] }
 0x45e   : > { %2714 = vmatmul.mubr.msk.f32.vlgmr.msra.gmra.mrb[2].mxu1 %vm1053_vm7, %v1229_v57 }
 0x45f   : > { %2846 = vmatpush3.bf16.msra.mxu1 %v3188_v56  ;;  %2727 = vmatprep.mubr.msk.f32.mxu1 %vm2948_vm4, %v2949_v21 }
 0x460   : > { %2853 = vmatprep.subr.bf16.mxu1 %v2947_v18 }
 0x52d   : > { %v1137_v61 = vpop.f32.mrb[0].mxu1 }
 0x52e   : > { %v2705_v62 = vpop.f32.mrb[1].mxu1  ;;  %2728 = vmatmul.mubr.msk.f32.vlgmr.msra.gmra.mrb[4].mxu1 %vm978_vm6, %v1137_v61 }
 0x52f   : > { %2757 = vmatprep.mubr.msk.f32.mxu1 %vm2948_vm4, %v2949_v21  ;;  %2855 = vmatpush3.bf16.msra.mxu1 %v3234_v29 }
 0x530   : > { %2856 = vmatprep.subr.bf16.mxu1 %v2947_v18 }
 0x531   : > { %v1302_v63 = vpop.f32.mrb[2].mxu1 }
 0x532   : > { %v2715_v0 = vpop.f32.mrb[3].mxu1  ;;  %2721 = vmatmul.mubr.msk.f32.vlgmr.msra.gmra.mrb[6].mxu0 %vm978_vm6, %v1302_v63 }
 0x533   : > { %2738 = vmatprep.mubr.msk.f32.mxu0 %vm2948_vm4, %v2949_v21  ;;  %2849 = vmatpush3.bf16.msra.mxu0 %v3221_v17 }
 0x534   : > { %2850 = vmatprep.subr.bf16.mxu0 %v2947_v18  ;;  %2858 = vmatpush3.bf16.msra.mxu1 %v3238_v31 }
 0x535   : > { %2859 = vmatprep.subr.bf16.mxu1 %v2947_v18 }
 0x538   : > { %2861 = vmatpush3.bf16.msra.mxu1 %v3244_v34 }
 0x539   : > { %2862 = vmatprep.subr.bf16.mxu1 %v2947_v18 }
 0x601   : > { %v1448_v1 = vpop.f32.mrb[4].mxu1 }
 0x602   : > { %v2729_v2 = vpop.f32.mrb[5].mxu1 }
 0x605   : > { %v1375_v4 = vpop.f32.mrb[6].mxu0 }
 0x606   : > { %v1449_v5 = vadd.f32 %v1448_v1, %v1375_v4  ;;  %v2722_v6 = vpop.f32.mrb[7].mxu0 }
 0x608   : > { %v1458_v7 = vadd.f32 %v3213_v3, %v1449_v5 }
 0x60a   : > { %v1459_v8 = vadd.f32 %v1458_v7, %v3148_v23  ;;  %v881_v23 = vld [vmem:[%s3080_s4 + $0x18] sm:$0xff] }
 0x60b   : > { %v3227_v25 = vpack.c.bf16 %v881_v23, %v880_v20 }
 0x60c   : > { %v1460_v9 = vsel %vm901_vm5, %v1459_v8, 0.0 }
 0x60d   : > { %1461 = vadd.xlane.f32.xlu1 %v1460_v9  ;;  %2852 = vmatpush3.bf16.msra.mxu0 %v3227_v25 }
 0x60e   : > { %2865 = vmatprep.subr.bf16.mxu0 %v2947_v18 }
 0x69a   : > { %v1462_v10 = vpop.xlane.xlu1 %1461 }
 0x69b   : > { %v1464_v11 = vmul.f32 0.03125, %v1462_v10 }
 0x69d   : > { %v1465_v12 = vsub.f32 %v1459_v8, %v1464_v11 }
 0x69f   : > { %v1466_v13 = vmul.f32 %v1465_v12, %v1465_v12 }
 0x6a1   : > { %v1467_v14 = vsel %vm901_vm5, %v1466_v13, 0.0 }
 0x6a2   : > { %1468 = vadd.xlane.f32.xlu0 %v1467_v14 }
 0x72f   : > { %v1469_v35 = vpop.xlane.xlu0 %1468 }
 0x730   : > { %v1470_v36 = vmul.f32 0.03125, %v1469_v35 }
 0x732   : > { %v1471_v37 = vadd.f32 1e-05, %v1470_v36 }
 0x734   : > { %2921 = vrsqrt.f32 %v1471_v37 }
 0x73e   : > { %v2922_v38 = vpop.eup %2921 }
 0x73f   : > { %v1473_v40 = vmul.f32 %v2922_v38, %v1465_v12 }
 0x741   : > { %v1480_v42 = vmul.f32 %v3254_v39, %v1473_v40 }
 0x743   : > { %v3265_v43 = vadd.f32 %v3261_v41, %v1480_v42 }
 0x745   : > { %2739 = vmatmul.mubr.msk.f32.vlgmr.msra.gmra.mrb[8].mxu0 %vm901_vm5, %v3265_v43 }
 0x746   : > { %2867 = vmatpush3.bf16.msra.mxu0 %v3132_v19  ;;  %2768 = vmatprep.mubr.msk.f32.mxu0 %vm2948_vm4, %v2949_v21  ;;  %v889_v19 = vld [vmem:[%s3090_s21 + $0x30] sm:$0xff] }
 0x747   : > { %2868 = vmatprep.subr.bf16.mxu0 %v2947_v18  ;;  %v3286_v46 = vpack.c.bf16 %v890_v45, %v889_v19 }
 0x749   : > { %2864 = vmatpush3.bf16.msra.mxu1 %v3286_v46 }
 0x74a   : > { %2870 = vmatpush3.bf16.msra.mxu0 %v3141_v22  ;;  %2776 = vmatprep.subr.mxu1 %v2949_v21  ;;  %v3295_v22 = vld [vmem:[%s664_s6] ss:$0 sm:$0xff] }
 0x74b   : > { %2771 = vmatprep.subr.mxu0 %v2949_v21 }
 0x74d   : > { %2769 = vmatmul.mubr.msk.f32.vlgmr.msra.gmra.mrb[10].mxu0 %vm901_vm5, %v3277_v44 }
 0x74e   : > { %2773 = vmatprep.mubr.msk.f32.mxu0 %vm2948_vm4, %v2949_v21 }
 0x818   : > { %v1563_v47 = vpop.f32.mrb[8].mxu0 }
 0x819   : > { %v1564_v48 = vadd.f32 %v3295_v22, %v1563_v47  ;;  %v2740_v49 = vpop.f32.mrb[9].mxu0 }
 0x81b   : > { %v1567_v50 = vmax.f32 %v1564_v48, 0.0 }
 0x81d   : > { %2758 = vmatmul.mubr.msk.f32.vlgmr.msra.gmra.mrb[6].mxu1 %vm1574_vm8, %v1567_v50 }
 0x81e   : > { %2778 = vmatprep.mubr.msk.f32.mxu1 %vm2948_vm4, %v2949_v21 }
 0x820   : > { %v1748_v51 = vpop.f32.mrb[10].mxu0 }
 0x821   : > { %v1749_v52 = vadd.f32 %v3160_v24, %v1748_v51  ;;  %v2770_v53 = vpop.f32.mrb[11].mxu0 }
 0x823   : > { %1918 = vrot.lane.b32.xlu1 %v1749_v52, %s2952_s1  ;;  %1753 = vrot.lane.b32.xlu0 %v1749_v52, %s2951_s27 }
 0x827   : > { %1916 = vrot.lane.b32.xlu1 %v1749_v52, %s2950_s19 }
 0x895   : > { %v1754_v54 = vpop.permute.xlu0 %1753  ;;  %v1919_v55 = vpop.permute.xlu1 %1918 }
 0x896   : > { %2772 = vmatpush3.xpose.msk.msra.mxu0 %vm978_vm6, %v1754_v54 }
 0x897   : > { %2781 = vmatprep.subr.mxu0 %v2949_v21 }
 0x899   : > { %2774 = vmatmul.mubr.msk.f32.vlgmr.msra.gmra.mrb[12].mxu0 %vm978_vm6, %v1749_v52  ;;  %v1917_v24 = vpop.permute.xlu1 %1916 }
 0x89a   : > { %2782 = vmatpush3.xpose.msk.msra.mxu0 %vm978_vm6, %v1919_v55  ;;  %2783 = vmatprep.mubr.msk.f32.mxu0 %vm2948_vm4, %v2949_v21 }
 0x89b   : > { %2871 = vmatprep.subr.bf16.mxu0 %v2947_v18 }
 0x89d   : > { %2784 = vmatmul.mubr.msk.f32.vlgmr.msra.gmra.mrb[14].mxu0 %vm978_vm6, %v1917_v24 }
 0x89e   : > { %2873 = vmatpush3.bf16.msra.mxu0 %v3198_v60  ;;  %2795 = vmatprep.mubr.msk.f32.mxu0 %vm2948_vm4, %v2949_v21 }
 0x89f   : > { %2877 = vmatprep.subr.bf16.mxu0 %v2947_v18 }
 0x8f0   : > { %v3317_v57 = vpop.f32.mrb[6].mxu1 }
 0x8f1   : > { %v2759_v58 = vpop.f32.mrb[7].mxu1 }
 0x8f2   : > { %v2584_v58 = vld [vmem:[%s675_s28] ss:$0 sm:$0xff] }
 0x96c   : > { %v1825_v59 = vpop.f32.mrb[12].mxu0 }
 0x96d   : > { %v2775_v61 = vpop.f32.mrb[13].mxu0  ;;  %v1829_v62 = vsel %vm1053_vm7, %v1825_v59, -inf }
 0x96e   : > { %1830 = vmax.xlane.f32.xlu0 %v1829_v62  ;;  %v2585_v62 = vld [vmem:[%s678_s3] ss:$0 sm:$0xff] }
 0x970   : > { %v1990_v63 = vpop.f32.mrb[14].mxu0 }
 0x971   : > { %v2785_v0 = vpop.f32.mrb[15].mxu0  ;;  %v1994_v1 = vsel %vm1053_vm7, %v1990_v63, -inf }
 0x972   : > { %1995 = vmax.xlane.f32.xlu1 %v1994_v1 }
 0x983   : > { %1840 = vrot.lane.b32.xlu1 %v1749_v52, %s2954_s26 }
 0x9fb   : > { %v1831_v60 = vpop.xlane.xlu0 %1830 }
 0x9fc   : > { %v1832_v2 = vsub.f32 %v1825_v59, %v1831_v60 }
 0x9fe   : > { %v1833_v4 = vmul.f32 1.442695, %v1832_v2 }
 0x9ff   : > { %v1996_v5 = vpop.xlane.xlu1 %1995 }
 0xa00   : > { %2923 = vpow2.f32 %v1833_v4  ;;  %v1997_v6 = vsub.f32 %v1990_v63, %v1996_v5 }
 0xa02   : > { %v1998_v7 = vmul.f32 1.442695, %v1997_v6 }
 0xa03   : > { %v1841_v8 = vpop.permute.xlu1 %1840 }
 0xa04   : > { %2925 = vpow2.f32 %v1998_v7  ;;  %2777 = vmatpush3.msra.mxu1 %v1841_v8 }
 0xa05   : > { %2786 = vmatprep.subr.mxu1 %v2949_v21 }
 0xa0a   : > { %v2924_v9 = vpop.eup %2923 }
 0xa0b   : > { %v1835_v10 = vsel %vm1053_vm7, %v2924_v9, 0.0 }
 0xa0c   : > { %1836 = vadd.xlane.f32.xlu0 %v1835_v10 }
 0xa0e   : > { %v2926_v11 = vpop.eup %2925 }
 0xa0f   : > { %v2000_v12 = vsel %vm1053_vm7, %v2926_v11, 0.0 }
 0xa10   : > { %2001 = vadd.xlane.f32.xlu0 %v2000_v12 }
 0xa26   : > { %2005 = vrot.lane.b32.xlu0 %v1749_v52, %s2953_s16 }
 0xa99   : > { %v1837_v13 = vpop.xlane.xlu0 %1836 }
 0xa9a   : > { %2927 = vrcp.f32 %v1837_v13 }
 0xa9d   : > { %v2002_v14 = vpop.xlane.xlu0 %2001 }
 0xa9e   : > { %2929 = vrcp.f32 %v2002_v14 }
 0xaa1   : > { %v2006_v20 = vpop.permute.xlu0 %2005 }
 0xaa4   : > { %v2928_v15 = vpop.eup %2927 }
 0xaa5   : > { %v1839_v16 = vmul.f32 %v2928_v15, %v2924_v9 }
 0xaa7   : > { %2779 = vmatmul.mubr.msk.f32.vlgmr.msra.gmra.mrb[8].mxu1 %vm1053_vm7, %v1839_v16 }
 0xaa8   : > { %v2930_v23 = vpop.eup %2929  ;;  %2787 = vmatpush3.msra.mxu1 %v2006_v20  ;;  %2788 = vmatprep.mubr.msk.f32.mxu1 %vm2948_vm4, %v2949_v21 }
 0xaa9   : > { %v2004_v26 = vmul.f32 %v2930_v23, %v2926_v11  ;;  %2874 = vmatprep.subr.bf16.mxu1 %v2947_v18 }
 0xaab   : > { %2789 = vmatmul.mubr.msk.f32.vlgmr.msra.gmra.mrb[10].mxu1 %vm1053_vm7, %v2004_v26 }
 0xaac   : > { %2876 = vmatpush3.bf16.msra.mxu1 %v3188_v56  ;;  %2802 = vmatprep.mubr.msk.f32.mxu1 %vm2948_vm4, %v2949_v21 }
 0xaad   : > { %2883 = vmatprep.subr.bf16.mxu1 %v2947_v18 }
 0xb7a   : > { %v1912_v27 = vpop.f32.mrb[8].mxu1 }
 0xb7b   : > { %v2780_v28 = vpop.f32.mrb[9].mxu1  ;;  %2803 = vmatmul.mubr.msk.f32.vlgmr.msra.gmra.mrb[12].mxu1 %vm978_vm6, %v1912_v27 }
 0xb7c   : > { %2885 = vmatpush3.bf16.msra.mxu1 %v3234_v29  ;;  %2832 = vmatprep.mubr.msk.f32.mxu1 %vm2948_vm4, %v2949_v21 }
 0xb7d   : > { %2886 = vmatprep.subr.bf16.mxu1 %v2947_v18 }
 0xb7e   : > { %v2077_v30 = vpop.f32.mrb[10].mxu1 }
 0xb7f   : > { %v2790_v32 = vpop.f32.mrb[11].mxu1  ;;  %2796 = vmatmul.mubr.msk.f32.vlgmr.msra.gmra.mrb[16].mxu0 %vm978_vm6, %v2077_v30 }
 0xb80   : > { %2879 = vmatpush3.bf16.msra.mxu0 %v3221_v17  ;;  %2813 = vmatprep.mubr.msk.f32.mxu0 %vm2948_vm4, %v2949_v21  ;;  %v2582_v21 = vld [vmem:[%s672_s25] ss:$0 sm:$0xff] }
 0xb81   : > { %2880 = vmatprep.subr.bf16.mxu0 %v2947_v18  ;;  %2888 = vmatpush3.bf16.msra.mxu1 %v3238_v31  ;;  %v1645_v35 = vadd.f32 %v2582_v21, %v3317_v57 }
 0xb82   : > { %2889 = vmatprep.subr.bf16.mxu1 %v2947_v18 }
 0xb83   : > { %v1648_v36 = vadd.f32 %v1645_v35, %v3265_v43 }
 0xb84   : > { %2882 = vmatpush3.bf16.msra.mxu0 %v3227_v25 }
 0xb85   : > { %2891 = vmatpush3.bf16.msra.mxu1 %v3244_v34  ;;  %v1649_v37 = vsel %vm901_vm5, %v1648_v36, 0.0 }
 0xb86   : > { %2892 = vmatprep.subr.bf16.mxu1 %v2947_v18 }
 0xb89   : > { %2894 = vmatpush3.bf16.msra.mxu1 %v3286_v46 }
 0xc4e   : > { %v2223_v56 = vpop.f32.mrb[12].mxu1 }
 0xc4f   : > { %v2804_v29 = vpop.f32.mrb[13].mxu1 }
 0xc52   : > { %v2150_v17 = vpop.f32.mrb[16].mxu0 }
 0xc53   : > { %v2224_v33 = vadd.f32 %v2223_v56, %v2150_v17  ;;  %v2797_v31 = vpop.f32.mrb[17].mxu0 }
 0xc55   : > { %v2227_v25 = vadd.f32 %v3213_v3, %v2224_v33 }
 0xc57   : > { %v2228_v34 = vadd.f32 %v3277_v44, %v2227_v25 }
 0xc59   : > { %v2229_v18 = vsel %vm901_vm5, %v2228_v34, 0.0 }
 0xc5a   : > { %2230 = vadd.xlane.f32.xlu1 %v2229_v18 }
 0xc5e   : > { %1650 = vadd.xlane.f32.xlu1 %v1649_v37 }
 0xce7   : > { %v2231_v38 = vpop.xlane.xlu1 %2230 }
 0xce8   : > { %v2232_v40 = vmul.f32 0.03125, %v2231_v38 }
 0xcea   : > { %v2233_v42 = vsub.f32 %v2228_v34, %v2232_v40 }
 0xceb   : > { %v1651_v19 = vpop.xlane.xlu1 %1650 }
 0xcec   : > { %v1652_v45 = vmul.f32 0.03125, %v1651_v19  ;;  %v2234_v46 = vmul.f32 %v2233_v42, %v2233_v42 }
 0xcee   : > { %v1653_v47 = vsub.f32 %v1648_v36, %v1652_v45  ;;  %v2235_v48 = vsel %vm901_vm5, %v2234_v46, 0.0 }
 0xcef   : > { %2236 = vadd.xlane.f32.xlu0 %v2235_v48 }
 0xcf0   : > { %v1654_v3 = vmul.f32 %v1653_v47, %v1653_v47 }
 0xcf2   : > { %v1655_v44 = vsel %vm901_vm5, %v1654_v3, 0.0 }
 0xcf3   : > { %1656 = vadd.xlane.f32.xlu1 %v1655_v44 }
 0xd7c   : > { %v2237_v43 = vpop.xlane.xlu0 %2236 }
 0xd7d   : > { %v2238_v49 = vmul.f32 0.03125, %v2237_v43 }
 0xd7f   : > { %v2239_v50 = vadd.f32 1e-05, %v2238_v49 }
 0xd80   : > { %v1657_v51 = vpop.xlane.xlu1 %1656 }
 0xd81   : > { %2931 = vrsqrt.f32 %v2239_v50  ;;  %v1658_v52 = vmul.f32 0.03125, %v1657_v51 }
 0xd83   : > { %v1659_v53 = vadd.f32 1e-05, %v1658_v52 }
 0xd85   : > { %2933 = vrsqrt.f32 %v1659_v53 }
 0xd8b   : > { %v2932_v54 = vpop.eup %2931 }
 0xd8c   : > { %v2241_v55 = vmul.f32 %v2932_v54, %v2233_v42 }
 0xd8e   : > { %v2242_v24 = vmul.f32 %v3254_v39, %v2241_v55 }
 0xd8f   : > { %v2934_v57 = vpop.eup %2933 }
 0xd90   : > { %v1661_v59 = vmul.f32 %v2934_v57, %v1653_v47  ;;  %v2243_v61 = vadd.f32 %v3261_v41, %v2242_v24 }
 0xd92   : > { %v1668_v63 = vmul.f32 %v2584_v58, %v1661_v59  ;;  %2814 = vmatmul.mubr.msk.f32.vlgmr.msra.gmra.mrb[18].mxu0 %vm901_vm5, %v2243_v61 }
 0xd94   : > { %v1675_v0 = vadd.f32 %v2585_v62, %v1668_v63 }
 0xd96   : > { %1676 = vst.msk [vmem:[%s3429_s24] sm:$0xff] %vm901_vm5, %v1675_v0 }
 0xe65   : > { %v2313_v39 = vpop.f32.mrb[18].mxu0 }
 0xe66   : > { %v2314_v1 = vadd.f32 %v3295_v22, %v2313_v39  ;;  %v2815_v60 = vpop.f32.mrb[19].mxu0 }
 0xe68   : > { %v2317_v2 = vmax.f32 %v2314_v1, 0.0 }
 0xe6a   : > { %2833 = vmatmul.mubr.msk.f32.vlgmr.msra.gmra.mrb[14].mxu1 %vm1574_vm8, %v2317_v2 }
 0xf3d   : > { %v2387_v41 = vpop.f32.mrb[14].mxu1 }
 0xf3e   : > { %v2388_v4 = vadd.f32 %v2582_v21, %v2387_v41  ;;  %v2834_v5 = vpop.f32.mrb[15].mxu1 }
 0xf40   : > { %v2391_v6 = vadd.f32 %v2388_v4, %v2243_v61 }
 0xf42   : > { %v2392_v7 = vsel %vm901_vm5, %v2391_v6, 0.0 }
 0xf43   : > { %2393 = vadd.xlane.f32.xlu0 %v2392_v7 }
 0xfd0   : > { %v2394_v8 = vpop.xlane.xlu0 %2393 }
 0xfd1   : > { %v2395_v9 = vmul.f32 0.03125, %v2394_v8 }
 0xfd3   : > { %v2396_v10 = vsub.f32 %v2391_v6, %v2395_v9 }
 0xfd5   : > { %v2397_v11 = vmul.f32 %v2396_v10, %v2396_v10 }
 0xfd7   : > { %v2398_v12 = vsel %vm901_vm5, %v2397_v11, 0.0 }
 0xfd8   : > { %2399 = vadd.xlane.f32.xlu0 %v2398_v12 }
0x1065   : > { %v2400_v13 = vpop.xlane.xlu0 %2399 }
0x1066   : > { %v2401_v22 = vmul.f32 0.03125, %v2400_v13 }
0x1068   : > { %v2402_v14 = vadd.f32 1e-05, %v2401_v22 }
0x106a   : > { %2935 = vrsqrt.f32 %v2402_v14 }
0x1074   : > { %v2936_v15 = vpop.eup %2935 }
0x1075   : > { %v2404_v16 = vmul.f32 %v2936_v15, %v2396_v10 }
0x1077   : > { %v2405_v20 = vmul.f32 %v2584_v58, %v2404_v16 }
0x1079   : > { %v2406_v23 = vadd.f32 %v2585_v62, %v2405_v20 }
0x107b   : > { %2598 = vst.msk [vmem:[%s3429_s24 + $0x8] sm:$0xff] %vm901_vm5, %v2406_v23 }
0x107c PF: > { %s3435_s28 = sld [smem:[#allocation2_spill]] }
0x1082   : > { %s26_s21 = sadd.s32 1, %s3435_s28  }
0x1083   : > { %p23_p5 = scmp.ge.s32.totalorder %s26_s21, 4  }
0x1085   :  { %25 = sbr.rel (!%p23_p5) target bundleno = 7 (0x7), region = 151 }

// kernel: transformer_forward.3
= control target key start
LH: loop header
LB: loop body
LE: loop exit
PB: predicated region body
PF: predicated region fallthrough
CT: control target
= control target key end

     0   :  { %s5384_s28 = smov 0   ;;  %s5985_s0 = inlined_call_operand.vmem [shape: f32[2,6,1], index: 0, kind: input, shape index: {}]   ;;  %s5986_s1 = inlined_call_operand.vmem [shape: f32[2,8,32], index: 1, kind: input, shape index: {}]   ;;  %s5987_s2 = inlined_call_operand.vmem [shape: f32[1,32], index: 2, kind: input, shape index: {}]   ;;  %s5988_s3 = inlined_call_operand.vmem [shape: f32[1,32], index: 3, kind: input, shape index: {}]   ;;  %s5989_s4 = inlined_call_operand.vmem [shape: f32[32,1], index: 4, kind: input, shape index: {}]   ;;  %s5990_s5 = inlined_call_operand.<no memory space> [shape: f32[1,1], index: 5, kind: input, shape index: {}]   ;;  %s5991_s6 = inlined_call_operand.vmem [shape: f32[2,32,96], index: 6, kind: input, shape index: {}]   ;;  %s5992_s7 = inlined_call_operand.vmem [shape: f32[2,1,96], index: 7, kind: input, shape index: {}]   ;;  %s5993_s8 = inlined_call_operand.vmem [shape: f32[2,32,32], index: 8, kind: input, shape index: {}]   ;;  %s5994_s9 = inlined_call_operand.vmem [shape: f32[2,1,32], index: 9, kind: input, shape index: {}]   ;;  %s5995_s10 = inlined_call_operand.vmem [shape: f32[2,1,32], index: 10, kind: input, shape index: {}]   ;;  %s5996_s11 = inlined_call_operand.vmem [shape: f32[2,1,32], index: 11, kind: input, shape index: {}]   ;;  %s5997_s12 = inlined_call_operand.vmem [shape: f32[2,32,32], index: 12, kind: input, shape index: {}]   ;;  %s5998_s13 = inlined_call_operand.vmem [shape: f32[2,1,32], index: 13, kind: input, shape index: {}]   ;;  %s5999_s14 = inlined_call_operand.vmem [shape: f32[2,32,64], index: 14, kind: input, shape index: {}]   ;;  %s6000_s15 = inlined_call_operand.vmem [shape: f32[2,1,64], index: 15, kind: input, shape index: {}]   ;;  %s6001_s16 = inlined_call_operand.vmem [shape: f32[2,32,32], index: 16, kind: input, shape index: {}]   ;;  %s6002_s17 = inlined_call_operand.vmem [shape: f32[2,1,32], index: 17, kind: input, shape index: {}]   ;;  %s6003_s18 = inlined_call_operand.vmem [shape: f32[2,1,32], index: 18, kind: input, shape index: {}]   ;;  %s6004_s19 = inlined_call_operand.vmem [shape: f32[2,1,32], index: 19, kind: input, shape index: {}]   ;;  %s6005_s20 = inlined_call_operand.vmem [shape: f32[2,32,64], index: 20, kind: input, shape index: {}]   ;;  %s6006_s21 = inlined_call_operand.vmem [shape: f32[2,1,64], index: 21, kind: input, shape index: {}]   ;;  %s6007_s22 = inlined_call_operand.vmem [shape: f32[2,64,32], index: 22, kind: input, shape index: {}]   ;;  %s6008_s23 = inlined_call_operand.vmem [shape: f32[2,1,32], index: 23, kind: input, shape index: {}]   ;;  %s6009_s24 = inlined_call_operand.vmem [shape: f32[2,1,32], index: 24, kind: input, shape index: {}]   ;;  %s6010_s25 = inlined_call_operand.vmem [shape: f32[2,1,32], index: 25, kind: input, shape index: {}]   ;;  %s6011_s26 = inlined_call_operand.vmem [shape: f32[2,6,1], index: 26, kind: output, shape index: {}]  }
   0x1   :  { %6019 = sst [smem:[#allocation7_spill]] %s5985_s0 }
   0x2   :  { %6020 = sst [smem:[#allocation8_spill]] %s5986_s1 }
   0x3   :  { %6021 = sst [smem:[#allocation9_spill]] %s5987_s2 }
   0x4   :  { %6022 = sst [smem:[#allocation10_spill]] %s5988_s3 }
   0x5   :  { %6023 = sst [smem:[#allocation11_spill]] %s5989_s4 }
   0x6   :  { %6024 = sst [smem:[#allocation12_spill]] %s5990_s5 }
   0x7   :  { %6025 = sst [smem:[#allocation13_spill]] %s5991_s6 }
   0x8   :  { %6026 = sst [smem:[#allocation14_spill]] %s5992_s7  ;;  %s6040_s7 = sld [smem:[#allocation12_spill]] }
   0x9   :  { %6027 = sst [smem:[#allocation15_spill]] %s5993_s8 }
   0xa   :  { %6028 = sst [smem:[#allocation16_spill]] %s5994_s9 }
   0xb   :  { %6029 = sst [smem:[#allocation17_spill]] %s5995_s10 }
   0xc   :  { %6030 = sst [smem:[#allocation18_spill]] %s5997_s12 }
   0xd   :  { %6031 = sst [smem:[#allocation19_spill]] %s5999_s14 }
   0xe   :  { %6032 = sst [smem:[#allocation20_spill]] %s6001_s16  ;;  %v31_v0 = vstv %s6040_s7 }
   0xf   :  { %6033 = sst [smem:[#allocation21_spill]] %s6003_s18  ;;  %32 = vst [vmem:[#allocation3] sm:$0x1] %v31_v0 }
  0x10   :  { %6034 = sst [smem:[#allocation22_spill]] %s6004_s19 }
  0x11   :  { %6035 = sst [smem:[#allocation23_spill]] %s6005_s20 }
  0x12   :  { %6036 = sst [smem:[#allocation24_spill]] %s6008_s23 }
  0x13   :  { %6037 = sst [smem:[#allocation25_spill]] %s6009_s24 }
  0x14   :  { %6038 = sst [smem:[#allocation26_spill]] %s6010_s25 }
  0x15   :  { %6039 = sst [smem:[#allocation27_spill]] %s6011_s26 }
  0x16 LB: > { %6041 = sst [smem:[#allocation4_spill]] %s5228_s28  ;;  %s5390_s8 = sadd.s32 4294967295, %s5228_s28   ;;  %s5228_s28 = sphi %s5384_s28, %s38_s28  }
  0x17   : > { %6042 = sst [smem:[#allocation5_spill]] %s5390_s8  ;;  %p4526_p0 = scmp.ge.s32.totalorder %s5228_s28, 1 }
  0x18   : > { %p873_p1 = scmp.lt.s32.totalorder %s5228_s28, 3 }
  0x1a   : > { %p874_p2 = pnand %p4526_p0, %p873_p1 }
  0x1c   : > { %877 = sbr.rel (%p874_p2) target bundleno = 8629 (0x21b5), region = 124 }
  0x23   : > { %p1007_p3 = scmp.lt.s32.totalorder %s5390_s8, 1  ;;  %s6044_s6 = sld [smem:[#allocation13_spill]] }
  0x24   : > { %s6046_s7 = sld [smem:[#allocation15_spill]]  ;;  %s6049_s12 = sld [smem:[#allocation18_spill]] }
  0x25   : > { %s5396_s4 = scalar_select %p1007_p3, %s5390_s8, 1 }
  0x26   : > { %s6050_s14 = sld [smem:[#allocation19_spill]]  ;;  %s6051_s16 = sld [smem:[#allocation20_spill]] }
  0x27   : > { %s4617_s29 = sshll.u32 %s5396_s4, 5  ;;  %s6054_s20 = sld [smem:[#allocation23_spill]] }
  0x28   : > { %s6055_s26 = sld [smem:[#allocation24_spill]]  ;;  %s6056_s19 = sld [smem:[#allocation25_spill]] }
  0x29   : > { %s5406_s1 = scalar_lea.vmem %s6044_s6, %s4617_s29  ;;  %s6058_s10 = sld [smem:[#allocation5_spill]] }
  0x2a   : > { %6045 = sst [smem:[#allocation6_spill]] %s5406_s1  ;;  %s5411_s28 = scalar_lea.vmem %s6046_s7, %s4617_s29 }
  0x2b   : > { %s5428_s27 = scalar_lea.vmem %s6049_s12, %s4617_s29 }
  0x2c   : > { %s5437_s23 = scalar_lea.vmem %s6050_s14, %s4617_s29  ;;  %s5446_s30 = scalar_lea.vmem %s6051_s16, %s4617_s29 }
  0x2d   : > { %s5463_s9 = scalar_lea.vmem %s6054_s20, %s4617_s29  ;;  %s4623_s16 = sshll.u32 %s5396_s4, 6 }
  0x2e   : > { %s5473_s24 = scalar_lea.vmem %s6007_s22, %s4623_s16  ;;  %s1074_s25 = scalar_lea.vmem %s6055_s26, %s5396_s4 }
  0x2f   : > { %s1077_s14 = scalar_lea.vmem %s6056_s19, %s5396_s4  ;;  %s6057_s20 = sld [smem:[#allocation26_spill]] }
  0x30   : > { %p4541_p4 = scmp.ne.s32.totalorder %s6058_s10, 0 }
  0x31   : > { %s6059_s1 = sld [smem:[#allocation9_spill]] (!%p4541_p4)  ;;  %vm1098_vm0 = vcmask (!%p4541_p4), 1040384   ;;  %v5230_v2 = vmov (!%p4541_p4), 0.0   ;;  %s6060_s6 = sld [smem:[#allocation7_spill]] (!%p4541_p4)  ;;  %vm1094_vm1 = vcmask (!%p4541_p4), 7168   ;;  %vm5231_vm2 = vmmov (!%p4541_p4), 0  }
  0x32   : > { %1084 = sbr.rel (%p4541_p4) target bundleno = 272 (0x110), region = 128  ;;  %4752 = vmatprep.subr.mxu0 (!%p4541_p4), %v5230_v2  ;;  %4757 = vmatprep.subr.mxu1 (!%p4541_p4), %v5230_v2  ;;  %s6061_s3 = sld [smem:[#allocation10_spill]] (!%p4541_p4)  ;;  %vm1172_vm3 = vcmask (!%p4541_p4), 259072  }
  0x33   : > { %4754 = vmatprep.mubr.msk.f32.mxu0 (!%p4541_p4), %vm5231_vm2, %v5230_v2  ;;  %4759 = vmatprep.mubr.msk.f32.mxu1 (!%p4541_p4), %vm5231_vm2, %v5230_v2 }
  0x35   : > { %s1080_s18 = scalar_lea.vmem %s6057_s20, %s5396_s4 }
  0x37   : > { %v1085_v1 = vld [vmem:[%s6059_s1] sm:$0x1] (!%p4541_p4)  ;;  %v4545_v4 = vld [vmem:[%s6060_s6 + $0x8] sm:$0x3f] (!%p4541_p4) }
  0x38   : > { %v1087_v3 = vld [vmem:[%s6060_s6] sm:$0x3f] (!%p4541_p4)  ;;  %4753 = vmatpush3.msk.msra.mxu0 (!%p4541_p4), %vm1098_vm0, %v1085_v1  ;;  %4758 = vmatpush3.msk.msra.mxu1 (!%p4541_p4), %vm1098_vm0, %v1085_v1 }
  0x39   : > { %4755 = vmatmul.mubr.msk.f32.vlgmr.msra.gmra.mrb[0].mxu0 %vm1094_vm1, %v1087_v3  ;;  %4760 = vmatmul.mubr.msk.f32.vlgmr.msra.gmra.mrb[0].mxu1 %vm1094_vm1, %v4545_v4  ;;  %v4542_v5 = vld [vmem:[%s6061_s3] ss:$0 sm:$0xff] }
 0x10c   : > { %v1168_v6 = vpop.f32.mrb[0].mxu0  ;;  %v1245_v7 = vpop.f32.mrb[0].mxu1 }
 0x10d   : > { %v1169_v8 = vadd.f32 %v4542_v5, %v1168_v6  ;;  %v1246_v9 = vadd.f32 %v4542_v5, %v1245_v7  ;;  %v4756_v10 = vpop.f32.mrb[1].mxu0  ;;  %v4761_v11 = vpop.f32.mrb[1].mxu1 }
 0x10f   : > { %1173 = vst.msk [vmem:[#allocation2] sm:$0x3f] %vm1172_vm3, %v1169_v8  ;;  %1250 = vst.msk [vmem:[#allocation2 + $0x8] sm:$0x3f] %vm1172_vm3, %v1246_v9 }
 0x110 PF: > { %s6062_s7 = sld [smem:[#allocation6_spill]]  ;;  %v5232_v15 = vmov 0.0|0.0   ;;  %vm5233_vm4 = vmmov 0   ;;  %v5234_v18 = vmov 0.0   ;;  %vm1304_vm5 = vcmask 261120   ;;  %s6063_s0 = sld [smem:[#allocation14_spill]] }
 0x111   : > { %5046 = vmatprep.subr.bf16.mxu0 %v5232_v15  ;;  %4770 = vmatprep.mubr.msk.f32.mxu0 %vm5233_vm4, %v5234_v18  ;;  %s5235_s5 = smov 112   ;;  %s5236_s1 = smov 96   ;;  %vm1381_vm6 = vcmask 130048   ;;  %vm1456_vm7 = vcmask 46080   ;;  %vm1474_vm8 = vcmask 1045504   ;;  %vm1470_vm9 = vcmask 48128  }
 0x112   : > { %4778 = vmatprep.subr.mxu1 %v5234_v18  ;;  %4780 = vmatprep.mubr.msk.f32.mxu1 %vm5233_vm4, %v5234_v18  ;;  %s5237_s16 = smov 80   ;;  %s5238_s26 = smov 48   ;;  %v1256_v49 = vld [vmem:[%s5411_s28] sm:$0xff]  ;;  %v1257_v50 = vld [vmem:[%s5411_s28 + $0x8] sm:$0xff]  ;;  %v1258_v55 = vld [vmem:[%s5411_s28 + $0x10] sm:$0xff]  ;;  %vm1867_vm10 = vcmask 259072  }
 0x113   : > { %s5239_s12 = smov 64   ;;  %v5559_v53 = vpack.c.bf16 %v1257_v50, %v1256_v49  ;;  %v1259_v56 = vld [vmem:[%s5411_s28 + $0x18] sm:$0xff]  ;;  %s6065_s20 = sld [smem:[#allocation16_spill]]  ;;  %vm2130_vm11 = vcmask 62464   ;;  %vm2145_vm12 = vcmask 64512   ;;  %vm2651_vm13 = vcmask 523264  }
 0x114   : > { %v5569_v57 = vpack.c.bf16 %v1259_v56, %v1258_v55  ;;  %s6067_s8 = sld [smem:[#allocation8_spill]]  ;;  %s6068_s29 = sld [smem:[#allocation17_spill]] }
 0x115   : > { %s6070_s19 = scalar_lea.vmem %s5996_s11, %s5396_s4  ;;  %s6071_s3 = scalar_lea.vmem %s6000_s15, %s5396_s4 }
 0x116   : > { %v1251_v12 = vld [vmem:[%s6062_s7] sm:$0xff]  ;;  %v1252_v13 = vld [vmem:[%s6062_s7 + $0x8] sm:$0xff]  ;;  %v1253_v14 = vld [vmem:[%s6062_s7 + $0x10] sm:$0xff]  ;;  %s6064_s10 = scalar_lea.vmem %s6063_s0, %s5396_s4 }
 0x117   : > { %v5504_v16 = vpack.c.bf16 %v1252_v13, %v1251_v12  ;;  %v1254_v17 = vld [vmem:[%s6062_s7 + $0x18] sm:$0xff]  ;;  %v5517_v20 = vld [vmem:[#allocation2] sm:$0x3f]  ;;  %v1269_v13 = vld [vmem:[%s5437_s23 + $0x8] sm:$0xff] }
 0x118   : > { %v5513_v19 = vpack.c.bf16 %v1254_v17, %v1253_v14  ;;  %v5529_v21 = vld [vmem:[%s6064_s10] ss:$0 sm:$0xff]  ;;  %s6074_s10 = sld [smem:[#allocation21_spill]] }
 0x119   : > { %5048 = vmatpush3.bf16.msra.mxu0 %v5504_v16  ;;  %s6066_s2 = scalar_lea.vmem %s6065_s20, %s5396_s4  ;;  %v1268_v12 = vld [vmem:[%s5437_s23] sm:$0xff] }
 0x11a   : > { %5049 = vmatprep.subr.bf16.mxu0 %v5232_v15  ;;  %v5584_v0 = vld [vmem:[%s6066_s2] ss:$0 sm:$0xff]  ;;  %v5592_v14 = vpack.c.bf16 %v1269_v13, %v1268_v12  ;;  %s6069_s0 = scalar_lea.vmem %s6068_s29, %s5396_s4  ;;  %s6073_s29 = scalar_lea.vmem %s6002_s17, %s5396_s4 }
 0x11b   : > { %v1263_v17 = vld [vmem:[%s5428_s27] sm:$0xff]  ;;  %s6076_s2 = sld [smem:[#allocation22_spill]] }
 0x11c   : > { %v1273_v13 = vld [vmem:[%s5446_s30] sm:$0xff] }
 0x11d   : > { %5051 = vmatpush3.bf16.msra.mxu0 %v5513_v19 }
 0x11e   : > { %4773 = vmatprep.subr.mxu0 %v5234_v18  ;;  %s6075_s28 = scalar_lea.vmem %s6074_s10, %s5396_s4 }
 0x120   : > { %4771 = vmatmul.mubr.msk.f32.vlgmr.msra.gmra.mrb[0].mxu0 %vm1304_vm5, %v5517_v20 }
 0x121   : > { %4775 = vmatprep.mubr.msk.f32.mxu0 %vm5233_vm4, %v5234_v18 }
 0x1f3   : > { %v1374_v22 = vpop.f32.mrb[0].mxu0 }
 0x1f4   : > { %v1375_v23 = vadd.f32 %v5529_v21, %v1374_v22  ;;  %v4772_v24 = vpop.f32.mrb[1].mxu0  ;;  %v1270_v22 = vld [vmem:[%s5437_s23 + $0x10] sm:$0xff] }
 0x1f5   : > { %v1271_v24 = vld [vmem:[%s5437_s23 + $0x18] sm:$0xff] }
 0x1f6   : > { %1547 = vrot.lane.b32.xlu1 %v1375_v23, %s5235_s5  ;;  %1379 = vrot.lane.b32.xlu0 %v1375_v23, %s5236_s1 }
 0x1fa   : > { %1549 = vrot.lane.b32.xlu0 %v1375_v23, %s5237_s16 }
 0x268   : > { %v1380_v25 = vpop.permute.xlu0 %1379  ;;  %v1548_v27 = vpop.permute.xlu1 %1547 }
 0x269   : > { %4774 = vmatpush3.xpose.msk.msra.mxu0 %vm1381_vm6, %v1380_v25  ;;  %v5602_v25 = vpack.c.bf16 %v1271_v24, %v1270_v22 }
 0x26a   : > { %4783 = vmatprep.subr.mxu0 %v5234_v18 }
 0x26c   : > { %4776 = vmatmul.mubr.msk.f32.vlgmr.msra.gmra.mrb[2].mxu0 %vm1381_vm6, %v1375_v23  ;;  %v1550_v26 = vpop.permute.xlu0 %1549 }
 0x26d   : > { %4784 = vmatpush3.xpose.msk.msra.mxu0 %vm1381_vm6, %v1550_v26  ;;  %4785 = vmatprep.mubr.msk.f32.mxu0 %vm5233_vm4, %v5234_v18  ;;  %v1265_v26 = vld [vmem:[%s5428_s27 + $0x10] sm:$0xff] }
 0x26e   : > { %5052 = vmatprep.subr.bf16.mxu0 %v5232_v15 }
 0x270   : > { %4786 = vmatmul.mubr.msk.f32.vlgmr.msra.gmra.mrb[4].mxu0 %vm1381_vm6, %v1548_v27  ;;  %v1266_v27 = vld [vmem:[%s5428_s27 + $0x18] sm:$0xff] }
 0x271   : > { %4797 = vmatprep.mubr.msk.f32.mxu0 %vm5233_vm4, %v5234_v18  ;;  %5054 = vmatpush3.bf16.msra.mxu0 %v5569_v57 }
 0x272   : > { %5058 = vmatprep.subr.bf16.mxu0 %v5232_v15 }
 0x33f   : > { %v1452_v28 = vpop.f32.mrb[2].mxu0 }
 0x340   : > { %v4777_v29 = vpop.f32.mrb[3].mxu0  ;;  %v1457_v30 = vsel %vm1456_vm7, %v1452_v28, -inf }
 0x341   : > { %1458 = vmax.xlane.f32.xlu1 %v1457_v30  ;;  %v5612_v29 = vpack.c.bf16 %v1266_v27, %v1265_v26 }
 0x343   : > { %v1621_v31 = vpop.f32.mrb[4].mxu0 }
 0x344   : > { %v4787_v32 = vpop.f32.mrb[5].mxu0  ;;  %v1625_v33 = vsel %vm1456_vm7, %v1621_v31, -inf }
 0x345   : > { %1626 = vmax.xlane.f32.xlu0 %v1625_v33 }
 0x3ce   : > { %v1459_v34 = vpop.xlane.xlu1 %1458 }
 0x3cf   : > { %v1460_v35 = vsub.f32 %v1452_v28, %v1459_v34  ;;  %v1297_v28 = vld [vmem:[%s6067_s8] sm:$0xff] }
 0x3d0   : > { %v5625_v34 = vld [vmem:[%s6069_s0] ss:$0 sm:$0xff] }
 0x3d1   : > { %v1461_v36 = vmul.f32 1.442695, %v1460_v35 }
 0x3d2   : > { %v1627_v37 = vpop.xlane.xlu0 %1626 }
 0x3d3   : > { %5178 = vpow2.f32 %v1461_v36  ;;  %v1628_v38 = vsub.f32 %v1621_v31, %v1627_v37  ;;  %v5632_v36 = vld [vmem:[%s6070_s19] ss:$0 sm:$0xff]  ;;  %s6082_s19 = sld [smem:[#allocation5_spill]] }
 0x3d5   : > { %v1629_v39 = vmul.f32 1.442695, %v1628_v38 }
 0x3d7   : > { %5180 = vpow2.f32 %v1629_v39  ;;  %v5647_v39 = vld [vmem:[%s6071_s3] ss:$0 sm:$0xff]  ;;  %s6077_s3 = scalar_lea.vmem %s6076_s2, %s5396_s4 }
 0x3d9   : > { %p4584_p5 = scmp.ne.s32.totalorder %s6082_s19, 1 }
 0x3da   : > { %s6083_s2 = sld [smem:[#allocation11_spill]] (!%p4584_p5)  ;;  %vm5241_vm14 = vmmov (!%p4584_p5), 0   ;;  %vm2842_vm15 = vcmask (!%p4584_p5), 5120  }
 0x3db   : > { %s6084_s23 = sld [smem:[#allocation27_spill]] (!%p4584_p5) }
 0x3dd   : > { %v5179_v40 = vpop.eup %5178 }
 0x3de   : > { %v1463_v41 = vsel %vm1456_vm7, %v5179_v40, 0.0 }
 0x3df   : > { %1464 = vadd.xlane.f32.xlu0 %v1463_v41 }
 0x3e1   : > { %v5181_v42 = vpop.eup %5180 }
 0x3e2   : > { %v1631_v43 = vsel %vm1456_vm7, %v5181_v42, 0.0 }
 0x3e3   : > { %1632 = vadd.xlane.f32.xlu1 %v1631_v43 }
 0x3f4   : > { %1636 = vrot.lane.b32.xlu1 %v1375_v23, %s5238_s26 }
 0x3f5   : > { %1468 = vrot.lane.b32.xlu0 %v1375_v23, %s5239_s12 }
 0x46c   : > { %v1465_v44 = vpop.xlane.xlu0 %1464 }
 0x46d   : > { %5182 = vrcp.f32 %v1465_v44 }
 0x470   : > { %v1633_v45 = vpop.xlane.xlu1 %1632  ;;  %v1469_v46 = vpop.permute.xlu0 %1468 }
 0x471   : > { %5184 = vrcp.f32 %v1633_v45  ;;  %4779 = vmatpush3.msk.msra.mxu1 %vm1474_vm8, %v1469_v46 }
 0x472   : > { %4788 = vmatprep.subr.mxu1 %v5234_v18 }
 0x474   : > { %v1637_v51 = vpop.permute.xlu1 %1636 }
 0x477   : > { %v5183_v47 = vpop.eup %5182 }
 0x478   : > { %v1467_v48 = vmul.f32 %v5183_v47, %v5179_v40 }
 0x47a   : > { %4781 = vmatmul.mubr.msk.f32.vlgmr.msra.gmra.mrb[0].mxu1 %vm1470_vm9, %v1467_v48 }
 0x47b   : > { %v5185_v52 = vpop.eup %5184  ;;  %4789 = vmatpush3.msk.msra.mxu1 %vm1474_vm8, %v1637_v51  ;;  %4790 = vmatprep.mubr.msk.f32.mxu1 %vm5233_vm4, %v5234_v18 }
 0x47c   : > { %v1635_v54 = vmul.f32 %v5185_v52, %v5181_v42  ;;  %5055 = vmatprep.subr.bf16.mxu1 %v5232_v15 }
 0x47e   : > { %4791 = vmatmul.mubr.msk.f32.vlgmr.msra.gmra.mrb[2].mxu1 %vm1470_vm9, %v1635_v54 }
 0x47f   : > { %5057 = vmatpush3.bf16.msra.mxu1 %v5559_v53  ;;  %4804 = vmatprep.mubr.msk.f32.mxu1 %vm5233_vm4, %v5234_v18 }
 0x480   : > { %5064 = vmatprep.subr.bf16.mxu1 %v5232_v15 }
 0x54d   : > { %v1543_v58 = vpop.f32.mrb[0].mxu1 }
 0x54e   : > { %v4782_v59 = vpop.f32.mrb[1].mxu1  ;;  %4805 = vmatmul.mubr.msk.f32.vlgmr.msra.gmra.mrb[4].mxu1 %vm1381_vm6, %v1543_v58 }
 0x54f   : > { %4826 = vmatprep.mubr.msk.f32.mxu1 %vm5233_vm4, %v5234_v18  ;;  %5066 = vmatpush3.bf16.msra.mxu1 %v5592_v14 }
 0x550   : > { %5067 = vmatprep.subr.bf16.mxu1 %v5232_v15 }
 0x551   : > { %v1709_v60 = vpop.f32.mrb[2].mxu1 }
 0x552   : > { %v4792_v61 = vpop.f32.mrb[3].mxu1  ;;  %4798 = vmatmul.mubr.msk.f32.vlgmr.msra.gmra.mrb[6].mxu0 %vm1381_vm6, %v1709_v60 }
 0x553   : > { %4815 = vmatprep.mubr.msk.f32.mxu0 %vm5233_vm4, %v5234_v18  ;;  %5069 = vmatpush3.bf16.msra.mxu1 %v5602_v25 }
 0x554   : > { %4834 = vmatprep.subr.mxu1 %v5234_v18 }
 0x556   : > { %4827 = vmatmul.mubr.msk.f32.vlgmr.msra.gmra.mrb[6].mxu1 %vm1304_vm5, %v1297_v28 }
 0x557   : > { %4836 = vmatprep.mubr.msk.f32.mxu1 %vm5233_vm4, %v5234_v18 }
 0x621   : > { %v1855_v62 = vpop.f32.mrb[4].mxu1 }
 0x622   : > { %v4806_v63 = vpop.f32.mrb[5].mxu1 }
 0x625   : > { %v1782_v1 = vpop.f32.mrb[6].mxu0 }
 0x626   : > { %v1856_v2 = vadd.f32 %v1855_v62, %v1782_v1  ;;  %v4799_v3 = vpop.f32.mrb[7].mxu0 }
 0x628   : > { %v1865_v4 = vadd.f32 %v5584_v0, %v1856_v2 }
 0x629   : > { %v2050_v40 = vpop.f32.mrb[6].mxu1 }
 0x62a   : > { %v1866_v5 = vadd.f32 %v1865_v4, %v5517_v20  ;;  %v1264_v20 = vld [vmem:[%s5428_s27 + $0x8] sm:$0xff]  ;;  %v2051_v41 = vadd.f32 %v5647_v39, %v2050_v40  ;;  %v4828_v42 = vpop.f32.mrb[7].mxu1  ;;  %s6072_s27 = scalar_lea.vmem %s5998_s13, %s5396_s4 }
 0x62b   : > { %v5599_v23 = vpack.c.bf16 %v1264_v20, %v1263_v17  ;;  %v5658_v43 = vld [vmem:[%s6072_s27] ss:$0 sm:$0xff]  ;;  %v1274_v17 = vld [vmem:[%s5446_s30 + $0x8] sm:$0xff]  ;;  %s6078_s27 = scalar_lea.vmem %s6006_s21, %s5396_s4 }
 0x62c   : > { %v1868_v6 = vsel %vm1867_vm10, %v1866_v5, 0.0  ;;  %v5689_v22 = vpack.c.bf16 %v1274_v17, %v1273_v13  ;;  %v1291_v13 = vld [vmem:[%s5473_s24 + $0x30] sm:$0xff]  ;;  %v1292_v17 = vld [vmem:[%s5473_s24 + $0x38] sm:$0xff] }
 0x62d   : > { %1869 = vadd.xlane.f32.xlu1 %v1868_v6  ;;  %5060 = vmatpush3.bf16.msra.mxu0 %v5599_v23 }
 0x62e   : > { %5061 = vmatprep.subr.bf16.mxu0 %v5232_v15 }
 0x631   : > { %5063 = vmatpush3.bf16.msra.mxu0 %v5612_v29 }
 0x632   : > { %4829 = vmatprep.subr.mxu0 %v5234_v18 }
 0x6ba   : > { %v1870_v7 = vpop.xlane.xlu1 %1869 }
 0x6bb   : > { %v1872_v8 = vmul.f32 0.03125, %v1870_v7 }
 0x6bd   : > { %v1873_v9 = vsub.f32 %v1866_v5, %v1872_v8  ;;  %v1275_v8 = vld [vmem:[%s5446_s30 + $0x10] sm:$0xff] }
 0x6bf   : > { %v1874_v10 = vmul.f32 %v1873_v9, %v1873_v9 }
 0x6c1   : > { %v1875_v11 = vsel %vm1867_vm10, %v1874_v10, 0.0 }
 0x6c2   : > { %1876 = vadd.xlane.f32.xlu0 %v1875_v11 }
 0x6d8   : > { %2221 = vrot.lane.b32.xlu0 %v2051_v41, %s5235_s5 }
 0x74f   : > { %v1877_v30 = vpop.xlane.xlu0 %1876 }
 0x750   : > { %v1878_v31 = vmul.f32 0.03125, %v1877_v30 }
 0x752   : > { %v1879_v32 = vadd.f32 1e-05, %v1878_v31 }
 0x753   : > { %v2222_v47 = vpop.permute.xlu0 %2221 }
 0x754   : > { %5186 = vrsqrt.f32 %v1879_v32 }
 0x75e   : > { %v5187_v33 = vpop.eup %5186 }
 0x75f   : > { %v1881_v35 = vmul.f32 %v5187_v33, %v1873_v9  ;;  %v1276_v9 = vld [vmem:[%s5446_s30 + $0x18] sm:$0xff]  ;;  %v5707_v33 = vld [vmem:[%s6073_s29] ss:$0 sm:$0xff] }
 0x760   : > { %v5682_v10 = vpack.c.bf16 %v1276_v9, %v1275_v8  ;;  %v5754_v9 = vld [vmem:[%s6077_s3] ss:$0 sm:$0xff] }
 0x761   : > { %v1888_v37 = vmul.f32 %v5625_v34, %v1881_v35 }
 0x763   : > { %v5636_v38 = vadd.f32 %v5632_v36, %v1888_v37 }
 0x765   : > { %4816 = vmatmul.mubr.msk.f32.vlgmr.msra.gmra.mrb[8].mxu0 %vm1304_vm5, %v5636_v38 }
 0x766   : > { %4831 = vmatprep.mubr.msk.f32.mxu0 %vm5233_vm4, %v5234_v18  ;;  %4830 = vmatpush3.xpose.msk.msra.mxu0 %vm1381_vm6, %v2051_v41 }
 0x767   : > { %4839 = vmatprep.subr.mxu0 %v5234_v18 }
 0x838   : > { %v1971_v44 = vpop.f32.mrb[8].mxu0 }
 0x839   : > { %v1972_v45 = vadd.f32 %v5658_v43, %v1971_v44  ;;  %v4817_v46 = vpop.f32.mrb[9].mxu0 }
 0x83b   : > { %2219 = vrot.lane.b32.xlu1 %v1972_v45, %s5235_s5  ;;  %4832 = vmatmul.mubr.msk.f32.vlgmr.msra.gmra.mrb[10].mxu0 %vm1381_vm6, %v1972_v45 }
 0x83c   : > { %4840 = vmatpush3.xpose.msk.msra.mxu0 %vm1381_vm6, %v2222_v47  ;;  %4841 = vmatprep.mubr.msk.f32.mxu0 %vm5233_vm4, %v5234_v18 }
 0x83d   : > { %5070 = vmatprep.subr.bf16.mxu0 %v5232_v15 }
 0x8ad   : > { %v2220_v48 = vpop.permute.xlu1 %2219 }
 0x8ae   : > { %4842 = vmatmul.mubr.msk.f32.vlgmr.msra.gmra.mrb[12].mxu0 %vm1381_vm6, %v2220_v48 }
 0x8af   : > { %4853 = vmatprep.mubr.msk.f32.mxu0 %vm5233_vm4, %v5234_v18  ;;  %5072 = vmatpush3.bf16.msra.mxu0 %v5682_v10 }
 0x8b0   : > { %5076 = vmatprep.subr.bf16.mxu0 %v5232_v15 }
 0x90e   : > { %v2126_v49 = vpop.f32.mrb[10].mxu0 }
 0x90f   : > { %v4833_v50 = vpop.f32.mrb[11].mxu0  ;;  %v2131_v51 = vsel %vm2130_vm11, %v2126_v49, -inf }
 0x910   : > { %2132 = vmax.xlane.f32.xlu1 %v2131_v51  ;;  %v1280_v50 = vld [vmem:[%s5463_s9] sm:$0xff]  ;;  %v1281_v51 = vld [vmem:[%s5463_s9 + $0x8] sm:$0xff] }
 0x981   : > { %v2293_v52 = vpop.f32.mrb[12].mxu0 }
 0x982   : > { %v4843_v54 = vpop.f32.mrb[13].mxu0  ;;  %v2297_v55 = vsel %vm2130_vm11, %v2293_v52, -inf }
 0x983   : > { %2298 = vmax.xlane.f32.xlu0 %v2297_v55  ;;  %v1283_v54 = vld [vmem:[%s5463_s9 + $0x18] sm:$0xff] }
 0x99d   : > { %v2133_v56 = vpop.xlane.xlu1 %2132 }
 0x99e   : > { %v2134_v58 = vsub.f32 %v2126_v49, %v2133_v56  ;;  %v1285_v56 = vld [vmem:[%s5473_s24] sm:$0xff] }
 0x9a0   : > { %v2135_v59 = vmul.f32 1.442695, %v2134_v58  ;;  %v1286_v58 = vld [vmem:[%s5473_s24 + $0x8] sm:$0xff] }
 0x9a2   : > { %5188 = vpow2.f32 %v2135_v59  ;;  %v1287_v59 = vld [vmem:[%s5473_s24 + $0x10] sm:$0xff] }
 0x9ac   : > { %v5189_v60 = vpop.eup %5188 }
 0x9ad   : > { %v2137_v61 = vsel %vm2130_vm11, %v5189_v60, 0.0 }
 0x9ae   : > { %2138 = vadd.xlane.f32.xlu0 %v2137_v61  ;;  %v1288_v61 = vld [vmem:[%s5473_s24 + $0x18] sm:$0xff] }
 0x9c4   : > { %2142 = vrot.lane.b32.xlu0 %v2051_v41, %s5236_s1 }
 0xa10   : > { %v2299_v62 = vpop.xlane.xlu0 %2298 }
 0xa11   : > { %v2300_v63 = vsub.f32 %v2293_v52, %v2299_v62  ;;  %v5715_v52 = vpack.c.bf16 %v1281_v51, %v1280_v50  ;;  %v5731_v62 = vpack.c.bf16 %v1288_v61, %v1287_v59  ;;  %v2758_v61 = vld [vmem:[%s6083_s2] sm:$0xff] (!%p4584_p5) }
 0xa13   : > { %v2301_v1 = vmul.f32 1.442695, %v2300_v63  ;;  %v1289_v63 = vld [vmem:[%s5473_s24 + $0x20] sm:$0xff] }
 0xa15   : > { %5190 = vpow2.f32 %v2301_v1  ;;  %v1290_v1 = vld [vmem:[%s5473_s24 + $0x28] sm:$0xff] }
 0xa1f   : > { %v5191_v2 = vpop.eup %5190 }
 0xa20   : > { %v2303_v3 = vsel %vm2130_vm11, %v5191_v2, 0.0 }
 0xa21   : > { %2304 = vadd.xlane.f32.xlu1 %v2303_v3 }
 0xa32   : > { %2308 = vrot.lane.b32.xlu1 %v2051_v41, %s5237_s16 }
 0xa3b   : > { %v2139_v4 = vpop.xlane.xlu0 %2138 }
 0xa3c   : > { %5192 = vrcp.f32 %v2139_v4 }
 0xa3f   : > { %v2143_v5 = vpop.permute.xlu0 %2142 }
 0xa40   : > { %4835 = vmatpush3.msra.mxu1 %v2143_v5 }
 0xa41   : > { %4844 = vmatprep.subr.mxu1 %v5234_v18 }
 0xa46   : > { %v5193_v6 = vpop.eup %5192 }
 0xa47   : > { %v2141_v7 = vmul.f32 %v5193_v6, %v5189_v60  ;;  %v5727_v60 = vpack.c.bf16 %v1286_v58, %v1285_v56  ;;  %v5795_v56 = vld [vmem:[%s1080_s18] ss:$0 sm:$0xff] }
 0xa49   : > { %4837 = vmatmul.mubr.msk.f32.vlgmr.msra.gmra.mrb[8].mxu1 %vm2145_vm12, %v2141_v7  ;;  %v5747_v7 = vld [vmem:[%s6075_s28] ss:$0 sm:$0xff] }
 0xa4a   : > { %4846 = vmatprep.mubr.msk.f32.mxu1 %vm5233_vm4, %v5234_v18 }
 0xaae   : > { %v2305_v11 = vpop.xlane.xlu1 %2304 }
 0xaaf   : > { %5194 = vrcp.f32 %v2305_v11 }
 0xab2   : > { %v2309_v12 = vpop.permute.xlu1 %2308 }
 0xab3   : > { %4845 = vmatpush3.msra.mxu1 %v2309_v12 }
 0xab4   : > { %5073 = vmatprep.subr.bf16.mxu1 %v5232_v15 }
 0xab9   : > { %v5195_v20 = vpop.eup %5194 }
 0xaba   : > { %v2307_v24 = vmul.f32 %v5195_v20, %v5191_v2  ;;  %v5737_v2 = vpack.c.bf16 %v1290_v1, %v1289_v63  ;;  %v5761_v20 = vpack.c.bf16 %v1292_v17, %v1291_v13  ;;  %v2759_v63 = vld [vmem:[%s6083_s2 + $0x8] sm:$0xff] (!%p4584_p5)  ;;  %v2760_v1 = vld [vmem:[%s6083_s2 + $0x10] sm:$0xff] (!%p4584_p5) }
 0xabc   : > { %4847 = vmatmul.mubr.msk.f32.vlgmr.msra.gmra.mrb[10].mxu1 %vm2145_vm12, %v2307_v24  ;;  %v5769_v24 = vld [vmem:[%s6078_s27] ss:$0 sm:$0xff] }
 0xabd   : > { %5075 = vmatpush3.bf16.msra.mxu1 %v5689_v22  ;;  %4860 = vmatprep.mubr.msk.f32.mxu1 %vm5233_vm4, %v5234_v18 }
 0xabe   : > { %5082 = vmatprep.subr.bf16.mxu1 %v5232_v15 }
 0xb1c   : > { %v2215_v26 = vpop.f32.mrb[8].mxu1 }
 0xb1d   : > { %v4838_v27 = vpop.f32.mrb[9].mxu1  ;;  %4861 = vmatmul.mubr.msk.f32.vlgmr.msra.gmra.mrb[12].mxu1 %vm1381_vm6, %v2215_v26 }
 0xb1e   : > { %4890 = vmatprep.mubr.msk.f32.mxu1 %vm5233_vm4, %v5234_v18  ;;  %5084 = vmatpush3.bf16.msra.mxu1 %v5727_v60 }
 0xb1f   : > { %5085 = vmatprep.subr.bf16.mxu1 %v5232_v15 }
 0xb22   : > { %5087 = vmatpush3.bf16.msra.mxu1 %v5731_v62 }
 0xb23   : > { %5088 = vmatprep.subr.bf16.mxu1 %v5232_v15 }
 0xb26   : > { %5090 = vmatpush3.bf16.msra.mxu1 %v5737_v2 }
 0xb27   : > { %5091 = vmatprep.subr.bf16.mxu1 %v5232_v15 }
 0xb2a   : > { %5093 = vmatpush3.bf16.msra.mxu1 %v5761_v20 }
 0xb8f   : > { %v2380_v28 = vpop.f32.mrb[10].mxu1 }
 0xb90   : > { %v4848_v30 = vpop.f32.mrb[11].mxu1  ;;  %4854 = vmatmul.mubr.msk.f32.vlgmr.msra.gmra.mrb[14].mxu0 %vm1381_vm6, %v2380_v28 }
 0xb91   : > { %4871 = vmatprep.mubr.msk.f32.mxu0 %vm5233_vm4, %v5234_v18  ;;  %5078 = vmatpush3.bf16.msra.mxu0 %v5715_v52 }
 0xb92   : > { %5079 = vmatprep.subr.bf16.mxu0 %v5232_v15 }
 0xbf0   : > { %v2526_v31 = vpop.f32.mrb[12].mxu1 }
 0xbf1   : > { %v4862_v32 = vpop.f32.mrb[13].mxu1 }
 0xc63   : > { %v2453_v35 = vpop.f32.mrb[14].mxu0 }
 0xc64   : > { %v2527_v37 = vadd.f32 %v2526_v31, %v2453_v35  ;;  %v4855_v40 = vpop.f32.mrb[15].mxu0  ;;  %v5778_v31 = vld [vmem:[%s1074_s25] ss:$0 sm:$0xff] }
 0xc66   : > { %v2536_v41 = vadd.f32 %v5707_v33, %v2527_v37 }
 0xc68   : > { %v2537_v42 = vadd.f32 %v2536_v41, %v5636_v38  ;;  %v1282_v38 = vld [vmem:[%s5463_s9 + $0x10] sm:$0xff] }
 0xc69   : > { %v5721_v55 = vpack.c.bf16 %v1283_v54, %v1282_v38  ;;  %v5788_v38 = vld [vmem:[%s1077_s14] ss:$0 sm:$0xff] }
 0xc6a   : > { %v2538_v44 = vsel %vm1867_vm10, %v2537_v42, 0.0 }
 0xc6b   : > { %2539 = vadd.xlane.f32.xlu1 %v2538_v44  ;;  %5081 = vmatpush3.bf16.msra.mxu0 %v5721_v55 }
 0xcf8   : > { %v2540_v45 = vpop.xlane.xlu1 %2539 }
 0xcf9   : > { %v2541_v46 = vmul.f32 0.03125, %v2540_v45 }
 0xcfb   : > { %v2542_v47 = vsub.f32 %v2537_v42, %v2541_v46 }
 0xcfd   : > { %v2543_v48 = vmul.f32 %v2542_v47, %v2542_v47 }
 0xcff   : > { %v2544_v49 = vsel %vm1867_vm10, %v2543_v48, 0.0 }
 0xd00   : > { %2545 = vadd.xlane.f32.xlu0 %v2544_v49 }
 0xd8d   : > { %v2546_v3 = vpop.xlane.xlu0 %2545 }
 0xd8e   : > { %v2547_v4 = vmul.f32 0.03125, %v2546_v3  ;;  %v5240_v3 = vmov (!%p4584_p5), 0.0|0.0  }
 0xd8f   : > { %5094 = vmatprep.subr.bf16.mxu0 (!%p4584_p5), %v5240_v3 }
 0xd90   : > { %v2548_v5 = vadd.f32 1e-05, %v2547_v4  ;;  %v5095_v4 = vpack.c.bf16 (!%p4584_p5), %v2759_v63, %v2758_v61 }
 0xd92   : > { %5196 = vrsqrt.f32 %v2548_v5  ;;  %v2761_v5 = vld [vmem:[%s6083_s2 + $0x18] sm:$0xff] (!%p4584_p5) }
 0xd9c   : > { %v5197_v6 = vpop.eup %5196 }
 0xd9d   : > { %v2550_v8 = vmul.f32 %v5197_v6, %v2542_v47  ;;  %v5242_v6 = vmov (!%p4584_p5), 0.0  }
 0xd9f   : > { %v2557_v11 = vmul.f32 %v5747_v7, %v2550_v8  ;;  %v5098_v8 = vpack.c.bf16 (!%p4584_p5), %v2761_v5, %v2760_v1 }
 0xda1   : > { %v2564_v12 = vadd.f32 %v5754_v9, %v2557_v11  ;;  %v4585_v11 = vld [vmem:[#allocation3] ss:$0 sm:$0xff] (!%p4584_p5) }
 0xda3   : > { %4872 = vmatmul.mubr.msk.f32.vlgmr.msra.gmra.mrb[16].mxu0 %vm1304_vm5, %v2564_v12 }
 0xda4   : > { %4901 = vmatprep.mubr.msk.f32.mxu0 (!%p4584_p5), %vm5241_vm14, %v5242_v6  ;;  %5096 = vmatpush3.bf16.msra.mxu0 (!%p4584_p5), %v5095_v4 }
 0xda5   : > { %5097 = vmatprep.subr.bf16.mxu0 (!%p4584_p5), %v5240_v3 }
 0xda8   : > { %5099 = vmatpush3.bf16.msra.mxu0 (!%p4584_p5), %v5098_v8 }
 0xe76   : > { %v2640_v26 = vpop.f32.mrb[16].mxu0 }
 0xe77   : > { %v2641_v27 = vadd.f32 %v5769_v24, %v2640_v26  ;;  %v4873_v28 = vpop.f32.mrb[17].mxu0 }
 0xe79   : > { %v2644_v30 = vmax.f32 %v2641_v27, 0.0 }
 0xe7b   : > { %4891 = vmatmul.mubr.msk.f32.vlgmr.msra.gmra.mrb[14].mxu1 %vm2651_vm13, %v2644_v30 }
 0xf4e   : > { %v2721_v32 = vpop.f32.mrb[14].mxu1 }
 0xf4f   : > { %v2722_v35 = vadd.f32 %v5778_v31, %v2721_v32  ;;  %v4892_v37 = vpop.f32.mrb[15].mxu1 }
 0xf51   : > { %v2725_v40 = vadd.f32 %v2722_v35, %v2564_v12 }
 0xf53   : > { %v2726_v41 = vsel %vm1867_vm10, %v2725_v40, 0.0 }
 0xf54   : > { %2727 = vadd.xlane.f32.xlu0 %v2726_v41 }
 0xfe1   : > { %v2728_v42 = vpop.xlane.xlu0 %2727 }
 0xfe2   : > { %v2729_v44 = vmul.f32 0.03125, %v2728_v42 }
 0xfe4   : > { %v2730_v45 = vsub.f32 %v2725_v40, %v2729_v44 }
 0xfe6   : > { %v2731_v46 = vmul.f32 %v2730_v45, %v2730_v45 }
 0xfe8   : > { %v2732_v47 = vsel %vm1867_vm10, %v2731_v46, 0.0 }
 0xfe9   : > { %2733 = vadd.xlane.f32.xlu1 %v2732_v47 }
0x1076   : > { %v2734_v48 = vpop.xlane.xlu1 %2733 }
0x1077   : > { %v2735_v49 = vmul.f32 0.03125, %v2734_v48 }
0x1079   : > { %v2736_v50 = vadd.f32 1e-05, %v2735_v49 }
0x107b   : > { %5198 = vrsqrt.f32 %v2736_v50 }
0x1085   : > { %v5199_v51 = vpop.eup %5198 }
0x1086   : > { %v2738_v54 = vmul.f32 %v5199_v51, %v2730_v45  ;;  %2757 = sbr.rel (%p4584_p5) target bundleno = 4451 (0x1163), region = 132 }
0x1088   : > { %v2745_v58 = vmul.f32 %v5788_v38, %v2738_v54 }
0x108a   : > { %v2752_v59 = vadd.f32 %v5795_v56, %v2745_v58 }
0x108c   : > { %2753 = vst.msk [vmem:[#allocation2] sm:$0x3f] %vm1867_vm10, %v2752_v59  ;;  %4902 = vmatmul.mubr.msk.f32.vlgmr.msra.gmra.mrb[0].mxu0 (!%p4584_p5), %vm1304_vm5, %v2752_v59 }
0x115f   : > { %v2838_v12 = vpop.f32.mrb[0].mxu0 }
0x1160   : > { %v2839_v13 = vadd.f32 %v4585_v11, %v2838_v12  ;;  %v4903_v17 = vpop.f32.mrb[1].mxu0 }
0x1162   : > { %2843 = vst.msk [vmem:[%s6084_s23] sm:$0x3f] %vm2842_vm15, %v2839_v13 }
0x1163 PF: > { %5100 = vmatprep.subr.bf16.mxu0 %v5232_v15  ;;  %4912 = vmatprep.mubr.msk.f32.mxu0 %vm5233_vm4, %v5234_v18  ;;  %v5828_v26 = vld [vmem:[#allocation2 + $0x8] sm:$0x3f]  ;;  %s6085_s25 = sld [smem:[#allocation8_spill]]  ;;  %s6087_s29 = sld [smem:[#allocation11_spill]] (!%p4584_p5)  ;;  %vm5244_vm0 = vmmov (!%p4584_p5), 0   ;;  %vm4304_vm1 = vcmask (!%p4584_p5), 5120  }
0x1164   : > { %5102 = vmatpush3.bf16.msra.mxu0 %v5504_v16  ;;  %4920 = vmatprep.subr.mxu1 %v5234_v18  ;;  %s6088_s3 = sld [smem:[#allocation27_spill]] (!%p4584_p5) }
0x1165   : > { %5103 = vmatprep.subr.bf16.mxu0 %v5232_v15  ;;  %4922 = vmatprep.mubr.msk.f32.mxu1 %vm5233_vm4, %v5234_v18 }
0x1168   : > { %5105 = vmatpush3.bf16.msra.mxu0 %v5513_v19 }
0x1169   : > { %4915 = vmatprep.subr.mxu0 %v5234_v18 }
0x116b   : > { %4913 = vmatmul.mubr.msk.f32.vlgmr.msra.gmra.mrb[0].mxu0 %vm1304_vm5, %v5828_v26 }
0x116c   : > { %4917 = vmatprep.mubr.msk.f32.mxu0 %vm5233_vm4, %v5234_v18 }
0x123e   : > { %v2917_v16 = vpop.f32.mrb[0].mxu0 }
0x123f   : > { %v2918_v27 = vadd.f32 %v5529_v21, %v2917_v16  ;;  %v4914_v28 = vpop.f32.mrb[1].mxu0 }
0x1241   : > { %3086 = vrot.lane.b32.xlu1 %v2918_v27, %s5235_s5  ;;  %2922 = vrot.lane.b32.xlu0 %v2918_v27, %s5236_s1 }
0x1245   : > { %3088 = vrot.lane.b32.xlu0 %v2918_v27, %s5237_s16 }
0x12b3   : > { %v2923_v19 = vpop.permute.xlu0 %2922  ;;  %v3087_v21 = vpop.permute.xlu1 %3086 }
0x12b4   : > { %4916 = vmatpush3.xpose.msk.msra.mxu0 %vm1381_vm6, %v2923_v19 }
0x12b5   : > { %4925 = vmatprep.subr.mxu0 %v5234_v18 }
0x12b7   : > { %4918 = vmatmul.mubr.msk.f32.vlgmr.msra.gmra.mrb[2].mxu0 %vm1381_vm6, %v2918_v27  ;;  %v3089_v30 = vpop.permute.xlu0 %3088 }
0x12b8   : > { %4926 = vmatpush3.xpose.msk.msra.mxu0 %vm1381_vm6, %v3089_v30  ;;  %4927 = vmatprep.mubr.msk.f32.mxu0 %vm5233_vm4, %v5234_v18 }
0x12b9   : > { %5106 = vmatprep.subr.bf16.mxu0 %v5232_v15 }
0x12bb   : > { %4928 = vmatmul.mubr.msk.f32.vlgmr.msra.gmra.mrb[4].mxu0 %vm1381_vm6, %v3087_v21 }
0x12bc   : > { %5108 = vmatpush3.bf16.msra.mxu0 %v5569_v57  ;;  %4939 = vmatprep.mubr.msk.f32.mxu0 %vm5233_vm4, %v5234_v18 }
0x12bd   : > { %5112 = vmatprep.subr.bf16.mxu0 %v5232_v15 }
0x138a   : > { %v2994_v32 = vpop.f32.mrb[2].mxu0 }
0x138b   : > { %v4919_v35 = vpop.f32.mrb[3].mxu0  ;;  %v2998_v37 = vsel %vm1456_vm7, %v2994_v32, -inf }
0x138c   : > { %2999 = vmax.xlane.f32.xlu1 %v2998_v37 }
0x138e   : > { %v3160_v40 = vpop.f32.mrb[4].mxu0 }
0x138f   : > { %v4929_v41 = vpop.f32.mrb[5].mxu0  ;;  %v3164_v42 = vsel %vm1456_vm7, %v3160_v40, -inf }
0x1390   : > { %3165 = vmax.xlane.f32.xlu0 %v3164_v42 }
0x1419   : > { %v3000_v44 = vpop.xlane.xlu1 %2999 }
0x141a   : > { %v3001_v45 = vsub.f32 %v2994_v32, %v3000_v44  ;;  %v4587_v32 = vld [vmem:[%s6085_s25 + $0x8] sm:$0xff] }
0x141c   : > { %v3002_v46 = vmul.f32 1.442695, %v3001_v45 }
0x141d   : > { %v3166_v47 = vpop.xlane.xlu0 %3165 }
0x141e   : > { %5200 = vpow2.f32 %v3002_v46  ;;  %v3167_v57 = vsub.f32 %v3160_v40, %v3166_v47 }
0x1420   : > { %v3168_v48 = vmul.f32 1.442695, %v3167_v57 }
0x1422   : > { %5202 = vpow2.f32 %v3168_v48 }
0x1428   : > { %v5201_v49 = vpop.eup %5200 }
0x1429   : > { %v3004_v50 = vsel %vm1456_vm7, %v5201_v49, 0.0 }
0x142a   : > { %3005 = vadd.xlane.f32.xlu0 %v3004_v50 }
0x142c   : > { %v5203_v51 = vpop.eup %5202 }
0x142d   : > { %v3170_v54 = vsel %vm1456_vm7, %v5203_v51, 0.0 }
0x142e   : > { %3171 = vadd.xlane.f32.xlu1 %v3170_v54 }
0x143f   : > { %3175 = vrot.lane.b32.xlu1 %v2918_v27, %s5238_s26 }
0x1440   : > { %3009 = vrot.lane.b32.xlu0 %v2918_v27, %s5239_s12 }
0x14b7   : > { %v3006_v58 = vpop.xlane.xlu0 %3005 }
0x14b8   : > { %5204 = vrcp.f32 %v3006_v58 }
0x14bb   : > { %v3172_v59 = vpop.xlane.xlu1 %3171  ;;  %v3010_v61 = vpop.permute.xlu0 %3009 }
0x14bc   : > { %5206 = vrcp.f32 %v3172_v59  ;;  %4921 = vmatpush3.msk.msra.mxu1 %vm1474_vm8, %v3010_v61 }
0x14bd   : > { %4930 = vmatprep.subr.mxu1 %v5234_v18 }
0x14bf   : > { %v3176_v3 = vpop.permute.xlu1 %3175 }
0x14c2   : > { %v5205_v63 = vpop.eup %5204 }
0x14c3   : > { %v3008_v1 = vmul.f32 %v5205_v63, %v5201_v49 }
0x14c5   : > { %4923 = vmatmul.mubr.msk.f32.vlgmr.msra.gmra.mrb[0].mxu1 %vm1470_vm9, %v3008_v1 }
0x14c6   : > { %v5207_v4 = vpop.eup %5206  ;;  %4931 = vmatpush3.msk.msra.mxu1 %vm1474_vm8, %v3176_v3  ;;  %4932 = vmatprep.mubr.msk.f32.mxu1 %vm5233_vm4, %v5234_v18 }
0x14c7   : > { %v3174_v5 = vmul.f32 %v5207_v4, %v5203_v51  ;;  %5109 = vmatprep.subr.bf16.mxu1 %v5232_v15 }
0x14c9   : > { %4933 = vmatmul.mubr.msk.f32.vlgmr.msra.gmra.mrb[2].mxu1 %vm1470_vm9, %v3174_v5 }
0x14ca   : > { %5111 = vmatpush3.bf16.msra.mxu1 %v5559_v53  ;;  %4946 = vmatprep.mubr.msk.f32.mxu1 %vm5233_vm4, %v5234_v18 }
0x14cb   : > { %5118 = vmatprep.subr.bf16.mxu1 %v5232_v15 }
0x1598   : > { %v3082_v6 = vpop.f32.mrb[0].mxu1 }
0x1599   : > { %v4924_v8 = vpop.f32.mrb[1].mxu1  ;;  %4947 = vmatmul.mubr.msk.f32.vlgmr.msra.gmra.mrb[4].mxu1 %vm1381_vm6, %v3082_v6 }
0x159a   : > { %5120 = vmatpush3.bf16.msra.mxu1 %v5592_v14  ;;  %4968 = vmatprep.mubr.msk.f32.mxu1 %vm5233_vm4, %v5234_v18 }
0x159b   : > { %5121 = vmatprep.subr.bf16.mxu1 %v5232_v15 }
0x159c   : > { %v3248_v11 = vpop.f32.mrb[2].mxu1 }
0x159d   : > { %v4934_v12 = vpop.f32.mrb[3].mxu1  ;;  %4940 = vmatmul.mubr.msk.f32.vlgmr.msra.gmra.mrb[6].mxu0 %vm1381_vm6, %v3248_v11 }
0x159e   : > { %5114 = vmatpush3.bf16.msra.mxu0 %v5599_v23  ;;  %5123 = vmatpush3.bf16.msra.mxu1 %v5602_v25 }
0x159f   : > { %5115 = vmatprep.subr.bf16.mxu0 %v5232_v15  ;;  %4957 = vmatprep.mubr.msk.f32.mxu0 %vm5233_vm4, %v5234_v18 }
0x15a0   : > { %4976 = vmatprep.subr.mxu1 %v5234_v18 }
0x15a1   : > { %4969 = vmatmul.mubr.msk.f32.vlgmr.msra.gmra.mrb[6].mxu1 %vm1304_vm5, %v4587_v32 }
0x15a2   : > { %5117 = vmatpush3.bf16.msra.mxu0 %v5612_v29  ;;  %4978 = vmatprep.mubr.msk.f32.mxu1 %vm5233_vm4, %v5234_v18 }
0x15a3   : > { %4971 = vmatprep.subr.mxu0 %v5234_v18 }
0x166c   : > { %v3394_v53 = vpop.f32.mrb[4].mxu1 }
0x166d   : > { %v4948_v14 = vpop.f32.mrb[5].mxu1 }
0x1670   : > { %v3321_v13 = vpop.f32.mrb[6].mxu0 }
0x1671   : > { %v3395_v17 = vadd.f32 %v3394_v53, %v3321_v13  ;;  %v4941_v16 = vpop.f32.mrb[7].mxu0 }
0x1673   : > { %v3398_v23 = vadd.f32 %v5584_v0, %v3395_v17 }
0x1674   : > { %v3557_v44 = vpop.f32.mrb[6].mxu1 }
0x1675   : > { %v3399_v25 = vadd.f32 %v3398_v23, %v5828_v26  ;;  %v3558_v45 = vadd.f32 %v5647_v39, %v3557_v44  ;;  %v4970_v46 = vpop.f32.mrb[7].mxu1 }
0x1677   : > { %v3400_v27 = vsel %vm1867_vm10, %v3399_v25, 0.0 }
0x1678   : > { %3401 = vadd.xlane.f32.xlu1 %v3400_v27 }
0x1705   : > { %v3402_v28 = vpop.xlane.xlu1 %3401 }
0x1706   : > { %v3403_v19 = vmul.f32 0.03125, %v3402_v28 }
0x1708   : > { %v3404_v30 = vsub.f32 %v3399_v25, %v3403_v19 }
0x170a   : > { %v3405_v21 = vmul.f32 %v3404_v30, %v3404_v30 }
0x170c   : > { %v3406_v29 = vsel %vm1867_vm10, %v3405_v21, 0.0 }
0x170d   : > { %3407 = vadd.xlane.f32.xlu0 %v3406_v29 }
0x1723   : > { %3726 = vrot.lane.b32.xlu0 %v3558_v45, %s5235_s5 }
0x179a   : > { %v3408_v0 = vpop.xlane.xlu0 %3407 }
0x179b   : > { %v3409_v26 = vmul.f32 0.03125, %v3408_v0 }
0x179d   : > { %v3410_v35 = vadd.f32 1e-05, %v3409_v26 }
0x179e   : > { %v3727_v57 = vpop.permute.xlu0 %3726 }
0x179f   : > { %5208 = vrsqrt.f32 %v3410_v35 }
0x17a9   : > { %v5209_v37 = vpop.eup %5208 }
0x17aa   : > { %v3412_v40 = vmul.f32 %v5209_v37, %v3404_v30 }
0x17ac   : > { %v3413_v41 = vmul.f32 %v5625_v34, %v3412_v40 }
0x17ae   : > { %v5895_v42 = vadd.f32 %v5632_v36, %v3413_v41 }
0x17b0   : > { %4958 = vmatmul.mubr.msk.f32.vlgmr.msra.gmra.mrb[8].mxu0 %vm1304_vm5, %v5895_v42 }
0x17b1   : > { %4973 = vmatprep.mubr.msk.f32.mxu0 %vm5233_vm4, %v5234_v18  ;;  %4972 = vmatpush3.xpose.msk.msra.mxu0 %vm1381_vm6, %v3558_v45 }
0x17b2   : > { %4981 = vmatprep.subr.mxu0 %v5234_v18 }
0x1883   : > { %v3484_v34 = vpop.f32.mrb[8].mxu0 }
0x1884   : > { %v3485_v36 = vadd.f32 %v5658_v43, %v3484_v34  ;;  %v4959_v47 = vpop.f32.mrb[9].mxu0 }
0x1886   : > { %3724 = vrot.lane.b32.xlu1 %v3485_v36, %s5235_s5  ;;  %4974 = vmatmul.mubr.msk.f32.vlgmr.msra.gmra.mrb[10].mxu0 %vm1381_vm6, %v3485_v36 }
0x1887   : > { %4982 = vmatpush3.xpose.msk.msra.mxu0 %vm1381_vm6, %v3727_v57  ;;  %4983 = vmatprep.mubr.msk.f32.mxu0 %vm5233_vm4, %v5234_v18 }
0x1888   : > { %5124 = vmatprep.subr.bf16.mxu0 %v5232_v15 }
0x18f8   : > { %v3725_v39 = vpop.permute.xlu1 %3724 }
0x18f9   : > { %4984 = vmatmul.mubr.msk.f32.vlgmr.msra.gmra.mrb[12].mxu0 %vm1381_vm6, %v3725_v39 }
0x18fa   : > { %5126 = vmatpush3.bf16.msra.mxu0 %v5682_v10  ;;  %4995 = vmatprep.mubr.msk.f32.mxu0 %vm5233_vm4, %v5234_v18 }
0x18fb   : > { %5130 = vmatprep.subr.bf16.mxu0 %v5232_v15 }
0x1959   : > { %v3633_v43 = vpop.f32.mrb[10].mxu0 }
0x195a   : > { %v4975_v48 = vpop.f32.mrb[11].mxu0  ;;  %v3637_v49 = vsel %vm2130_vm11, %v3633_v43, -inf }
0x195b   : > { %3638 = vmax.xlane.f32.xlu1 %v3637_v49 }
0x19cc   : > { %v3798_v50 = vpop.f32.mrb[12].mxu0 }
0x19cd   : > { %v4985_v51 = vpop.f32.mrb[13].mxu0  ;;  %v3802_v54 = vsel %vm2130_vm11, %v3798_v50, -inf }
0x19ce   : > { %3803 = vmax.xlane.f32.xlu0 %v3802_v54 }
0x19e8   : > { %v3639_v58 = vpop.xlane.xlu1 %3638 }
0x19e9   : > { %v3640_v59 = vsub.f32 %v3633_v43, %v3639_v58 }
0x19eb   : > { %v3641_v61 = vmul.f32 1.442695, %v3640_v59  ;;  %v4219_v59 = vld [vmem:[%s6087_s29] sm:$0xff] (!%p4584_p5) }
0x19ed   : > { %5210 = vpow2.f32 %v3641_v61  ;;  %v4220_v61 = vld [vmem:[%s6087_s29 + $0x8] sm:$0xff] (!%p4584_p5) }
0x19f7   : > { %v5211_v10 = vpop.eup %5210 }
0x19f8   : > { %v3643_v63 = vsel %vm2130_vm11, %v5211_v10, 0.0 }
0x19f9   : > { %3644 = vadd.xlane.f32.xlu0 %v3643_v63  ;;  %v4222_v63 = vld [vmem:[%s6087_s29 + $0x18] sm:$0xff] (!%p4584_p5) }
0x1a0f   : > { %3648 = vrot.lane.b32.xlu0 %v3558_v45, %s5236_s1 }
0x1a5b   : > { %v3804_v1 = vpop.xlane.xlu0 %3803 }
0x1a5c   : > { %v3805_v3 = vsub.f32 %v3798_v50, %v3804_v1  ;;  %v5245_v1 = vmov (!%p4584_p5), 0.0  }
0x1a5e   : > { %v3806_v4 = vmul.f32 1.442695, %v3805_v3 }
0x1a60   : > { %5212 = vpow2.f32 %v3806_v4  ;;  %v4612_v4 = vld [vmem:[#allocation3] ss:$0 sm:$0xff] (!%p4584_p5) }
0x1a6a   : > { %v5213_v5 = vpop.eup %5212 }
0x1a6b   : > { %v3808_v6 = vsel %vm2130_vm11, %v5213_v5, 0.0 }
0x1a6c   : > { %3809 = vadd.xlane.f32.xlu1 %v3808_v6 }
0x1a7d   : > { %3813 = vrot.lane.b32.xlu1 %v3558_v45, %s5237_s16 }
0x1a86   : > { %v3645_v8 = vpop.xlane.xlu0 %3644 }
0x1a87   : > { %5214 = vrcp.f32 %v3645_v8 }
0x1a8a   : > { %v3649_v11 = vpop.permute.xlu0 %3648 }
0x1a8b   : > { %4977 = vmatpush3.msra.mxu1 %v3649_v11 }
0x1a8c   : > { %4986 = vmatprep.subr.mxu1 %v5234_v18 }
0x1a91   : > { %v5215_v12 = vpop.eup %5214 }
0x1a92   : > { %v3647_v53 = vmul.f32 %v5215_v12, %v5211_v10  ;;  %v4221_v10 = vld [vmem:[%s6087_s29 + $0x10] sm:$0xff] (!%p4584_p5) }
0x1a93   : > { %v5152_v3 = vpack.c.bf16 (!%p4584_p5), %v4222_v63, %v4221_v10 }
0x1a94   : > { %4979 = vmatmul.mubr.msk.f32.vlgmr.msra.gmra.mrb[8].mxu1 %vm2145_vm12, %v3647_v53 }
0x1a95   : > { %4988 = vmatprep.mubr.msk.f32.mxu1 %vm5233_vm4, %v5234_v18 }
0x1af9   : > { %v3810_v14 = vpop.xlane.xlu1 %3809 }
0x1afa   : > { %5216 = vrcp.f32 %v3810_v14 }
0x1afd   : > { %v3814_v13 = vpop.permute.xlu1 %3813 }
0x1afe   : > { %4987 = vmatpush3.msra.mxu1 %v3814_v13 }
0x1aff   : > { %5127 = vmatprep.subr.bf16.mxu1 %v5232_v15 }
0x1b04   : > { %v5217_v17 = vpop.eup %5216 }
0x1b05   : > { %v3812_v16 = vmul.f32 %v5217_v17, %v5213_v5 }
0x1b07   : > { %4989 = vmatmul.mubr.msk.f32.vlgmr.msra.gmra.mrb[10].mxu1 %vm2145_vm12, %v3812_v16 }
0x1b08   : > { %5129 = vmatpush3.bf16.msra.mxu1 %v5689_v22  ;;  %5002 = vmatprep.mubr.msk.f32.mxu1 %vm5233_vm4, %v5234_v18 }
0x1b09   : > { %5136 = vmatprep.subr.bf16.mxu1 %v5232_v15 }
0x1b67   : > { %v3720_v23 = vpop.f32.mrb[8].mxu1 }
0x1b68   : > { %v4980_v25 = vpop.f32.mrb[9].mxu1  ;;  %5003 = vmatmul.mubr.msk.f32.vlgmr.msra.gmra.mrb[12].mxu1 %vm1381_vm6, %v3720_v23 }
0x1b69   : > { %5138 = vmatpush3.bf16.msra.mxu1 %v5727_v60  ;;  %5032 = vmatprep.mubr.msk.f32.mxu1 %vm5233_vm4, %v5234_v18 }
0x1b6a   : > { %5139 = vmatprep.subr.bf16.mxu1 %v5232_v15 }
0x1b6d   : > { %5141 = vmatpush3.bf16.msra.mxu1 %v5731_v62 }
0x1b6e   : > { %5142 = vmatprep.subr.bf16.mxu1 %v5232_v15 }
0x1b71   : > { %5144 = vmatpush3.bf16.msra.mxu1 %v5737_v2 }
0x1b72   : > { %5145 = vmatprep.subr.bf16.mxu1 %v5232_v15 }
0x1b75   : > { %5147 = vmatpush3.bf16.msra.mxu1 %v5761_v20 }
0x1bda   : > { %v3885_v22 = vpop.f32.mrb[10].mxu1 }
0x1bdb   : > { %v4990_v27 = vpop.f32.mrb[11].mxu1  ;;  %4996 = vmatmul.mubr.msk.f32.vlgmr.msra.gmra.mrb[14].mxu0 %vm1381_vm6, %v3885_v22 }
0x1bdc   : > { %5132 = vmatpush3.bf16.msra.mxu0 %v5715_v52  ;;  %5013 = vmatprep.mubr.msk.f32.mxu0 %vm5233_vm4, %v5234_v18 }
0x1bdd   : > { %5133 = vmatprep.subr.bf16.mxu0 %v5232_v15 }
0x1be0   : > { %5135 = vmatpush3.bf16.msra.mxu0 %v5721_v55 }
0x1c3b   : > { %v4031_v60 = vpop.f32.mrb[12].mxu1 }
0x1c3c   : > { %v5004_v62 = vpop.f32.mrb[13].mxu1 }
0x1cae   : > { %v3958_v2 = vpop.f32.mrb[14].mxu0 }
0x1caf   : > { %v4032_v28 = vadd.f32 %v4031_v60, %v3958_v2  ;;  %v4997_v19 = vpop.f32.mrb[15].mxu0 }
0x1cb1   : > { %v4035_v20 = vadd.f32 %v5707_v33, %v4032_v28 }
0x1cb3   : > { %v4036_v30 = vadd.f32 %v4035_v20, %v5895_v42 }
0x1cb5   : > { %v4037_v21 = vsel %vm1867_vm10, %v4036_v30, 0.0 }
0x1cb6   : > { %4038 = vadd.xlane.f32.xlu1 %v4037_v21 }
0x1d43   : > { %v4039_v52 = vpop.xlane.xlu1 %4038 }
0x1d44   : > { %v4040_v29 = vmul.f32 0.03125, %v4039_v52 }
0x1d46   : > { %v4041_v32 = vsub.f32 %v4036_v30, %v4040_v29 }
0x1d48   : > { %v4042_v18 = vmul.f32 %v4041_v32, %v4041_v32 }
0x1d4a   : > { %v4043_v15 = vsel %vm1867_vm10, %v4042_v18, 0.0 }
0x1d4b   : > { %4044 = vadd.xlane.f32.xlu0 %v4043_v15 }
0x1dd8   : > { %v4045_v55 = vpop.xlane.xlu0 %4044 }
0x1dd9   : > { %v4046_v0 = vmul.f32 0.03125, %v4045_v55 }
0x1ddb   : > { %v4047_v26 = vadd.f32 1e-05, %v4046_v0 }
0x1ddd   : > { %5218 = vrsqrt.f32 %v4047_v26 }
0x1de7   : > { %v5219_v35 = vpop.eup %5218 }
0x1de8   : > { %v4049_v37 = vmul.f32 %v5219_v35, %v4041_v32 }
0x1dea   : > { %v4050_v33 = vmul.f32 %v5747_v7, %v4049_v37 }
0x1dec   : > { %v4051_v40 = vadd.f32 %v5754_v9, %v4050_v33 }
0x1dee   : > { %5014 = vmatmul.mubr.msk.f32.vlgmr.msra.gmra.mrb[16].mxu0 %vm1304_vm5, %v4051_v40 }
0x1def   : > { %5043 = vmatprep.mubr.msk.f32.mxu0 (!%p4584_p5), %vm5244_vm0, %v5245_v1 }
0x1ec1   : > { %v4121_v41 = vpop.f32.mrb[16].mxu0 }
0x1ec2   : > { %v4122_v42 = vadd.f32 %v5769_v24, %v4121_v41  ;;  %v5015_v44 = vpop.f32.mrb[17].mxu0 }
0x1ec4   : > { %v4125_v45 = vmax.f32 %v4122_v42, 0.0 }
0x1ec6   : > { %5033 = vmatmul.mubr.msk.f32.vlgmr.msra.gmra.mrb[14].mxu1 %vm2651_vm13, %v4125_v45 }
0x1f99   : > { %v4195_v46 = vpop.f32.mrb[14].mxu1 }
0x1f9a   : > { %v4196_v34 = vadd.f32 %v5778_v31, %v4195_v46  ;;  %v5034_v36 = vpop.f32.mrb[15].mxu1 }
0x1f9c   : > { %v4199_v47 = vadd.f32 %v4196_v34, %v4051_v40 }
0x1f9e   : > { %v4200_v57 = vsel %vm1867_vm10, %v4199_v47, 0.0 }
0x1f9f   : > { %4201 = vadd.xlane.f32.xlu0 %v4200_v57 }
0x202c   : > { %v4202_v7 = vpop.xlane.xlu0 %4201 }
0x202d   : > { %v4203_v39 = vmul.f32 0.03125, %v4202_v7 }
0x202f   : > { %v4204_v9 = vsub.f32 %v4199_v47, %v4203_v39 }
0x2031   : > { %v4205_v43 = vmul.f32 %v4204_v9, %v4204_v9 }
0x2033   : > { %v4206_v48 = vsel %vm1867_vm10, %v4205_v43, 0.0 }
0x2034   : > { %4207 = vadd.xlane.f32.xlu1 %v4206_v48 }
0x20c1   : > { %v4208_v24 = vpop.xlane.xlu1 %4207 }
0x20c2   : > { %v4209_v49 = vmul.f32 0.03125, %v4208_v24 }
0x20c4   : > { %v4210_v50 = vadd.f32 1e-05, %v4209_v49 }
0x20c6   : > { %5220 = vrsqrt.f32 %v4210_v50 }
0x20d0   : > { %v5221_v51 = vpop.eup %5220 }
0x20d1   : > { %v4212_v54 = vmul.f32 %v5221_v51, %v4204_v9  ;;  %4218 = sbr.rel (%p4584_p5) target bundleno = 8629 (0x21b5), region = 136 }
0x20d3   : > { %v4213_v31 = vmul.f32 %v5788_v38, %v4212_v54  ;;  %v5243_v38 = vmov (!%p4584_p5), 0.0|0.0  }
0x20d4   : > { %5148 = vmatprep.subr.bf16.mxu0 (!%p4584_p5), %v5243_v38 }
0x20d5   : > { %v4214_v58 = vadd.f32 %v5795_v56, %v4213_v31  ;;  %v5149_v56 = vpack.c.bf16 (!%p4584_p5), %v4220_v61, %v4219_v59 }
0x20d7   : > { %4215 = vst.msk [vmem:[#allocation2 + $0x8] sm:$0x3f] %vm1867_vm10, %v4214_v58  ;;  %5150 = vmatpush3.bf16.msra.mxu0 (!%p4584_p5), %v5149_v56 }
0x20d8   : > { %5151 = vmatprep.subr.bf16.mxu0 %v5243_v38 }
0x20db   : > { %5153 = vmatpush3.bf16.msra.mxu0 %v5152_v3 }
0x20de   : > { %5044 = vmatmul.mubr.msk.f32.vlgmr.msra.gmra.mrb[0].mxu0 %vm1304_vm5, %v4214_v58 }
0x21b1   : > { %v4299_v5 = vpop.f32.mrb[0].mxu0 }
0x21b2   : > { %v4300_v6 = vadd.f32 %v4612_v4, %v4299_v5  ;;  %v5045_v8 = vpop.f32.mrb[1].mxu0 }
0x21b4   : > { %4614 = vst.msk [vmem:[%s6088_s3 + $0x8] sm:$0x3f] %vm4304_vm1, %v4300_v6 }
0x21b5 PF: > { %s6089_s7 = sld [smem:[#allocation4_spill]] }
0x21bb   : > { %s38_s28 = sadd.s32 1, %s6089_s7  }
0x21bc   : > { %p35_p6 = scmp.ge.s32.totalorder %s38_s28, 4  }
0x21be   :  { %37 = sbr.rel (!%p35_p6) target bundleno = 22 (0x16), region = 224 }

</bundles_post_ra>
